<compile_context>
chip_gen: v7x
topology: tpu7x:2x2x1
jax: 0.10.0
libtpu: 0.0.40
codegen_flags: <defaults>
</compile_context>

<pallas_src>
import jax
import jax.numpy as jnp
from jax import lax
from jax.experimental import pallas as pl
from jax.experimental.pallas import tpu as pltpu


def _pick_batch_block(B, max_bb=8):
    """Largest divisor of B that is <= max_bb (amortizes per-step overhead)."""
    for bb in range(min(B, max_bb), 0, -1):
        if B % bb == 0:
            return bb
    return 1


def _make_kernel(H, W, Cin, Cout, BB):
    HW = H * W
    WOFF = W + 1                 # flat halo width so every tap shift stays in bounds
    h2, w2 = H // 2, W // 2
    inv1 = 1.0 / (h2 * w2)
    inv2 = 1.0 / (h2 * (W - w2))
    inv3 = 1.0 / ((H - h2) * w2)
    inv4 = 1.0 / ((H - h2) * (W - w2))

    def kernel(x_ref, w_ref, b_ref, m_ref, o_ref, xext_ref):
        # x_ref    [BB, Cin, H*W]          BB images: channels on sublanes, pixels on lanes
        # w_ref    [Cout, 9*Cin]           BN-folded weights, column = (kh*3+kw)*Cin + ci
        # b_ref    [Cout, 1]               BN-folded bias
        # m_ref    [6, H*W]                {0,1} masks: [w>=1, w<W-1, q1, q2, q3, q4]
        # o_ref    [BB, Cout, H*W]         lane-dense output block
        # xext_ref [BB, Cin, H*W + 2*WOFF] VMEM scratch: flat images with zero halo

        # ---- in-kernel halo (zeroed every step: safe under megacore grid split) ----
        xext_ref[...] = jnp.zeros_like(xext_ref)
        xext_ref[:, :, WOFF:WOFF + HW] = x_ref[...]

        masks = m_ref[...]                      # [6, HW] f32
        not_ledge = masks[0:1, :]               # valid positions for dw = -1 taps
        not_redge = masks[1:2, :]               # valid positions for dw = +1 taps

        # ---- 3x3 conv: 9 shifted flat loads + broadcast FMAs (VPU, f32) ----
        acc = jnp.zeros((BB, Cout, HW), jnp.float32)
        for kh in range(3):
            dh = kh - 1
            for kw in range(3):
                dw = kw - 1
                off = WOFF + dh * W + dw                     # static python int, >= 0
                shifted = xext_ref[:, :, off:off + HW]       # [BB, Cin, HW]
                if dw == -1:
                    shifted = shifted * not_ledge            # zero out wrapped-row reads
                elif dw == 1:
                    shifted = shifted * not_redge
                tap = kh * 3 + kw
                for ci in range(Cin):
                    c0 = tap * Cin + ci
                    # [Cout,1] * [BB,1,HW] -> [BB,Cout,HW] broadcast FMA
                    acc = acc + w_ref[:, c0:c0 + 1] * shifted[:, ci:ci + 1, :]

        # ---- bias (BN folded) + ReLU ----
        feat = jnp.maximum(acc + b_ref[...], 0.0)            # [BB, Cout, HW]

        # ---- quadrant sums -> per-image asymmetry scalar (lane + sublane reduce) ----
        q1 = jnp.sum(feat * masks[2:3, :], axis=2, keepdims=True)   # [BB, Cout, 1]
        q2 = jnp.sum(feat * masks[3:4, :], axis=2, keepdims=True)
        q3 = jnp.sum(feat * masks[4:5, :], axis=2, keepdims=True)
        q4 = jnp.sum(feat * masks[5:6, :], axis=2, keepdims=True)
        asym = jnp.sum(jnp.abs(q1 * inv1 - q3 * inv3) +
                       jnp.abs(q2 * inv2 - q4 * inv4),
                       axis=1, keepdims=True)                       # [BB, 1, 1]

        # ---- scale each image by its own asymmetry, lane-dense store ----
        o_ref[...] = feat * asym

    return kernel


def asymmetry_detection_layer(x, conv_w, conv_b, bn_gamma, bn_beta, bn_mean,
                              bn_var, eps=1e-5):
    """x: [B, Cin, H, W] f32 (NCHW). Returns [B, Cout, H, W] f32 (NCHW)."""
    B, Cin, H, W = x.shape
    Cout = conv_w.shape[0]
    HW = H * W
    h2, w2 = H // 2, W // 2
    BB = _pick_batch_block(B)

    # Fold inference-mode BN into the conv: y = (conv(x)+b - mean)*g/sqrt(var+eps)+beta
    scale = bn_gamma / jnp.sqrt(bn_var + eps)                       # [Cout]
    w_scaled = conv_w * scale[:, None, None, None]                  # [Cout,Cin,3,3]
    wT = jnp.transpose(w_scaled, (0, 2, 3, 1)).reshape(Cout, 9 * Cin)
    b_col = (bn_beta + (conv_b - bn_mean) * scale).reshape(Cout, 1)

    # Static {0,1} masks over flat pixel positions (computed once, tiny).
    ridx = jnp.arange(HW, dtype=jnp.int32) // W
    cidx = jnp.arange(HW, dtype=jnp.int32) % W
    top, left = ridx < h2, cidx < w2
    masks = jnp.stack([
        (cidx >= 1).astype(jnp.float32),
        (cidx < W - 1).astype(jnp.float32),
        (top & left).astype(jnp.float32),
        (top & ~left).astype(jnp.float32),
        (~top & left).astype(jnp.float32),
        (~top & ~left).astype(jnp.float32),
    ]).reshape(6, HW)

    x_flat = x.reshape(B, Cin, HW)     # free bitcast reshape, stays NCHW order

    out_flat = pl.pallas_call(
        _make_kernel(H, W, Cin, Cout, BB),
        out_shape=jax.ShapeDtypeStruct((B, Cout, HW), jnp.float32),
        grid_spec=pltpu.PrefetchScalarGridSpec(
            num_scalar_prefetch=0,
            grid=(B // BB,),
            in_specs=[
                pl.BlockSpec((BB, Cin, HW), lambda b: (b, 0, 0)),       # BB images
                pl.BlockSpec((Cout, 9 * Cin), lambda b: (0, 0)),        # weights
                pl.BlockSpec((Cout, 1), lambda b: (0, 0)),              # bias
                pl.BlockSpec((6, HW), lambda b: (0, 0)),                # masks
            ],
            out_specs=pl.BlockSpec((BB, Cout, HW), lambda b: (b, 0, 0)),
            scratch_shapes=[pltpu.VMEM((BB, Cin, HW + 2 * (W + 1)), jnp.float32)],
        ),
        compiler_params=pltpu.CompilerParams(
            dimension_semantics=("parallel",),     # batch blocks are independent
            vmem_limit_bytes=32 * 1024 * 1024,
        ),
    )(x_flat, wT, b_col, masks)

    return out_flat.reshape(B, Cout, H, W)         # free bitcast reshape back to NCHW


def _reference(x, conv_w, conv_b, bn_gamma, bn_beta, bn_mean, bn_var, eps=1e-5):
    """Pure-JAX reference of the same (BN-folded, inference) forward pass."""
    scale = bn_gamma / jnp.sqrt(bn_var + eps)
    w_hwio = jnp.transpose(conv_w, (2, 3, 1, 0)) * scale[None, None, None, :]
    bias = bn_beta + (conv_b - bn_mean) * scale
    x_nhwc = jnp.transpose(x, (0, 2, 3, 1))
    feat = lax.conv_general_dilated(
        x_nhwc, w_hwio, window_strides=(1, 1), padding="SAME",
        dimension_numbers=("NHWC", "HWIO", "NHWC"),
        precision=lax.Precision.HIGHEST)
    feat = jnp.maximum(feat + bias, 0.0)
    H, W = feat.shape[1], feat.shape[2]
    h2, w2 = H // 2, W // 2
    q1 = feat[:, :h2, :w2, :].mean(axis=(1, 2))
    q2 = feat[:, :h2, w2:, :].mean(axis=(1, 2))
    q3 = feat[:, h2:, :w2, :].mean(axis=(1, 2))
    q4 = feat[:, h2:, w2:, :].mean(axis=(1, 2))
    asym = jnp.sum(jnp.abs(q1 - q3) + jnp.abs(q2 - q4), axis=1)     # [B]
    out = feat * asym[:, None, None, None]
    return jnp.transpose(out, (0, 3, 1, 2))


if __name__ == "__main__":
    key = jax.random.PRNGKey(0)
    B, Cin, Cout, H, W = 2, 4, 8, 16, 16

    k_x, k_w, k_b, k_g, k_be, k_m, k_v = jax.random.split(key, 7)
    x = jax.random.normal(k_x, (B, Cin, H, W), jnp.float32)

    # deterministic synthetic parameters (Conv2d + BatchNorm2d, inference mode)
    conv_w = 0.1 * jax.random.normal(k_w, (Cout, Cin, 3, 3), jnp.float32)
    conv_b = 0.1 * jax.random.normal(k_b, (Cout,), jnp.float32)
    bn_gamma = 1.0 + 0.1 * jax.random.normal(k_g, (Cout,), jnp.float32)
    bn_beta = 0.1 * jax.random.normal(k_be, (Cout,), jnp.float32)
    bn_mean = 0.1 * jax.random.normal(k_m, (Cout,), jnp.float32)
    bn_var = jnp.abs(jax.random.normal(k_v, (Cout,), jnp.float32)) + 0.5

    out = jax.block_until_ready(
        asymmetry_detection_layer(x, conv_w, conv_b, bn_gamma, bn_beta,
                                  bn_mean, bn_var))
    ref = jax.block_until_ready(
        _reference(x, conv_w, conv_b, bn_gamma, bn_beta, bn_mean, bn_var))

    assert out.shape == (B, Cout, H, W)
    assert jnp.allclose(out, ref, atol=1e-4, rtol=1e-4), \
        float(jnp.max(jnp.abs(out - ref)))
    print("KERNEL_OK")
</pallas_src>

<mosaic_0001>
module attributes {stable_mosaic.version = 11 : i64} {
  func.func @kernel(%arg0: i32, %arg1: memref<2x4x256xf32, #tpu.memory_space<vmem>>, %arg2: memref<8x36xf32, #tpu.memory_space<vmem>>, %arg3: memref<8x1xf32, #tpu.memory_space<vmem>>, %arg4: memref<6x256xf32, #tpu.memory_space<vmem>>, %arg5: memref<2x8x256xf32, #tpu.memory_space<vmem>>, %arg6: memref<2x4x290xf32, #tpu.memory_space<vmem>>) attributes {dimension_semantics = [#tpu.dimension_semantics<parallel>], iteration_bounds = array<i64: 1>, scalar_prefetch = 0 : i64, scratch_operands = 1 : i64, tpu.core_type = #tpu.core_type<tc>, window_params = [{transform_indices = @transform_0, window_bounds = array<i64: 2, 4, 256>}, {pipeline_mode = #tpu.pipeline_mode<synchronous>, transform_indices = @transform_1, window_bounds = array<i64: 8, 36>}, {pipeline_mode = #tpu.pipeline_mode<synchronous>, transform_indices = @transform_2, window_bounds = array<i64: 8, 1>}, {pipeline_mode = #tpu.pipeline_mode<synchronous>, transform_indices = @transform_3, window_bounds = array<i64: 6, 256>}, {transform_indices = @transform_4, window_bounds = array<i64: 2, 8, 256>}]} {
    %cst = arith.constant 0.000000e+00 : f32
    %0 = vector.broadcast %cst : f32 to vector<2x4x290xf32>
    %c0 = arith.constant 0 : index
    %c0_0 = arith.constant 0 : index
    %c0_1 = arith.constant 0 : index
    %1 = vector.load %arg6[%c0, %c0_0, %c0_1] : memref<2x4x290xf32, #tpu.memory_space<vmem>>, vector<2x4x290xf32>
    tpu.vector_store %arg6[%c0, %c0_0, %c0_1], %0 {strides = array<i32>} : memref<2x4x290xf32, #tpu.memory_space<vmem>>, vector<2x4x290xf32>,
    %c0_2 = arith.constant 0 : index
    %c0_3 = arith.constant 0 : index
    %c0_4 = arith.constant 0 : index
    %2 = vector.load %arg1[%c0_2, %c0_3, %c0_4] : memref<2x4x256xf32, #tpu.memory_space<vmem>>, vector<2x4x256xf32>
    %c0_5 = arith.constant 0 : index
    %c0_6 = arith.constant 0 : index
    %c17 = arith.constant 17 : index
    %3 = vector.load %arg6[%c0_5, %c0_6, %c17] : memref<2x4x290xf32, #tpu.memory_space<vmem>>, vector<2x4x256xf32>
    tpu.vector_store %arg6[%c0_5, %c0_6, %c17], %2 {strides = array<i32>} : memref<2x4x290xf32, #tpu.memory_space<vmem>>, vector<2x4x256xf32>,
    %c0_7 = arith.constant 0 : index
    %c0_8 = arith.constant 0 : index
    %4 = vector.load %arg4[%c0_7, %c0_8] : memref<6x256xf32, #tpu.memory_space<vmem>>, vector<6x256xf32>
    %5 = vector.extract_strided_slice %4 {offsets = [0, 0], sizes = [1, 256], strides = [1, 1]} : vector<6x256xf32> to vector<1x256xf32>
    %6 = vector.extract_strided_slice %4 {offsets = [1, 0], sizes = [1, 256], strides = [1, 1]} : vector<6x256xf32> to vector<1x256xf32>
    %cst_9 = arith.constant 0.000000e+00 : f32
    %7 = vector.broadcast %cst_9 : f32 to vector<2x8x256xf32>
    %c0_10 = arith.constant 0 : index
    %c0_11 = arith.constant 0 : index
    %c0_12 = arith.constant 0 : index
    %8 = vector.load %arg6[%c0_10, %c0_11, %c0_12] : memref<2x4x290xf32, #tpu.memory_space<vmem>>, vector<2x4x256xf32>
    %9 = vector.shape_cast %5 : vector<1x256xf32> to vector<1x1x256xf32>
    %10 = vector.broadcast %9 : vector<1x1x256xf32> to vector<2x4x256xf32>
    %11 = arith.mulf %8, %10 : vector<2x4x256xf32>
    %c0_13 = arith.constant 0 : index
    %c0_14 = arith.constant 0 : index
    %12 = vector.load %arg2[%c0_13, %c0_14] : memref<8x36xf32, #tpu.memory_space<vmem>>, vector<8x1xf32>
    %13 = vector.extract_strided_slice %11 {offsets = [0, 0, 0], sizes = [2, 1, 256], strides = [1, 1, 1]} : vector<2x4x256xf32> to vector<2x1x256xf32>
    %14 = vector.shape_cast %12 : vector<8x1xf32> to vector<1x8x1xf32>
    %15 = vector.broadcast %14 : vector<1x8x1xf32> to vector<2x8x256xf32>
    %16 = vector.broadcast %13 : vector<2x1x256xf32> to vector<2x8x256xf32>
    %17 = arith.mulf %15, %16 : vector<2x8x256xf32>
    %18 = arith.addf %7, %17 : vector<2x8x256xf32>
    %c0_15 = arith.constant 0 : index
    %c1 = arith.constant 1 : index
    %19 = vector.load %arg2[%c0_15, %c1] : memref<8x36xf32, #tpu.memory_space<vmem>>, vector<8x1xf32>
    %20 = vector.extract_strided_slice %11 {offsets = [0, 1, 0], sizes = [2, 1, 256], strides = [1, 1, 1]} : vector<2x4x256xf32> to vector<2x1x256xf32>
    %21 = vector.shape_cast %19 : vector<8x1xf32> to vector<1x8x1xf32>
    %22 = vector.broadcast %21 : vector<1x8x1xf32> to vector<2x8x256xf32>
    %23 = vector.broadcast %20 : vector<2x1x256xf32> to vector<2x8x256xf32>
    %24 = arith.mulf %22, %23 : vector<2x8x256xf32>
    %25 = arith.addf %18, %24 : vector<2x8x256xf32>
    %c0_16 = arith.constant 0 : index
    %c2 = arith.constant 2 : index
    %26 = vector.load %arg2[%c0_16, %c2] : memref<8x36xf32, #tpu.memory_space<vmem>>, vector<8x1xf32>
    %27 = vector.extract_strided_slice %11 {offsets = [0, 2, 0], sizes = [2, 1, 256], strides = [1, 1, 1]} : vector<2x4x256xf32> to vector<2x1x256xf32>
    %28 = vector.shape_cast %26 : vector<8x1xf32> to vector<1x8x1xf32>
    %29 = vector.broadcast %28 : vector<1x8x1xf32> to vector<2x8x256xf32>
    %30 = vector.broadcast %27 : vector<2x1x256xf32> to vector<2x8x256xf32>
    %31 = arith.mulf %29, %30 : vector<2x8x256xf32>
    %32 = arith.addf %25, %31 : vector<2x8x256xf32>
    %c0_17 = arith.constant 0 : index
    %c3 = arith.constant 3 : index
    %33 = vector.load %arg2[%c0_17, %c3] : memref<8x36xf32, #tpu.memory_space<vmem>>, vector<8x1xf32>
    %34 = vector.extract_strided_slice %11 {offsets = [0, 3, 0], sizes = [2, 1, 256], strides = [1, 1, 1]} : vector<2x4x256xf32> to vector<2x1x256xf32>
    %35 = vector.shape_cast %33 : vector<8x1xf32> to vector<1x8x1xf32>
    %36 = vector.broadcast %35 : vector<1x8x1xf32> to vector<2x8x256xf32>
    %37 = vector.broadcast %34 : vector<2x1x256xf32> to vector<2x8x256xf32>
    %38 = arith.mulf %36, %37 : vector<2x8x256xf32>
    %39 = arith.addf %32, %38 : vector<2x8x256xf32>
    %c0_18 = arith.constant 0 : index
    %c0_19 = arith.constant 0 : index
    %c1_20 = arith.constant 1 : index
    %40 = vector.load %arg6[%c0_18, %c0_19, %c1_20] : memref<2x4x290xf32, #tpu.memory_space<vmem>>, vector<2x4x256xf32>
    %c0_21 = arith.constant 0 : index
    %c4 = arith.constant 4 : index
    %41 = vector.load %arg2[%c0_21, %c4] : memref<8x36xf32, #tpu.memory_space<vmem>>, vector<8x1xf32>
    %42 = vector.extract_strided_slice %40 {offsets = [0, 0, 0], sizes = [2, 1, 256], strides = [1, 1, 1]} : vector<2x4x256xf32> to vector<2x1x256xf32>
    %43 = vector.shape_cast %41 : vector<8x1xf32> to vector<1x8x1xf32>
    %44 = vector.broadcast %43 : vector<1x8x1xf32> to vector<2x8x256xf32>
    %45 = vector.broadcast %42 : vector<2x1x256xf32> to vector<2x8x256xf32>
    %46 = arith.mulf %44, %45 : vector<2x8x256xf32>
    %47 = arith.addf %39, %46 : vector<2x8x256xf32>
    %c0_22 = arith.constant 0 : index
    %c5 = arith.constant 5 : index
    %48 = vector.load %arg2[%c0_22, %c5] : memref<8x36xf32, #tpu.memory_space<vmem>>, vector<8x1xf32>
    %49 = vector.extract_strided_slice %40 {offsets = [0, 1, 0], sizes = [2, 1, 256], strides = [1, 1, 1]} : vector<2x4x256xf32> to vector<2x1x256xf32>
    %50 = vector.shape_cast %48 : vector<8x1xf32> to vector<1x8x1xf32>
    %51 = vector.broadcast %50 : vector<1x8x1xf32> to vector<2x8x256xf32>
    %52 = vector.broadcast %49 : vector<2x1x256xf32> to vector<2x8x256xf32>
    %53 = arith.mulf %51, %52 : vector<2x8x256xf32>
    %54 = arith.addf %47, %53 : vector<2x8x256xf32>
    %c0_23 = arith.constant 0 : index
    %c6 = arith.constant 6 : index
    %55 = vector.load %arg2[%c0_23, %c6] : memref<8x36xf32, #tpu.memory_space<vmem>>, vector<8x1xf32>
    %56 = vector.extract_strided_slice %40 {offsets = [0, 2, 0], sizes = [2, 1, 256], strides = [1, 1, 1]} : vector<2x4x256xf32> to vector<2x1x256xf32>
    %57 = vector.shape_cast %55 : vector<8x1xf32> to vector<1x8x1xf32>
    %58 = vector.broadcast %57 : vector<1x8x1xf32> to vector<2x8x256xf32>
    %59 = vector.broadcast %56 : vector<2x1x256xf32> to vector<2x8x256xf32>
    %60 = arith.mulf %58, %59 : vector<2x8x256xf32>
    %61 = arith.addf %54, %60 : vector<2x8x256xf32>
    %c0_24 = arith.constant 0 : index
    %c7 = arith.constant 7 : index
    %62 = vector.load %arg2[%c0_24, %c7] : memref<8x36xf32, #tpu.memory_space<vmem>>, vector<8x1xf32>
    %63 = vector.extract_strided_slice %40 {offsets = [0, 3, 0], sizes = [2, 1, 256], strides = [1, 1, 1]} : vector<2x4x256xf32> to vector<2x1x256xf32>
    %64 = vector.shape_cast %62 : vector<8x1xf32> to vector<1x8x1xf32>
    %65 = vector.broadcast %64 : vector<1x8x1xf32> to vector<2x8x256xf32>
    %66 = vector.broadcast %63 : vector<2x1x256xf32> to vector<2x8x256xf32>
    %67 = arith.mulf %65, %66 : vector<2x8x256xf32>
    %68 = arith.addf %61, %67 : vector<2x8x256xf32>
    %c0_25 = arith.constant 0 : index
    %c0_26 = arith.constant 0 : index
    %c2_27 = arith.constant 2 : index
    %69 = vector.load %arg6[%c0_25, %c0_26, %c2_27] : memref<2x4x290xf32, #tpu.memory_space<vmem>>, vector<2x4x256xf32>
    %70 = vector.shape_cast %6 : vector<1x256xf32> to vector<1x1x256xf32>
    %71 = vector.broadcast %70 : vector<1x1x256xf32> to vector<2x4x256xf32>
    %72 = arith.mulf %69, %71 : vector<2x4x256xf32>
    %c0_28 = arith.constant 0 : index
    %c8 = arith.constant 8 : index
    %73 = vector.load %arg2[%c0_28, %c8] : memref<8x36xf32, #tpu.memory_space<vmem>>, vector<8x1xf32>
    %74 = vector.extract_strided_slice %72 {offsets = [0, 0, 0], sizes = [2, 1, 256], strides = [1, 1, 1]} : vector<2x4x256xf32> to vector<2x1x256xf32>
    %75 = vector.shape_cast %73 : vector<8x1xf32> to vector<1x8x1xf32>
    %76 = vector.broadcast %75 : vector<1x8x1xf32> to vector<2x8x256xf32>
    %77 = vector.broadcast %74 : vector<2x1x256xf32> to vector<2x8x256xf32>
    %78 = arith.mulf %76, %77 : vector<2x8x256xf32>
    %79 = arith.addf %68, %78 : vector<2x8x256xf32>
    %c0_29 = arith.constant 0 : index
    %c9 = arith.constant 9 : index
    %80 = vector.load %arg2[%c0_29, %c9] : memref<8x36xf32, #tpu.memory_space<vmem>>, vector<8x1xf32>
    %81 = vector.extract_strided_slice %72 {offsets = [0, 1, 0], sizes = [2, 1, 256], strides = [1, 1, 1]} : vector<2x4x256xf32> to vector<2x1x256xf32>
    %82 = vector.shape_cast %80 : vector<8x1xf32> to vector<1x8x1xf32>
    %83 = vector.broadcast %82 : vector<1x8x1xf32> to vector<2x8x256xf32>
    %84 = vector.broadcast %81 : vector<2x1x256xf32> to vector<2x8x256xf32>
    %85 = arith.mulf %83, %84 : vector<2x8x256xf32>
    %86 = arith.addf %79, %85 : vector<2x8x256xf32>
    %c0_30 = arith.constant 0 : index
    %c10 = arith.constant 10 : index
    %87 = vector.load %arg2[%c0_30, %c10] : memref<8x36xf32, #tpu.memory_space<vmem>>, vector<8x1xf32>
    %88 = vector.extract_strided_slice %72 {offsets = [0, 2, 0], sizes = [2, 1, 256], strides = [1, 1, 1]} : vector<2x4x256xf32> to vector<2x1x256xf32>
    %89 = vector.shape_cast %87 : vector<8x1xf32> to vector<1x8x1xf32>
    %90 = vector.broadcast %89 : vector<1x8x1xf32> to vector<2x8x256xf32>
    %91 = vector.broadcast %88 : vector<2x1x256xf32> to vector<2x8x256xf32>
    %92 = arith.mulf %90, %91 : vector<2x8x256xf32>
    %93 = arith.addf %86, %92 : vector<2x8x256xf32>
    %c0_31 = arith.constant 0 : index
    %c11 = arith.constant 11 : index
    %94 = vector.load %arg2[%c0_31, %c11] : memref<8x36xf32, #tpu.memory_space<vmem>>, vector<8x1xf32>
    %95 = vector.extract_strided_slice %72 {offsets = [0, 3, 0], sizes = [2, 1, 256], strides = [1, 1, 1]} : vector<2x4x256xf32> to vector<2x1x256xf32>
    %96 = vector.shape_cast %94 : vector<8x1xf32> to vector<1x8x1xf32>
    %97 = vector.broadcast %96 : vector<1x8x1xf32> to vector<2x8x256xf32>
    %98 = vector.broadcast %95 : vector<2x1x256xf32> to vector<2x8x256xf32>
    %99 = arith.mulf %97, %98 : vector<2x8x256xf32>
    %100 = arith.addf %93, %99 : vector<2x8x256xf32>
    %c0_32 = arith.constant 0 : index
    %c0_33 = arith.constant 0 : index
    %c16 = arith.constant 16 : index
    %101 = vector.load %arg6[%c0_32, %c0_33, %c16] : memref<2x4x290xf32, #tpu.memory_space<vmem>>, vector<2x4x256xf32>
    %102 = vector.shape_cast %5 : vector<1x256xf32> to vector<1x1x256xf32>
    %103 = vector.broadcast %102 : vector<1x1x256xf32> to vector<2x4x256xf32>
    %104 = arith.mulf %101, %103 : vector<2x4x256xf32>
    %c0_34 = arith.constant 0 : index
    %c12 = arith.constant 12 : index
    %105 = vector.load %arg2[%c0_34, %c12] : memref<8x36xf32, #tpu.memory_space<vmem>>, vector<8x1xf32>
    %106 = vector.extract_strided_slice %104 {offsets = [0, 0, 0], sizes = [2, 1, 256], strides = [1, 1, 1]} : vector<2x4x256xf32> to vector<2x1x256xf32>
    %107 = vector.shape_cast %105 : vector<8x1xf32> to vector<1x8x1xf32>
    %108 = vector.broadcast %107 : vector<1x8x1xf32> to vector<2x8x256xf32>
    %109 = vector.broadcast %106 : vector<2x1x256xf32> to vector<2x8x256xf32>
    %110 = arith.mulf %108, %109 : vector<2x8x256xf32>
    %111 = arith.addf %100, %110 : vector<2x8x256xf32>
    %c0_35 = arith.constant 0 : index
    %c13 = arith.constant 13 : index
    %112 = vector.load %arg2[%c0_35, %c13] : memref<8x36xf32, #tpu.memory_space<vmem>>, vector<8x1xf32>
    %113 = vector.extract_strided_slice %104 {offsets = [0, 1, 0], sizes = [2, 1, 256], strides = [1, 1, 1]} : vector<2x4x256xf32> to vector<2x1x256xf32>
    %114 = vector.shape_cast %112 : vector<8x1xf32> to vector<1x8x1xf32>
    %115 = vector.broadcast %114 : vector<1x8x1xf32> to vector<2x8x256xf32>
    %116 = vector.broadcast %113 : vector<2x1x256xf32> to vector<2x8x256xf32>
    %117 = arith.mulf %115, %116 : vector<2x8x256xf32>
    %118 = arith.addf %111, %117 : vector<2x8x256xf32>
    %c0_36 = arith.constant 0 : index
    %c14 = arith.constant 14 : index
    %119 = vector.load %arg2[%c0_36, %c14] : memref<8x36xf32, #tpu.memory_space<vmem>>, vector<8x1xf32>
    %120 = vector.extract_strided_slice %104 {offsets = [0, 2, 0], sizes = [2, 1, 256], strides = [1, 1, 1]} : vector<2x4x256xf32> to vector<2x1x256xf32>
    %121 = vector.shape_cast %119 : vector<8x1xf32> to vector<1x8x1xf32>
    %122 = vector.broadcast %121 : vector<1x8x1xf32> to vector<2x8x256xf32>
    %123 = vector.broadcast %120 : vector<2x1x256xf32> to vector<2x8x256xf32>
    %124 = arith.mulf %122, %123 : vector<2x8x256xf32>
    %125 = arith.addf %118, %124 : vector<2x8x256xf32>
    %c0_37 = arith.constant 0 : index
    %c15 = arith.constant 15 : index
    %126 = vector.load %arg2[%c0_37, %c15] : memref<8x36xf32, #tpu.memory_space<vmem>>, vector<8x1xf32>
    %127 = vector.extract_strided_slice %104 {offsets = [0, 3, 0], sizes = [2, 1, 256], strides = [1, 1, 1]} : vector<2x4x256xf32> to vector<2x1x256xf32>
    %128 = vector.shape_cast %126 : vector<8x1xf32> to vector<1x8x1xf32>
    %129 = vector.broadcast %128 : vector<1x8x1xf32> to vector<2x8x256xf32>
    %130 = vector.broadcast %127 : vector<2x1x256xf32> to vector<2x8x256xf32>
    %131 = arith.mulf %129, %130 : vector<2x8x256xf32>
    %132 = arith.addf %125, %131 : vector<2x8x256xf32>
    %c0_38 = arith.constant 0 : index
    %c0_39 = arith.constant 0 : index
    %c17_40 = arith.constant 17 : index
    %133 = vector.load %arg6[%c0_38, %c0_39, %c17_40] : memref<2x4x290xf32, #tpu.memory_space<vmem>>, vector<2x4x256xf32>
    %c0_41 = arith.constant 0 : index
    %c16_42 = arith.constant 16 : index
    %134 = vector.load %arg2[%c0_41, %c16_42] : memref<8x36xf32, #tpu.memory_space<vmem>>, vector<8x1xf32>
    %135 = vector.extract_strided_slice %133 {offsets = [0, 0, 0], sizes = [2, 1, 256], strides = [1, 1, 1]} : vector<2x4x256xf32> to vector<2x1x256xf32>
    %136 = vector.shape_cast %134 : vector<8x1xf32> to vector<1x8x1xf32>
    %137 = vector.broadcast %136 : vector<1x8x1xf32> to vector<2x8x256xf32>
    %138 = vector.broadcast %135 : vector<2x1x256xf32> to vector<2x8x256xf32>
    %139 = arith.mulf %137, %138 : vector<2x8x256xf32>
    %140 = arith.addf %132, %139 : vector<2x8x256xf32>
    %c0_43 = arith.constant 0 : index
    %c17_44 = arith.constant 17 : index
    %141 = vector.load %arg2[%c0_43, %c17_44] : memref<8x36xf32, #tpu.memory_space<vmem>>, vector<8x1xf32>
    %142 = vector.extract_strided_slice %133 {offsets = [0, 1, 0], sizes = [2, 1, 256], strides = [1, 1, 1]} : vector<2x4x256xf32> to vector<2x1x256xf32>
    %143 = vector.shape_cast %141 : vector<8x1xf32> to vector<1x8x1xf32>
    %144 = vector.broadcast %143 : vector<1x8x1xf32> to vector<2x8x256xf32>
    %145 = vector.broadcast %142 : vector<2x1x256xf32> to vector<2x8x256xf32>
    %146 = arith.mulf %144, %145 : vector<2x8x256xf32>
    %147 = arith.addf %140, %146 : vector<2x8x256xf32>
    %c0_45 = arith.constant 0 : index
    %c18 = arith.constant 18 : index
    %148 = vector.load %arg2[%c0_45, %c18] : memref<8x36xf32, #tpu.memory_space<vmem>>, vector<8x1xf32>
    %149 = vector.extract_strided_slice %133 {offsets = [0, 2, 0], sizes = [2, 1, 256], strides = [1, 1, 1]} : vector<2x4x256xf32> to vector<2x1x256xf32>
    %150 = vector.shape_cast %148 : vector<8x1xf32> to vector<1x8x1xf32>
    %151 = vector.broadcast %150 : vector<1x8x1xf32> to vector<2x8x256xf32>
    %152 = vector.broadcast %149 : vector<2x1x256xf32> to vector<2x8x256xf32>
    %153 = arith.mulf %151, %152 : vector<2x8x256xf32>
    %154 = arith.addf %147, %153 : vector<2x8x256xf32>
    %c0_46 = arith.constant 0 : index
    %c19 = arith.constant 19 : index
    %155 = vector.load %arg2[%c0_46, %c19] : memref<8x36xf32, #tpu.memory_space<vmem>>, vector<8x1xf32>
    %156 = vector.extract_strided_slice %133 {offsets = [0, 3, 0], sizes = [2, 1, 256], strides = [1, 1, 1]} : vector<2x4x256xf32> to vector<2x1x256xf32>
    %157 = vector.shape_cast %155 : vector<8x1xf32> to vector<1x8x1xf32>
    %158 = vector.broadcast %157 : vector<1x8x1xf32> to vector<2x8x256xf32>
    %159 = vector.broadcast %156 : vector<2x1x256xf32> to vector<2x8x256xf32>
    %160 = arith.mulf %158, %159 : vector<2x8x256xf32>
    %161 = arith.addf %154, %160 : vector<2x8x256xf32>
    %c0_47 = arith.constant 0 : index
    %c0_48 = arith.constant 0 : index
    %c18_49 = arith.constant 18 : index
    %162 = vector.load %arg6[%c0_47, %c0_48, %c18_49] : memref<2x4x290xf32, #tpu.memory_space<vmem>>, vector<2x4x256xf32>
    %163 = vector.shape_cast %6 : vector<1x256xf32> to vector<1x1x256xf32>
    %164 = vector.broadcast %163 : vector<1x1x256xf32> to vector<2x4x256xf32>
    %165 = arith.mulf %162, %164 : vector<2x4x256xf32>
    %c0_50 = arith.constant 0 : index
    %c20 = arith.constant 20 : index
    %166 = vector.load %arg2[%c0_50, %c20] : memref<8x36xf32, #tpu.memory_space<vmem>>, vector<8x1xf32>
    %167 = vector.extract_strided_slice %165 {offsets = [0, 0, 0], sizes = [2, 1, 256], strides = [1, 1, 1]} : vector<2x4x256xf32> to vector<2x1x256xf32>
    %168 = vector.shape_cast %166 : vector<8x1xf32> to vector<1x8x1xf32>
    %169 = vector.broadcast %168 : vector<1x8x1xf32> to vector<2x8x256xf32>
    %170 = vector.broadcast %167 : vector<2x1x256xf32> to vector<2x8x256xf32>
    %171 = arith.mulf %169, %170 : vector<2x8x256xf32>
    %172 = arith.addf %161, %171 : vector<2x8x256xf32>
    %c0_51 = arith.constant 0 : index
    %c21 = arith.constant 21 : index
    %173 = vector.load %arg2[%c0_51, %c21] : memref<8x36xf32, #tpu.memory_space<vmem>>, vector<8x1xf32>
    %174 = vector.extract_strided_slice %165 {offsets = [0, 1, 0], sizes = [2, 1, 256], strides = [1, 1, 1]} : vector<2x4x256xf32> to vector<2x1x256xf32>
    %175 = vector.shape_cast %173 : vector<8x1xf32> to vector<1x8x1xf32>
    %176 = vector.broadcast %175 : vector<1x8x1xf32> to vector<2x8x256xf32>
    %177 = vector.broadcast %174 : vector<2x1x256xf32> to vector<2x8x256xf32>
    %178 = arith.mulf %176, %177 : vector<2x8x256xf32>
    %179 = arith.addf %172, %178 : vector<2x8x256xf32>
    %c0_52 = arith.constant 0 : index
    %c22 = arith.constant 22 : index
    %180 = vector.load %arg2[%c0_52, %c22] : memref<8x36xf32, #tpu.memory_space<vmem>>, vector<8x1xf32>
    %181 = vector.extract_strided_slice %165 {offsets = [0, 2, 0], sizes = [2, 1, 256], strides = [1, 1, 1]} : vector<2x4x256xf32> to vector<2x1x256xf32>
    %182 = vector.shape_cast %180 : vector<8x1xf32> to vector<1x8x1xf32>
    %183 = vector.broadcast %182 : vector<1x8x1xf32> to vector<2x8x256xf32>
    %184 = vector.broadcast %181 : vector<2x1x256xf32> to vector<2x8x256xf32>
    %185 = arith.mulf %183, %184 : vector<2x8x256xf32>
    %186 = arith.addf %179, %185 : vector<2x8x256xf32>
    %c0_53 = arith.constant 0 : index
    %c23 = arith.constant 23 : index
    %187 = vector.load %arg2[%c0_53, %c23] : memref<8x36xf32, #tpu.memory_space<vmem>>, vector<8x1xf32>
    %188 = vector.extract_strided_slice %165 {offsets = [0, 3, 0], sizes = [2, 1, 256], strides = [1, 1, 1]} : vector<2x4x256xf32> to vector<2x1x256xf32>
    %189 = vector.shape_cast %187 : vector<8x1xf32> to vector<1x8x1xf32>
    %190 = vector.broadcast %189 : vector<1x8x1xf32> to vector<2x8x256xf32>
    %191 = vector.broadcast %188 : vector<2x1x256xf32> to vector<2x8x256xf32>
    %192 = arith.mulf %190, %191 : vector<2x8x256xf32>
    %193 = arith.addf %186, %192 : vector<2x8x256xf32>
    %c0_54 = arith.constant 0 : index
    %c0_55 = arith.constant 0 : index
    %c32 = arith.constant 32 : index
    %194 = vector.load %arg6[%c0_54, %c0_55, %c32] : memref<2x4x290xf32, #tpu.memory_space<vmem>>, vector<2x4x256xf32>
    %195 = vector.shape_cast %5 : vector<1x256xf32> to vector<1x1x256xf32>
    %196 = vector.broadcast %195 : vector<1x1x256xf32> to vector<2x4x256xf32>
    %197 = arith.mulf %194, %196 : vector<2x4x256xf32>
    %c0_56 = arith.constant 0 : index
    %c24 = arith.constant 24 : index
    %198 = vector.load %arg2[%c0_56, %c24] : memref<8x36xf32, #tpu.memory_space<vmem>>, vector<8x1xf32>
    %199 = vector.extract_strided_slice %197 {offsets = [0, 0, 0], sizes = [2, 1, 256], strides = [1, 1, 1]} : vector<2x4x256xf32> to vector<2x1x256xf32>
    %200 = vector.shape_cast %198 : vector<8x1xf32> to vector<1x8x1xf32>
    %201 = vector.broadcast %200 : vector<1x8x1xf32> to vector<2x8x256xf32>
    %202 = vector.broadcast %199 : vector<2x1x256xf32> to vector<2x8x256xf32>
    %203 = arith.mulf %201, %202 : vector<2x8x256xf32>
    %204 = arith.addf %193, %203 : vector<2x8x256xf32>
    %c0_57 = arith.constant 0 : index
    %c25 = arith.constant 25 : index
    %205 = vector.load %arg2[%c0_57, %c25] : memref<8x36xf32, #tpu.memory_space<vmem>>, vector<8x1xf32>
    %206 = vector.extract_strided_slice %197 {offsets = [0, 1, 0], sizes = [2, 1, 256], strides = [1, 1, 1]} : vector<2x4x256xf32> to vector<2x1x256xf32>
    %207 = vector.shape_cast %205 : vector<8x1xf32> to vector<1x8x1xf32>
    %208 = vector.broadcast %207 : vector<1x8x1xf32> to vector<2x8x256xf32>
    %209 = vector.broadcast %206 : vector<2x1x256xf32> to vector<2x8x256xf32>
    %210 = arith.mulf %208, %209 : vector<2x8x256xf32>
    %211 = arith.addf %204, %210 : vector<2x8x256xf32>
    %c0_58 = arith.constant 0 : index
    %c26 = arith.constant 26 : index
    %212 = vector.load %arg2[%c0_58, %c26] : memref<8x36xf32, #tpu.memory_space<vmem>>, vector<8x1xf32>
    %213 = vector.extract_strided_slice %197 {offsets = [0, 2, 0], sizes = [2, 1, 256], strides = [1, 1, 1]} : vector<2x4x256xf32> to vector<2x1x256xf32>
    %214 = vector.shape_cast %212 : vector<8x1xf32> to vector<1x8x1xf32>
    %215 = vector.broadcast %214 : vector<1x8x1xf32> to vector<2x8x256xf32>
    %216 = vector.broadcast %213 : vector<2x1x256xf32> to vector<2x8x256xf32>
    %217 = arith.mulf %215, %216 : vector<2x8x256xf32>
    %218 = arith.addf %211, %217 : vector<2x8x256xf32>
    %c0_59 = arith.constant 0 : index
    %c27 = arith.constant 27 : index
    %219 = vector.load %arg2[%c0_59, %c27] : memref<8x36xf32, #tpu.memory_space<vmem>>, vector<8x1xf32>
    %220 = vector.extract_strided_slice %197 {offsets = [0, 3, 0], sizes = [2, 1, 256], strides = [1, 1, 1]} : vector<2x4x256xf32> to vector<2x1x256xf32>
    %221 = vector.shape_cast %219 : vector<8x1xf32> to vector<1x8x1xf32>
    %222 = vector.broadcast %221 : vector<1x8x1xf32> to vector<2x8x256xf32>
    %223 = vector.broadcast %220 : vector<2x1x256xf32> to vector<2x8x256xf32>
    %224 = arith.mulf %222, %223 : vector<2x8x256xf32>
    %225 = arith.addf %218, %224 : vector<2x8x256xf32>
    %c0_60 = arith.constant 0 : index
    %c0_61 = arith.constant 0 : index
    %c33 = arith.constant 33 : index
    %226 = vector.load %arg6[%c0_60, %c0_61, %c33] : memref<2x4x290xf32, #tpu.memory_space<vmem>>, vector<2x4x256xf32>
    %c0_62 = arith.constant 0 : index
    %c28 = arith.constant 28 : index
    %227 = vector.load %arg2[%c0_62, %c28] : memref<8x36xf32, #tpu.memory_space<vmem>>, vector<8x1xf32>
    %228 = vector.extract_strided_slice %226 {offsets = [0, 0, 0], sizes = [2, 1, 256], strides = [1, 1, 1]} : vector<2x4x256xf32> to vector<2x1x256xf32>
    %229 = vector.shape_cast %227 : vector<8x1xf32> to vector<1x8x1xf32>
    %230 = vector.broadcast %229 : vector<1x8x1xf32> to vector<2x8x256xf32>
    %231 = vector.broadcast %228 : vector<2x1x256xf32> to vector<2x8x256xf32>
    %232 = arith.mulf %230, %231 : vector<2x8x256xf32>
    %233 = arith.addf %225, %232 : vector<2x8x256xf32>
    %c0_63 = arith.constant 0 : index
    %c29 = arith.constant 29 : index
    %234 = vector.load %arg2[%c0_63, %c29] : memref<8x36xf32, #tpu.memory_space<vmem>>, vector<8x1xf32>
    %235 = vector.extract_strided_slice %226 {offsets = [0, 1, 0], sizes = [2, 1, 256], strides = [1, 1, 1]} : vector<2x4x256xf32> to vector<2x1x256xf32>
    %236 = vector.shape_cast %234 : vector<8x1xf32> to vector<1x8x1xf32>
    %237 = vector.broadcast %236 : vector<1x8x1xf32> to vector<2x8x256xf32>
    %238 = vector.broadcast %235 : vector<2x1x256xf32> to vector<2x8x256xf32>
    %239 = arith.mulf %237, %238 : vector<2x8x256xf32>
    %240 = arith.addf %233, %239 : vector<2x8x256xf32>
    %c0_64 = arith.constant 0 : index
    %c30 = arith.constant 30 : index
    %241 = vector.load %arg2[%c0_64, %c30] : memref<8x36xf32, #tpu.memory_space<vmem>>, vector<8x1xf32>
    %242 = vector.extract_strided_slice %226 {offsets = [0, 2, 0], sizes = [2, 1, 256], strides = [1, 1, 1]} : vector<2x4x256xf32> to vector<2x1x256xf32>
    %243 = vector.shape_cast %241 : vector<8x1xf32> to vector<1x8x1xf32>
    %244 = vector.broadcast %243 : vector<1x8x1xf32> to vector<2x8x256xf32>
    %245 = vector.broadcast %242 : vector<2x1x256xf32> to vector<2x8x256xf32>
    %246 = arith.mulf %244, %245 : vector<2x8x256xf32>
    %247 = arith.addf %240, %246 : vector<2x8x256xf32>
    %c0_65 = arith.constant 0 : index
    %c31 = arith.constant 31 : index
    %248 = vector.load %arg2[%c0_65, %c31] : memref<8x36xf32, #tpu.memory_space<vmem>>, vector<8x1xf32>
    %249 = vector.extract_strided_slice %226 {offsets = [0, 3, 0], sizes = [2, 1, 256], strides = [1, 1, 1]} : vector<2x4x256xf32> to vector<2x1x256xf32>
    %250 = vector.shape_cast %248 : vector<8x1xf32> to vector<1x8x1xf32>
    %251 = vector.broadcast %250 : vector<1x8x1xf32> to vector<2x8x256xf32>
    %252 = vector.broadcast %249 : vector<2x1x256xf32> to vector<2x8x256xf32>
    %253 = arith.mulf %251, %252 : vector<2x8x256xf32>
    %254 = arith.addf %247, %253 : vector<2x8x256xf32>
    %c0_66 = arith.constant 0 : index
    %c0_67 = arith.constant 0 : index
    %c34 = arith.constant 34 : index
    %255 = vector.load %arg6[%c0_66, %c0_67, %c34] : memref<2x4x290xf32, #tpu.memory_space<vmem>>, vector<2x4x256xf32>
    %256 = vector.shape_cast %6 : vector<1x256xf32> to vector<1x1x256xf32>
    %257 = vector.broadcast %256 : vector<1x1x256xf32> to vector<2x4x256xf32>
    %258 = arith.mulf %255, %257 : vector<2x4x256xf32>
    %c0_68 = arith.constant 0 : index
    %c32_69 = arith.constant 32 : index
    %259 = vector.load %arg2[%c0_68, %c32_69] : memref<8x36xf32, #tpu.memory_space<vmem>>, vector<8x1xf32>
    %260 = vector.extract_strided_slice %258 {offsets = [0, 0, 0], sizes = [2, 1, 256], strides = [1, 1, 1]} : vector<2x4x256xf32> to vector<2x1x256xf32>
    %261 = vector.shape_cast %259 : vector<8x1xf32> to vector<1x8x1xf32>
    %262 = vector.broadcast %261 : vector<1x8x1xf32> to vector<2x8x256xf32>
    %263 = vector.broadcast %260 : vector<2x1x256xf32> to vector<2x8x256xf32>
    %264 = arith.mulf %262, %263 : vector<2x8x256xf32>
    %265 = arith.addf %254, %264 : vector<2x8x256xf32>
    %c0_70 = arith.constant 0 : index
    %c33_71 = arith.constant 33 : index
    %266 = vector.load %arg2[%c0_70, %c33_71] : memref<8x36xf32, #tpu.memory_space<vmem>>, vector<8x1xf32>
    %267 = vector.extract_strided_slice %258 {offsets = [0, 1, 0], sizes = [2, 1, 256], strides = [1, 1, 1]} : vector<2x4x256xf32> to vector<2x1x256xf32>
    %268 = vector.shape_cast %266 : vector<8x1xf32> to vector<1x8x1xf32>
    %269 = vector.broadcast %268 : vector<1x8x1xf32> to vector<2x8x256xf32>
    %270 = vector.broadcast %267 : vector<2x1x256xf32> to vector<2x8x256xf32>
    %271 = arith.mulf %269, %270 : vector<2x8x256xf32>
    %272 = arith.addf %265, %271 : vector<2x8x256xf32>
    %c0_72 = arith.constant 0 : index
    %c34_73 = arith.constant 34 : index
    %273 = vector.load %arg2[%c0_72, %c34_73] : memref<8x36xf32, #tpu.memory_space<vmem>>, vector<8x1xf32>
    %274 = vector.extract_strided_slice %258 {offsets = [0, 2, 0], sizes = [2, 1, 256], strides = [1, 1, 1]} : vector<2x4x256xf32> to vector<2x1x256xf32>
    %275 = vector.shape_cast %273 : vector<8x1xf32> to vector<1x8x1xf32>
    %276 = vector.broadcast %275 : vector<1x8x1xf32> to vector<2x8x256xf32>
    %277 = vector.broadcast %274 : vector<2x1x256xf32> to vector<2x8x256xf32>
    %278 = arith.mulf %276, %277 : vector<2x8x256xf32>
    %279 = arith.addf %272, %278 : vector<2x8x256xf32>
    %c0_74 = arith.constant 0 : index
    %c35 = arith.constant 35 : index
    %280 = vector.load %arg2[%c0_74, %c35] : memref<8x36xf32, #tpu.memory_space<vmem>>, vector<8x1xf32>
    %281 = vector.extract_strided_slice %258 {offsets = [0, 3, 0], sizes = [2, 1, 256], strides = [1, 1, 1]} : vector<2x4x256xf32> to vector<2x1x256xf32>
    %282 = vector.shape_cast %280 : vector<8x1xf32> to vector<1x8x1xf32>
    %283 = vector.broadcast %282 : vector<1x8x1xf32> to vector<2x8x256xf32>
    %284 = vector.broadcast %281 : vector<2x1x256xf32> to vector<2x8x256xf32>
    %285 = arith.mulf %283, %284 : vector<2x8x256xf32>
    %286 = arith.addf %279, %285 : vector<2x8x256xf32>
    %c0_75 = arith.constant 0 : index
    %c0_76 = arith.constant 0 : index
    %287 = vector.load %arg3[%c0_75, %c0_76] : memref<8x1xf32, #tpu.memory_space<vmem>>, vector<8x1xf32>
    %288 = vector.shape_cast %287 : vector<8x1xf32> to vector<1x8x1xf32>
    %289 = vector.broadcast %288 : vector<1x8x1xf32> to vector<2x8x256xf32>
    %290 = arith.addf %286, %289 : vector<2x8x256xf32>
    %cst_77 = arith.constant 0.000000e+00 : f32
    %291 = vector.broadcast %cst_77 : f32 to vector<2x8x256xf32>
    %292 = arith.maximumf %290, %291 : vector<2x8x256xf32>
    %293 = vector.extract_strided_slice %4 {offsets = [2, 0], sizes = [1, 256], strides = [1, 1]} : vector<6x256xf32> to vector<1x256xf32>
    %294 = vector.shape_cast %293 : vector<1x256xf32> to vector<1x1x256xf32>
    %295 = vector.broadcast %294 : vector<1x1x256xf32> to vector<2x8x256xf32>
    %296 = arith.mulf %292, %295 : vector<2x8x256xf32>
    %cst_78 = arith.constant dense<0.000000e+00> : vector<2x8xf32>
    %297 = vector.multi_reduction <add>, %296, %cst_78 [2] : vector<2x8x256xf32> to vector<2x8xf32>
    %298 = vector.shape_cast %297 : vector<2x8xf32> to vector<2x8x1xf32>
    %299 = vector.extract_strided_slice %4 {offsets = [3, 0], sizes = [1, 256], strides = [1, 1]} : vector<6x256xf32> to vector<1x256xf32>
    %300 = vector.shape_cast %299 : vector<1x256xf32> to vector<1x1x256xf32>
    %301 = vector.broadcast %300 : vector<1x1x256xf32> to vector<2x8x256xf32>
    %302 = arith.mulf %292, %301 : vector<2x8x256xf32>
    %cst_79 = arith.constant dense<0.000000e+00> : vector<2x8xf32>
    %303 = vector.multi_reduction <add>, %302, %cst_79 [2] : vector<2x8x256xf32> to vector<2x8xf32>
    %304 = vector.shape_cast %303 : vector<2x8xf32> to vector<2x8x1xf32>
    %305 = vector.extract_strided_slice %4 {offsets = [4, 0], sizes = [1, 256], strides = [1, 1]} : vector<6x256xf32> to vector<1x256xf32>
    %306 = vector.shape_cast %305 : vector<1x256xf32> to vector<1x1x256xf32>
    %307 = vector.broadcast %306 : vector<1x1x256xf32> to vector<2x8x256xf32>
    %308 = arith.mulf %292, %307 : vector<2x8x256xf32>
    %cst_80 = arith.constant dense<0.000000e+00> : vector<2x8xf32>
    %309 = vector.multi_reduction <add>, %308, %cst_80 [2] : vector<2x8x256xf32> to vector<2x8xf32>
    %310 = vector.shape_cast %309 : vector<2x8xf32> to vector<2x8x1xf32>
    %311 = vector.extract_strided_slice %4 {offsets = [5, 0], sizes = [1, 256], strides = [1, 1]} : vector<6x256xf32> to vector<1x256xf32>
    %312 = vector.shape_cast %311 : vector<1x256xf32> to vector<1x1x256xf32>
    %313 = vector.broadcast %312 : vector<1x1x256xf32> to vector<2x8x256xf32>
    %314 = arith.mulf %292, %313 : vector<2x8x256xf32>
    %cst_81 = arith.constant dense<0.000000e+00> : vector<2x8xf32>
    %315 = vector.multi_reduction <add>, %314, %cst_81 [2] : vector<2x8x256xf32> to vector<2x8xf32>
    %316 = vector.shape_cast %315 : vector<2x8xf32> to vector<2x8x1xf32>
    %cst_82 = arith.constant 1.562500e-02 : f32
    %317 = vector.broadcast %cst_82 : f32 to vector<2x8x1xf32>
    %318 = arith.mulf %298, %317 : vector<2x8x1xf32>
    %cst_83 = arith.constant 1.562500e-02 : f32
    %319 = vector.broadcast %cst_83 : f32 to vector<2x8x1xf32>
    %320 = arith.mulf %310, %319 : vector<2x8x1xf32>
    %321 = arith.subf %318, %320 : vector<2x8x1xf32>
    %322 = math.absf %321 : vector<2x8x1xf32>
    %cst_84 = arith.constant 1.562500e-02 : f32
    %323 = vector.broadcast %cst_84 : f32 to vector<2x8x1xf32>
    %324 = arith.mulf %304, %323 : vector<2x8x1xf32>
    %cst_85 = arith.constant 1.562500e-02 : f32
    %325 = vector.broadcast %cst_85 : f32 to vector<2x8x1xf32>
    %326 = arith.mulf %316, %325 : vector<2x8x1xf32>
    %327 = arith.subf %324, %326 : vector<2x8x1xf32>
    %328 = math.absf %327 : vector<2x8x1xf32>
    %329 = arith.addf %322, %328 : vector<2x8x1xf32>
    %cst_86 = arith.constant dense<0.000000e+00> : vector<2x1xf32>
    %330 = vector.multi_reduction <add>, %329, %cst_86 [1] : vector<2x8x1xf32> to vector<2x1xf32>
    %331 = vector.shape_cast %330 : vector<2x1xf32> to vector<2x1x1xf32>
    %332 = vector.broadcast %331 : vector<2x1x1xf32> to vector<2x8x256xf32>
    %333 = arith.mulf %292, %332 : vector<2x8x256xf32>
    %c0_87 = arith.constant 0 : index
    %c0_88 = arith.constant 0 : index
    %c0_89 = arith.constant 0 : index
    %334 = vector.load %arg5[%c0_87, %c0_88, %c0_89] : memref<2x8x256xf32, #tpu.memory_space<vmem>>, vector<2x8x256xf32>
    tpu.vector_store %arg5[%c0_87, %c0_88, %c0_89], %333 {strides = array<i32>} : memref<2x8x256xf32, #tpu.memory_space<vmem>>, vector<2x8x256xf32>,
    return
  }
  func.func @transform_0(%arg0: i32) -> (i32, i32, i32) {
    %c0_i32 = arith.constant 0 : i32
    %c0_i32_0 = arith.constant 0 : i32
    %c0_i32_1 = arith.constant 0 : i32
    return %arg0, %c0_i32, %c0_i32_0 : i32, i32, i32
  }
  func.func @transform_1(%arg0: i32) -> (i32, i32) {
    %c0_i32 = arith.constant 0 : i32
    %c0_i32_0 = arith.constant 0 : i32
    %c0_i32_1 = arith.constant 0 : i32
    return %c0_i32, %c0_i32_0 : i32, i32
  }
  func.func @transform_2(%arg0: i32) -> (i32, i32) {
    %c0_i32 = arith.constant 0 : i32
    %c0_i32_0 = arith.constant 0 : i32
    %c0_i32_1 = arith.constant 0 : i32
    return %c0_i32, %c0_i32_0 : i32, i32
  }
  func.func @transform_3(%arg0: i32) -> (i32, i32) {
    %c0_i32 = arith.constant 0 : i32
    %c0_i32_0 = arith.constant 0 : i32
    %c0_i32_1 = arith.constant 0 : i32
    return %c0_i32, %c0_i32_0 : i32, i32
  }
  func.func @transform_4(%arg0: i32) -> (i32, i32, i32) {
    %c0_i32 = arith.constant 0 : i32
    %c0_i32_0 = arith.constant 0 : i32
    %c0_i32_1 = arith.constant 0 : i32
    return %arg0, %c0_i32, %c0_i32_0 : i32, i32, i32
  }
}

</mosaic_0001>

<bundles_post_ra>
// kernel: tpu_custom_call.1
= control target key start
LH: loop header
LB: loop body
LE: loop exit
PB: predicated region body
PF: predicated region fallthrough
CT: control target
= control target key end

     0   :  { %9 = vsyncpa [#allocation4], 0  ;;  %s5605_s0 = inlined_call_operand.hbm [shape: f32[2,4,256], index: 0, kind: input, shape index: {}]   ;;  %s5606_s1 = inlined_call_operand.hbm [shape: f32[8,36], index: 1, kind: input, shape index: {}]   ;;  %s5607_s2 = inlined_call_operand.vmem [shape: f32[8,1], index: 2, kind: input, shape index: {}]   ;;  %s5608_s3 = inlined_call_operand.vmem [shape: f32[6,256], index: 3, kind: input, shape index: {}]   ;;  %s5609_s4 = inlined_call_operand.hbm [shape: f32[2,8,256], index: 4, kind: output, shape index: {}]  }
   0x1   :  { %10 = vsyncpa [#allocation7], 0 }
   0x2   :  { %11 = vsyncpa [#allocation5], 0  ;;  %s3747_s15 = smov [#allocation3]   ;;  %s3675_s19 = scalar_lea.hbm %s5605_s0, 256 }
   0x3   :  { %s17_s16 = sshll.u32 %s3747_s15, 4  ;;  %p3676_p0 = scmp.ne.s32.totalorder %s5605_s0, %s3675_s19  ;;  %s18_s16 = int_to_ptr.vmem [resolvable:$true] %s17_s16 }
   0x4   :  { %p3679_p1 = scmp.lt.u32.totalorder %s3675_s19, %s5605_s0 }
   0x6   :  { %p3681_p2 = pnand %p3679_p1, %p3676_p0 }
   0x8   :  { %3684 = shalt.err (!%p3681_p2)
}
   0x9   :  { %s3685_s24 = scalar_lea.vmem %s18_s16, 256  ;;  %p3690_p4 = scmp.lt.s32.totalorder %s18_s16, %s18_s16 }
   0xa   :  { %p3686_p3 = scmp.ne.s32.totalorder %s18_s16, %s3685_s24  ;;  %p3691_p5 = scmp.lt.s32.totalorder %s3685_s24, %s3685_s24 }
   0xc   :  { %p3692_p6 = por %p3691_p5, %p3690_p4 }
   0xe   :  { %p3693_p7 = pnand %p3692_p6, %p3686_p3 }
  0x10   :  { %3696 = shalt.err (!%p3693_p7)
}
  0x11   :  { %s3748_s25 = smov 128   ;;  %s3749_s26 = smov 8  }
  0x12   :  { %23 = dma.hbm_to_vmem [thread:$0]  %s5605_s0, 256, %s18_s16, [#allocation4], %s3748_s25, %s3748_s25, %s3749_s26  }
  0x13   :  { %s3750_s29 = smov [#allocation6]   ;;  %s3697_s7 = scalar_lea.hbm %s5606_s1, 128 }
  0x14   :  { %s30_s30 = sshll.u32 %s3750_s29, 4  ;;  %p3698_p8 = scmp.ne.s32.totalorder %s5606_s1, %s3697_s7  ;;  %s31_s30 = int_to_ptr.vmem [resolvable:$true] %s30_s30 }
  0x15   :  { %p3701_p9 = scmp.lt.u32.totalorder %s3697_s7, %s5606_s1 }
  0x17   :  { %p3703_p10 = pnand %p3701_p9, %p3698_p8 }
  0x19   :  { %3706 = shalt.err (!%p3703_p10)
}
  0x1a   :  { %s3707_s12 = scalar_lea.vmem %s31_s30, 128  ;;  %p3712_p12 = scmp.lt.s32.totalorder %s31_s30, %s31_s30 }
  0x1b   :  { %p3708_p11 = scmp.ne.s32.totalorder %s31_s30, %s3707_s12  ;;  %p3713_p13 = scmp.lt.s32.totalorder %s3707_s12, %s3707_s12 }
  0x1d   :  { %p3714_p0 = por %p3713_p13, %p3712_p12 }
  0x1f   :  { %p3715_p1 = pnand %p3714_p0, %p3708_p11 }
  0x21   :  { %3718 = shalt.err (!%p3715_p1)
}
  0x22   :  { %33 = dma.hbm_to_vmem [thread:$0]  %s5606_s1, 128, %s31_s30, [#allocation7]  }
  0x23   :  { %3741 = dma.done.wait [#allocation4], 256  }
  0x24   :  { %3742 = vsyncadd [#allocation4], 4294967040 }
  0x25   :  { %3743 = dma.done.wait [#allocation7], 128  }
  0x26   :  { %3744 = vsyncadd [#allocation7], 4294967168  ;;  %v5610_v0 = vmov 0   ;;  %v3752_v1 = vmov 2   ;;  %vm45_vm0 = vcmask 273408   ;;  %v3753_v2 = vmov 0.0  }
  0x27   :  { %3631 = vset.pattern.permute.xlu1 %v5610_v0  ;;  %3633 = vset.pattern.permute.xlu0 %v3752_v1  ;;  %44 = vst [vmem:[#allocation2] sm:$0xff] %v3753_v2  ;;  %47 = vst [vmem:[#allocation2 + $0xc] sm:$0xff] %v3753_v2  ;;  %v3854_v3 = vld [vmem:[#allocation6] sm:$0xff]  ;;  %v49_v4 = vld [vmem:[#allocation3] sm:$0xff]  ;;  %s3754_s1 = smov 17   ;;  %v3755_v6 = vmov 1   ;;  %v78_v7 = vlaneseq }
  0x28   :  { %46 = vst.msk [vmem:[#allocation2 + $0x8] sm:$0xf] %vm45_vm0, %v3753_v2  ;;  %48 = vst.msk [vmem:[#allocation2 + $0x14] sm:$0xf] %vm45_vm0, %v3753_v2  ;;  %95 = vperm.xlu1 %3631, %v3854_v3   ;;  %53 = vrot.lane.b32.xlu0 %v49_v4, %s3754_s1  ;;  %v50_v5 = vld [vmem:[#allocation3 + $0x8] sm:$0xff]  ;;  %v3756_v8 = vmov 3  }
  0x29   :  { %v3860_v9 = vshrl.u32 %v78_v7, 7  ;;  %v3757_v10 = vmov 5   ;;  %v3758_v11 = vmov 4   ;;  %v74_v13 = vld [vmem:[%s5608_s3] sm:$0x3f]  ;;  %v3759_v15 = vmov 6  }
  0x2a   :  { %v75_v14 = vld [vmem:[%s5608_s3 + $0x8] sm:$0x3f]  ;;  %v3760_v18 = vmov 8   ;;  %v3761_v19 = vmov 7   ;;  %v3762_v21 = vmov 12   ;;  %s3763_s18 = smov 2  }
  0x2b   :  { %v3865_v12 = vsub.s32 1, %v3860_v9  ;;  %v3764_v22 = vmov 9   ;;  %v3884_v23 = vsub.s32 0, %v3860_v9  ;;  %v3765_v24 = vmov 10   ;;  %s3767_s19 = smov 16   ;;  %s3769_s20 = smov 127  }
  0x2c   :  { %3632 = vset.pattern.permute.xlu1 %v3755_v6  ;;  %55 = vrot.lane.b32.xlu0 %v50_v5, %s3754_s1  ;;  %v3766_v27 = vmov 11   ;;  %v3768_v29 = vmov 13   ;;  %vm66_vm1 = vcmask 1043592   ;;  %vm67_vm2 = vcmask 1047556   ;;  %s3770_s21 = smov 126   ;;  %s3771_s22 = smov 112  }
  0x2d   :  { %145 = vperm.xlu1 %3632, %v3854_v3   ;;  %v676_v16 = vrot.slane %v74_v13, %v3865_v12  ;;  %v680_v17 = vrot.slane %v75_v14, %v3865_v12  ;;  %v81_v25 = vrot.slane %v74_v13, %v3884_v23  ;;  %v85_v26 = vrot.slane %v75_v14, %v3884_v23  ;;  %vm68_vm5 = vmor %vm67_vm2, %vm66_vm1  ;;  %s3776_s23 = smov 111   ;;  %s3780_s24 = smov 18  }
  0x2e   :  { %vm59_vm3 = vcmask 138240   ;;  %vm70_vm4 = vcmask 134144   ;;  %v3911_v44 = vsub.s32 2, %v3860_v9  ;;  %v3922_v53 = vsub.s32 3, %v3860_v9  ;;  %s3782_s25 = smov 110   ;;  %s3790_s26 = smov 32  }
  0x2f   :  { %v3878_v20 = vcombine.low %v676_v16, %v680_v17  ;;  %v3890_v28 = vcombine.low %v81_v25, %v85_v26  ;;  %v3937_v61 = vsub.s32 4, %v3860_v9  ;;  %vm687_vm6 = vcmask 15360   ;;  %s3795_s27 = smov 34   ;;  %s3799_s28 = smov 96  }
  0x30   :  { %193 = vperm.xlu0 %3633, %v3854_v3   ;;  %vm1085_vm7 = vcmask 130048   ;;  %vm1864_vm8 = vcmask 146432   ;;  %vm378_vm9 = vcmask 1039360   ;;  %vm783_vm10 = vcmask 1031168   ;;  %s3800_s29 = smov 95   ;;  %s3801_s30 = smov 94  }
  0x31   :  { %3634 = vset.pattern.permute.xlu1 %v3756_v8  ;;  %vm1181_vm11 = vcmask 916480   ;;  %vm1566_vm12 = vcmask 908288   ;;  %vm1960_vm13 = vcmask 900096   ;;  %vm2262_vm14 = vcmask 261120  }
  0x32   :  { %241 = vperm.xlu1 %3634, %v3854_v3   ;;  %vm3041_vm15 = vcmask 277504   ;;  %vm2358_vm0 = vcmask 785408   ;;  %vm2743_vm1 = vcmask 777216   ;;  %vm3137_vm2 = vcmask 769024  }
  0x34   :  { %3636 = vset.pattern.permute.xlu0 %v3757_v10 }
  0x35   :  { %392 = vperm.xlu0 %3636, %v3854_v3  }
  0x36   :  { %3635 = vset.pattern.permute.xlu1 %v3758_v11 }
  0x37   :  { %293 = vperm.xlu1 %3635, %v3854_v3  }
  0x39   :  { %3637 = vset.pattern.permute.xlu0 %v3759_v15 }
  0x3a   :  { %486 = vperm.xlu0 %3637, %v3854_v3  }
  0x3b   :  { %3639 = vset.pattern.permute.xlu1 %v3760_v18 }
  0x3c   :  { %698 = vperm.xlu1 %3639, %v3854_v3  }
  0x3e   :  { %3638 = vset.pattern.permute.xlu0 %v3761_v19 }
  0x3f   :  { %580 = vperm.xlu0 %3638, %v3854_v3  }
  0x40   :  { %3643 = vset.pattern.permute.xlu1 %v3762_v21 }
  0x41   :  { %1096 = vperm.xlu1 %3643, %v3854_v3  }
  0x43   :  { %684 = vrot.lane.b32.xlu0 %v3878_v20, %s3763_s18 }
  0x44   :  { %3640 = vset.pattern.permute.xlu0 %v3764_v22  ;;  %v3974_v22 = vsub.s32 5, %v3860_v9 }
  0x47   :  { %797 = vperm.xlu0 %3640, %v3854_v3  }
  0x4b   :  { %3641 = vset.pattern.permute.xlu0 %v3765_v24 }
  0x4c   :  { %891 = vperm.xlu0 %3641, %v3854_v3  }
  0x50   :  { %3642 = vset.pattern.permute.xlu0 %v3766_v27 }
  0x51   :  { %985 = vperm.xlu0 %3642, %v3854_v3  }
  0x55   :  { %1082 = vrot.lane.b32.xlu0 %v3890_v28, %s3767_s19 }
  0x56   :  { %3644 = vset.pattern.permute.xlu0 %v3768_v29 }
  0x9a   :  { %v54_v30 = vpop.permute.xlu0 %53 }
  0x9b   :  { %v57_v31 = vrot.slane %v54_v30, 4 }
  0x9d   :  { %v60_v32 = vsel %vm59_vm3, %v57_v31, %v54_v30  ;;  %71 = vst.msk [vmem:[#allocation2 + $0x8] sm:$0xf] %vm70_vm4, %v57_v31 }
  0x9e   :  { %69 = vst.msk [vmem:[#allocation2] sm:$0xff] %vm68_vm5, %v60_v32  ;;  %v56_v33 = vpop.permute.xlu0 %55  ;;  %v3985_v32 = vsub.s32 6, %v3860_v9 }
  0x9f   :  { %v58_v34 = vrot.slane %v56_v33, 4 }
  0xa1   :  { %v61_v35 = vsel %vm59_vm3, %v58_v34, %v56_v33  ;;  %73 = vst.msk [vmem:[#allocation2 + $0x14] sm:$0xf] %vm70_vm4, %v58_v34 }
  0xa2   :  { %72 = vst.msk [vmem:[#allocation2 + $0xc] sm:$0xff] %vm68_vm5, %v61_v35 }
  0xa4   :  { %v3900_v39 = vld [vmem:[#allocation2 + $0x8] sm:$0xf] }
  0xa5   :  { %v311_v43 = vrot.slane %v3900_v39, %v3884_v23  ;;  %v406_v49 = vrot.slane %v3900_v39, %v3865_v12  ;;  %v500_v54 = vrot.slane %v3900_v39, %v3911_v44  ;;  %v594_v62 = vrot.slane %v3900_v39, %v3922_v53  ;;  %v3947_v4 = vld [vmem:[#allocation2] sm:$0xff] }
  0xa6   :  { %v307_v8 = vrot.slane %v3947_v4, %v3937_v61  ;;  %v303_v13 = vrot.slane %v3947_v4, %v3884_v23  ;;  %v398_v27 = vrot.slane %v3947_v4, %v3865_v12 }
  0xa7   :  { %v3894_v36 = vpop.permute.xlu1 %95  ;;  %v341_v47 = vrot.slane %v311_v43, %v3884_v23  ;;  %v436_v56 = vrot.slane %v406_v49, %v3865_v12  ;;  %v530_v1 = vrot.slane %v500_v54, %v3911_v44  ;;  %v624_v11 = vrot.slane %v594_v62, %v3922_v53 }
  0xa8   :  { %v3898_v38 = vld [vmem:[#allocation2 + $0x14] sm:$0xf]  ;;  %v337_v17 = vrot.slane %v307_v8, %v3884_v23  ;;  %v333_v18 = vrot.slane %v303_v13, %v3884_v23  ;;  %v492_v62 = vrot.slane %v3947_v4, %v3911_v44 }
  0xa9   :  { %v323_v42 = vrot.slane %v3898_v38, %v3884_v23  ;;  %v418_v48 = vrot.slane %v3898_v38, %v3865_v12  ;;  %v512_v57 = vrot.slane %v3898_v38, %v3911_v44  ;;  %v606_v2 = vrot.slane %v3898_v38, %v3922_v53  ;;  %v3963_v16 = vld [vmem:[#allocation2 + $0xc] sm:$0xff] }
  0xaa   :  { %v315_v19 = vrot.slane %v3963_v16, %v3884_v23  ;;  %v319_v21 = vrot.slane %v3963_v16, %v3937_v61  ;;  %v414_v31 = vrot.slane %v3963_v16, %v3974_v22 }
  0xab   :  { %v353_v46 = vrot.slane %v323_v42, %v3884_v23  ;;  %v448_v55 = vrot.slane %v418_v48, %v3865_v12  ;;  %v542_v63 = vrot.slane %v512_v57, %v3911_v44  ;;  %v636_v10 = vrot.slane %v606_v2, %v3922_v53 }
  0xac   :  { %v3896_v37 = vpop.permute.xlu1 %145  ;;  %v345_v29 = vrot.slane %v315_v19, %v3884_v23  ;;  %v349_v30 = vrot.slane %v319_v21, %v3884_v23  ;;  %v428_v42 = vrot.slane %v398_v27, %v3865_v12  ;;  %v444_v43 = vrot.slane %v414_v31, %v3865_v12 }
  0xad   :  { %v3998_v48 = vsub.s32 7, %v3860_v9  ;;  %v504_v21 = vrot.slane %v3963_v16, %v3911_v44 }
  0xaf   :  { %v3902_v40 = vpop.permute.xlu0 %193  ;;  %v602_v9 = vrot.slane %v3963_v16, %v3998_v48 }
  0xb1   :  { %v3904_v41 = vpop.permute.xlu1 %241 }
  0xb4   :  { %v3913_v45 = vpop.permute.xlu0 %392 }
  0xb5   :  { %v454_v59 = vmul.f32 %v448_v55, %v3913_v45  ;;  %v451_v60 = vmul.f32 %v436_v56, %v3913_v45 }
  0xb6   :  { %v294_v50 = vpop.permute.xlu1 %293 }
  0xb7   :  { %v359_v51 = vmul.f32 %v353_v46, %v294_v50  ;;  %v356_v52 = vmul.f32 %v341_v47, %v294_v50  ;;  %v355_v24 = vmul.f32 %v337_v17, %v294_v50  ;;  %v354_v25 = vmul.f32 %v333_v18, %v294_v50 }
  0xb8   :  { %v357_v34 = vmul.f32 %v345_v29, %v294_v50  ;;  %v358_v35 = vmul.f32 %v349_v30, %v294_v50  ;;  %v402_v46 = vrot.slane %v3947_v4, %v3974_v22  ;;  %v508_v47 = vrot.slane %v3963_v16, %v3985_v32 }
  0xb9   :  { %376 = vrot.lane.b32.xlu1 %v359_v51, %s3769_s20  ;;  %370 = vrot.lane.b32.xlu0 %v356_v52, %s3769_s20  ;;  %v3932_v58 = vpop.permute.xlu0 %486  ;;  %v449_v50 = vmul.f32 %v428_v42, %v3913_v45  ;;  %v453_v51 = vmul.f32 %v444_v43, %v3913_v45  ;;  %v410_v52 = vrot.slane %v3963_v16, %v3865_v12 }
  0xba   :  { %v548_v5 = vmul.f32 %v542_v63, %v3932_v58  ;;  %v545_v6 = vmul.f32 %v530_v1, %v3932_v58  ;;  %v432_v54 = vrot.slane %v402_v46, %v3865_v12  ;;  %v538_v55 = vrot.slane %v508_v47, %v3911_v44 }
  0xbb   :  { %v4027_v8 = vpop.permute.xlu1 %698  ;;  %v534_v29 = vrot.slane %v504_v21, %v3911_v44  ;;  %v586_v30 = vrot.slane %v3947_v4, %v3922_v53  ;;  %v590_v47 = vrot.slane %v3947_v4, %v3998_v48 }
  0xbc   :  { %v547_v56 = vmul.f32 %v538_v55, %v3932_v58 }
  0xbd   :  { %471 = vrot.lane.b32.xlu1 %v454_v59, %s3769_s20  ;;  %465 = vrot.lane.b32.xlu0 %v451_v60, %s3769_s20  ;;  %v440_v59 = vrot.slane %v410_v52, %v3865_v12  ;;  %v632_v60 = vrot.slane %v602_v9, %v3922_v53  ;;  %v546_v42 = vmul.f32 %v534_v29, %v3932_v58 }
  0xbe   :  { %v3951_v7 = vpop.permute.xlu0 %580  ;;  %v620_v9 = vrot.slane %v590_v47, %v3922_v53 }
  0xbf   :  { %v642_v14 = vmul.f32 %v636_v10, %v3951_v7  ;;  %v639_v15 = vmul.f32 %v624_v11, %v3951_v7  ;;  %v452_v1 = vmul.f32 %v440_v59, %v3913_v45  ;;  %v641_v2 = vmul.f32 %v632_v60, %v3951_v7 }
  0xc0   :  { %v522_v10 = vrot.slane %v492_v62, %v3911_v44  ;;  %v496_v11 = vrot.slane %v3947_v4, %v3985_v32 }
  0xc1   :  { %565 = vrot.lane.b32.xlu1 %v548_v5, %s3769_s20  ;;  %559 = vrot.lane.b32.xlu0 %v545_v6, %s3769_s20 }
  0xc2   :  { %v685_v26 = vpop.permute.xlu0 %684  ;;  %v526_v19 = vrot.slane %v496_v11, %v3911_v44 }
  0xc3   :  { %v3987_v33 = vrot.slane %v685_v26, 4 }
  0xc5   :  { %659 = vrot.lane.b32.xlu1 %v642_v14, %s3769_s20  ;;  %653 = vrot.lane.b32.xlu0 %v639_v15, %s3769_s20  ;;  %v692_v49 = vmul.f32 %v3987_v33, %v3900_v39  ;;  %v450_v39 = vmul.f32 %v432_v54, %v3913_v45  ;;  %v543_v45 = vmul.f32 %v522_v10, %v3932_v58 }
  0xc6   :  { %v4021_v63 = vpop.permute.xlu0 %797  ;;  %v688_v17 = vsel %vm687_vm6, %v3987_v33, %v685_v26 }
  0xc7   :  { %v716_v57 = vrot.slane %v692_v49, %v3884_v23  ;;  %v811_v6 = vrot.slane %v692_v49, %v3865_v12  ;;  %v905_v15 = vrot.slane %v692_v49, %v3911_v44  ;;  %v999_v31 = vrot.slane %v692_v49, %v3922_v53 }
  0xc8   :  { %v616_v49 = vrot.slane %v586_v30, %v3922_v53 }
  0xc9   :  { %368 = vrot.lane.b32.xlu1 %v355_v24, %s3769_s20  ;;  %366 = vrot.lane.b32.xlu0 %v354_v25, %s3769_s20  ;;  %v746_v5 = vrot.slane %v716_v57, %v3884_v23  ;;  %v841_v14 = vrot.slane %v811_v6, %v3865_v12  ;;  %v4047_v24 = vmul.f32 %v688_v17, %v3947_v4 }
  0xca   :  { %v544_v25 = vmul.f32 %v526_v19, %v3932_v58  ;;  %v935_v26 = vrot.slane %v905_v15, %v3911_v44  ;;  %v637_v58 = vmul.f32 %v616_v49, %v3951_v7 }
  0xcb   :  { %v761_v13 = vmul.f32 %v746_v5, %v4027_v8  ;;  %v4039_v18 = vpop.permute.xlu0 %891  ;;  %v856_v27 = vmul.f32 %v841_v14, %v4021_v63  ;;  %v708_v46 = vrot.slane %v4047_v24, %v3884_v23  ;;  %v712_v47 = vrot.slane %v4047_v24, %v3937_v61 }
  0xcc   :  { %v950_v43 = vmul.f32 %v935_v26, %v4039_v18 }
  0xcd   :  { %372 = vrot.lane.b32.xlu1 %v357_v34, %s3769_s20  ;;  %374 = vrot.lane.b32.xlu0 %v358_v35, %s3769_s20  ;;  %v4059_v34 = vmul.f32 %v688_v17, %v3963_v16  ;;  %v738_v54 = vrot.slane %v708_v46, %v3884_v23 }
  0xcf   :  { %v724_v55 = vrot.slane %v4059_v34, %v3937_v61  ;;  %v819_v60 = vrot.slane %v4059_v34, %v3974_v22 }
  0xd0   :  { %v4061_v35 = vpop.permute.xlu0 %985 }
  0xd1   :  { %461 = vrot.lane.b32.xlu1 %v449_v50, %s3769_s20  ;;  %469 = vrot.lane.b32.xlu0 %v453_v51, %s3769_s20  ;;  %v1029_v50 = vrot.slane %v999_v31, %v3922_v53  ;;  %v694_v51 = vmul.f32 %v3987_v33, %v3898_v38  ;;  %v638_v38 = vmul.f32 %v620_v9, %v3951_v7 }
  0xd2   :  { %v759_v33 = vmul.f32 %v738_v54, %v4027_v8  ;;  %v754_v57 = vrot.slane %v724_v55, %v3884_v23  ;;  %v849_v11 = vrot.slane %v819_v60, %v3865_v12  ;;  %v4140_v54 = vpop.permute.xlu1 %1096  ;;  %v742_v55 = vrot.slane %v712_v47, %v3884_v23 }
  0xd3   :  { %v1044_v52 = vmul.f32 %v1029_v50, %v4061_v35  ;;  %v728_v59 = vrot.slane %v694_v51, %v3884_v23  ;;  %v823_v5 = vrot.slane %v694_v51, %v3865_v12 }
  0xd4   :  { %v763_v6 = vmul.f32 %v754_v57, %v4027_v8  ;;  %v858_v19 = vmul.f32 %v849_v11, %v4021_v63  ;;  %v760_v57 = vmul.f32 %v742_v55, %v4027_v8  ;;  %v1081_v55 = vld [vmem:[#allocation2 + $0x14] sm:$0xf] }
  0xd5   :  { %463 = vrot.lane.b32.xlu1 %v450_v39, %s3769_s20  ;;  %563 = vrot.lane.b32.xlu0 %v547_v56, %s3769_s20  ;;  %v598_v39 = vrot.slane %v3963_v16, %v3922_v53  ;;  %v1083_v56 = vpop.permute.xlu0 %1082  ;;  %v758_v10 = vrot.slane %v728_v59, %v3884_v23  ;;  %v853_v14 = vrot.slane %v823_v5, %v3865_v12 }
  0xd6   :  { %v4091_v62 = vrot.slane %v1083_v56, 4 }
  0xd7   :  { %v764_v17 = vmul.f32 %v758_v10, %v4027_v8  ;;  %v807_v10 = vrot.slane %v4047_v24, %v3974_v22 }
  0xd9   :  { %467 = vrot.lane.b32.xlu1 %v452_v1, %s3769_s20  ;;  %657 = vrot.lane.b32.xlu0 %v641_v2, %s3769_s20  ;;  %v628_v1 = vrot.slane %v598_v39, %v3922_v53 }
  0xdb   :  { %v640_v2 = vmul.f32 %v628_v1, %v3951_v7  ;;  %v917_v7 = vrot.slane %v694_v51, %v3911_v44  ;;  %v803_v1 = vrot.slane %v4047_v24, %v3865_v12 }
  0xdd   :  { %555 = vrot.lane.b32.xlu1 %v543_v45, %s3769_s20  ;;  %775 = vrot.lane.b32.xlu0 %v761_v13, %s3770_s21  ;;  %v913_v45 = vrot.slane %v4059_v34, %v3985_v32  ;;  %v1086_v13 = vsel %vm1085_vm7, %v4091_v62, %v1083_v56  ;;  %v947_v26 = vrot.slane %v917_v7, %v3911_v44 }
  0xde   :  { %v4109_v15 = vmul.f32 %v1086_v13, %v3947_v4  ;;  %v859_v4 = vmul.f32 %v853_v14, %v4021_v63  ;;  %v4134_v49 = vmul.f32 %v1086_v13, %v3963_v16  ;;  %v720_v16 = vrot.slane %v4059_v34, %v3884_v23 }
  0xdf   :  { %v943_v21 = vrot.slane %v913_v45, %v3911_v44  ;;  %v953_v46 = vmul.f32 %v947_v26, %v4039_v18  ;;  %v837_v45 = vrot.slane %v807_v10, %v3865_v12  ;;  %v815_v13 = vrot.slane %v4059_v34, %v3865_v12 }
  0xe0   :  { %v1106_v31 = vrot.slane %v4109_v15, %v3884_v23  ;;  %v897_v7 = vrot.slane %v4047_v24, %v3911_v44 }
  0xe1   :  { %557 = vrot.lane.b32.xlu1 %v544_v25, %s3769_s20  ;;  %870 = vrot.lane.b32.xlu0 %v856_v27, %s3770_s21  ;;  %v1007_v25 = vrot.slane %v4059_v34, %v3998_v48  ;;  %v1079_v27 = vld [vmem:[#allocation2 + $0x8] sm:$0xf]  ;;  %v952_v30 = vmul.f32 %v943_v21, %v4039_v18  ;;  %v845_v14 = vrot.slane %v815_v13, %v3865_v12 }
  0xe2   :  { %v4120_v29 = vmul.f32 %v4091_v62, %v1079_v27  ;;  %v901_v21 = vrot.slane %v4047_v24, %v3985_v32 }
  0xe4   :  { %v931_v26 = vrot.slane %v901_v21, %v3911_v44 }
  0xe5   :  { %561 = vrot.lane.b32.xlu1 %v546_v42, %s3769_s20  ;;  %964 = vrot.lane.b32.xlu0 %v950_v43, %s3770_s21  ;;  %v1037_v42 = vrot.slane %v1007_v25, %v3922_v53  ;;  %v1011_v43 = vrot.slane %v694_v51, %v3922_v53  ;;  %v3772_v25 = vmov 14  }
  0xe7   :  { %v1046_v50 = vmul.f32 %v1037_v42, %v4061_v35  ;;  %v1041_v51 = vrot.slane %v1011_v43, %v3922_v53 }
  0xe9   :  { %649 = vrot.lane.b32.xlu1 %v637_v58, %s3769_s20  ;;  %1058 = vrot.lane.b32.xlu0 %v1044_v52, %s3770_s21  ;;  %v1136_v58 = vrot.slane %v1106_v31, %v3884_v23  ;;  %v1114_v52 = vrot.slane %v4120_v29, %v3884_v23  ;;  %v1047_v9 = vmul.f32 %v1041_v51, %v4061_v35 }
  0xea   :  { %v991_v31 = vrot.slane %v4047_v24, %v3922_v53 }
  0xeb   :  { %v1157_v39 = vmul.f32 %v1136_v58, %v4140_v54  ;;  %v1144_v56 = vrot.slane %v1114_v52, %v3884_v23  ;;  %v1003_v58 = vrot.slane %v4059_v34, %v3922_v53 }
  0xec   :  { %v1021_v43 = vrot.slane %v991_v31, %v3922_v53 }
  0xed   :  { %651 = vrot.lane.b32.xlu1 %v638_v38, %s3769_s20  ;;  %771 = vrot.lane.b32.xlu0 %v759_v33, %s3770_s21  ;;  %v1122_v38 = vrot.slane %v4134_v49, %v3937_v61  ;;  %v750_v33 = vrot.slane %v720_v16, %v3884_v23  ;;  %v1159_v59 = vmul.f32 %v1144_v56, %v4140_v54 }
  0xee   :  { %v1042_v47 = vmul.f32 %v1021_v43, %v4061_v35  ;;  %v1033_v51 = vrot.slane %v1003_v58, %v3922_v53  ;;  %v1205_v43 = vrot.slane %v4109_v15, %v3974_v22 }
  0xef   :  { %v1152_v60 = vrot.slane %v1122_v38, %v3884_v23 }
  0xf1   :  { %655 = vrot.lane.b32.xlu1 %v640_v2, %s3769_s20  ;;  %779 = vrot.lane.b32.xlu0 %v763_v6, %s3770_s21  ;;  %v762_v2 = vmul.f32 %v750_v33, %v4027_v8  ;;  %v1161_v5 = vmul.f32 %v1152_v60, %v4140_v54  ;;  %v833_v6 = vrot.slane %v803_v1, %v3865_v12 }
  0xf2   :  { %v855_v8 = vmul.f32 %v837_v45, %v4021_v63 }
  0xf3   :  { %v854_v11 = vmul.f32 %v833_v6, %v4021_v63 }
  0xf5   :  { %781 = vrot.lane.b32.xlu1 %v764_v17, %s3770_s21  ;;  %874 = vrot.lane.b32.xlu0 %v858_v19, %s3770_s21  ;;  %v857_v17 = vmul.f32 %v845_v14, %v4021_v63  ;;  %v927_v19 = vrot.slane %v897_v7, %v3911_v44  ;;  %v949_v63 = vmul.f32 %v931_v26, %v4039_v18 }
  0xf6   :  { %v1209_v26 = vrot.slane %v4120_v29, %v3865_v12 }
  0xf7   :  { %v948_v27 = vmul.f32 %v927_v19, %v4039_v18 }
  0xf9   :  { %876 = vrot.lane.b32.xlu1 %v859_v4, %s3770_s21  ;;  %968 = vrot.lane.b32.xlu0 %v952_v30, %s3770_s21  ;;  %v909_v4 = vrot.slane %v4059_v34, %v3911_v44  ;;  %v1118_v34 = vrot.slane %v4134_v49, %v3884_v23 }
  0xfb   :  { %v939_v30 = vrot.slane %v909_v4, %v3911_v44  ;;  %v1148_v33 = vrot.slane %v1118_v34, %v3884_v23  ;;  %v1201_v4 = vrot.slane %v4109_v15, %v3865_v12 }
  0xfd   :  { %970 = vrot.lane.b32.xlu1 %v953_v46, %s3770_s21  ;;  %1062 = vrot.lane.b32.xlu0 %v1046_v50, %s3770_s21  ;;  %v951_v42 = vmul.f32 %v939_v30, %v4039_v18  ;;  %v995_v46 = vrot.slane %v4047_v24, %v3998_v48  ;;  %v1110_v18 = vrot.slane %v4109_v15, %v3937_v61 }
  0xfe   :  { %v4212_v24 = vmul.f32 %v4091_v62, %v1081_v55  ;;  %v1239_v30 = vrot.slane %v1209_v26, %v3865_v12  ;;  %v1231_v31 = vrot.slane %v1201_v4, %v3865_v12 }
  0xff   :  { %v1025_v50 = vrot.slane %v995_v46, %v3922_v53 }
 0x100   :  { %v1126_v62 = vrot.slane %v4212_v24, %v3884_v23 }
 0x101   :  { %1064 = vrot.lane.b32.xlu1 %v1047_v9, %s3770_s21  ;;  %1169 = vrot.lane.b32.xlu0 %v1157_v39, %s3771_s22  ;;  %v1043_v52 = vmul.f32 %v1025_v50, %v4061_v35  ;;  %v1045_v9 = vmul.f32 %v1033_v51, %v4061_v35  ;;  %v1140_v39 = vrot.slane %v1110_v18, %v3884_v23 }
 0x102   :  { %v1160_v35 = vmul.f32 %v1148_v33, %v4140_v54  ;;  %v1213_v18 = vrot.slane %v4134_v49, %v3865_v12 }
 0x103   :  { %v1158_v38 = vmul.f32 %v1140_v39, %v4140_v54  ;;  %v1221_v39 = vrot.slane %v4212_v24, %v3865_v12 }
 0x105   :  { %773 = vrot.lane.b32.xlu1 %v760_v57, %s3770_s21  ;;  %1173 = vrot.lane.b32.xlu0 %v1159_v59, %s3771_s22  ;;  %v1156_v59 = vrot.slane %v1126_v62, %v3884_v23  ;;  %v3773_v62 = vmov 15  }
 0x107   :  { %v1162_v1 = vmul.f32 %v1156_v59, %v4140_v54  ;;  %v1303_v59 = vrot.slane %v4120_v29, %v3911_v44 }
 0x109   :  { %777 = vrot.lane.b32.xlu1 %v762_v2, %s3770_s21  ;;  %1177 = vrot.lane.b32.xlu0 %v1161_v5, %s3771_s22  ;;  %v1333_v4 = vrot.slane %v1303_v59, %v3911_v44  ;;  %v1397_v59 = vrot.slane %v4120_v29, %v3922_v53 }
 0x10d   :  { %866 = vrot.lane.b32.xlu1 %v854_v11, %s3770_s21  ;;  %1195 = vperm.xlu0 %3644, %v3854_v3  }
 0x111   :  { %868 = vrot.lane.b32.xlu1 %v855_v8, %s3770_s21  ;;  %3645 = vset.pattern.permute.xlu0 %v3772_v25 }
 0x115   :  { %872 = vrot.lane.b32.xlu1 %v857_v17, %s3770_s21 }
 0x119   :  { %960 = vrot.lane.b32.xlu1 %v948_v27, %s3770_s21 }
 0x11d   :  { %962 = vrot.lane.b32.xlu1 %v949_v63, %s3770_s21 }
 0x121   :  { %966 = vrot.lane.b32.xlu1 %v951_v42, %s3770_s21  ;;  %v1217_v42 = vrot.slane %v4134_v49, %v3974_v22 }
 0x123   :  { %v1247_v58 = vrot.slane %v1217_v42, %v3865_v12  ;;  %v1299_v42 = vrot.slane %v4109_v15, %v3985_v32 }
 0x125   :  { %1054 = vrot.lane.b32.xlu1 %v1042_v47, %s3770_s21 }
 0x129   :  { %1056 = vrot.lane.b32.xlu1 %v1043_v52, %s3770_s21  ;;  %v1235_v52 = vrot.slane %v1205_v43, %v3865_v12 }
 0x12b   :  { %v4214_v16 = vpop.permute.xlu0 %370 }
 0x12d   :  { %1060 = vrot.lane.b32.xlu1 %v1045_v9, %s3770_s21  ;;  %v1243_v9 = vrot.slane %v1213_v18, %v3865_v12 }
 0x12f   :  { %v4221_v56 = vpop.permute.xlu0 %465 }
 0x131   :  { %1171 = vrot.lane.b32.xlu1 %v1158_v38, %s3771_s22  ;;  %v1251_v38 = vrot.slane %v1221_v39, %v3865_v12 }
 0x133   :  { %v4228_v57 = vpop.permute.xlu0 %559 }
 0x135   :  { %1175 = vrot.lane.b32.xlu1 %v1160_v35, %s3771_s22 }
 0x137   :  { %v4233_v60 = vpop.permute.xlu0 %653 }
 0x139   :  { %1179 = vrot.lane.b32.xlu1 %v1162_v1, %s3771_s22  ;;  %v1295_v1 = vrot.slane %v4109_v15, %v3911_v44 }
 0x13b   :  { %v4237_v2 = vpop.permute.xlu0 %366 }
 0x13c   :  { %5647 = vst [vmem:[#allocation12_spill] sm:$0xff] %v4237_v2 }
 0x13f   :  { %v4239_v5 = vpop.permute.xlu0 %374 }
 0x140   :  { %5648 = vst [vmem:[#allocation13_spill] sm:$0xff] %v4239_v5 }
 0x143   :  { %v4241_v6 = vpop.permute.xlu0 %469 }
 0x144   :  { %5649 = vst [vmem:[#allocation14_spill] sm:$0xff] %v4241_v6 }
 0x147   :  { %v4243_v10 = vpop.permute.xlu0 %563 }
 0x148   :  { %5650 = vst [vmem:[#allocation15_spill] sm:$0xff] %v4243_v10 }
 0x14b   :  { %v4245_v11 = vpop.permute.xlu0 %657 }
 0x14c   :  { %5651 = vst [vmem:[#allocation16_spill] sm:$0xff] %v4245_v11 }
 0x14f   :  { %v4247_v45 = vpop.permute.xlu0 %775 }
 0x153   :  { %v4249_v13 = vpop.permute.xlu0 %870 }
 0x157   :  { %v4251_v8 = vpop.permute.xlu0 %964 }
 0x15b   :  { %v4253_v14 = vpop.permute.xlu0 %1058 }
 0x15f   :  { %v4255_v54 = vpop.permute.xlu0 %771 }
 0x160   :  { %5652 = vst [vmem:[#allocation17_spill] sm:$0xff] %v4255_v54 }
 0x163   :  { %v4257_v7 = vpop.permute.xlu0 %779 }
 0x164   :  { %5653 = vst [vmem:[#allocation18_spill] sm:$0xff] %v4257_v7 }
 0x167   :  { %v4259_v17 = vpop.permute.xlu0 %874 }
 0x168   :  { %5654 = vst [vmem:[#allocation19_spill] sm:$0xff] %v4259_v17 }
 0x16b   :  { %v4261_v19 = vpop.permute.xlu0 %968 }
 0x16c   :  { %5655 = vst [vmem:[#allocation20_spill] sm:$0xff] %v4261_v19 }
 0x16f   :  { %v4263_v21 = vpop.permute.xlu0 %1062 }
 0x170   :  { %5656 = vst [vmem:[#allocation21_spill] sm:$0xff] %v4263_v21 }
 0x173   :  { %v4265_v25 = vpop.permute.xlu0 %1169 }
 0x174   :  { %5657 = vst [vmem:[#allocation22_spill] sm:$0xff] %v4265_v25 }
 0x177   :  { %v4267_v27 = vpop.permute.xlu0 %1173 }
 0x17b   :  { %v4273_v63 = vpop.permute.xlu0 %1177 }
 0x17c   :  { %5658 = vst [vmem:[#allocation23_spill] sm:$0xff] %v4273_v63 }
 0x18c   :  { %v1196_v46 = vpop.permute.xlu0 %1195 }
 0x18d   :  { %v1254_v47 = vmul.f32 %v1239_v30, %v1196_v46  ;;  %v1252_v50 = vmul.f32 %v1231_v31, %v1196_v46  ;;  %v1256_v51 = vmul.f32 %v1247_v58, %v1196_v46  ;;  %v1253_v55 = vmul.f32 %v1235_v52, %v1196_v46 }
 0x18e   :  { %v1255_v34 = vmul.f32 %v1243_v9, %v1196_v46  ;;  %v1257_v33 = vmul.f32 %v1251_v38, %v1196_v46  ;;  %v1325_v30 = vrot.slane %v1295_v1, %v3911_v44  ;;  %v1311_v31 = vrot.slane %v4134_v49, %v3985_v32 }
 0x18f   :  { %1268 = vrot.lane.b32.xlu0 %v1254_v47, %s3771_s22  ;;  %1264 = vrot.lane.b32.xlu1 %v1252_v50, %s3771_s22  ;;  %v1329_v58 = vrot.slane %v1299_v42, %v3911_v44  ;;  %v1307_v52 = vrot.slane %v4134_v49, %v3911_v44  ;;  %v1315_v9 = vrot.slane %v4212_v24, %v3911_v44 }
 0x190   :  { %v1341_v50 = vrot.slane %v1311_v31, %v3911_v44  ;;  %v1389_v1 = vrot.slane %v4109_v15, %v3922_v53  ;;  %v1405_v42 = vrot.slane %v4134_v49, %v3998_v48 }
 0x192   :  { %v1419_v31 = vrot.slane %v1389_v1, %v3922_v53  ;;  %v1435_v29 = vrot.slane %v1405_v42, %v3922_v53 }
 0x193   :  { %1272 = vrot.lane.b32.xlu0 %v1256_v51, %s3771_s22  ;;  %1266 = vrot.lane.b32.xlu1 %v1253_v55, %s3771_s22  ;;  %v1337_v55 = vrot.slane %v1307_v52, %v3911_v44  ;;  %v1401_v52 = vrot.slane %v4134_v49, %v3922_v53  ;;  %v3775_v49 = vmov 17  }
 0x197   :  { %1289 = vperm.xlu0 %3645, %v3854_v3   ;;  %1270 = vrot.lane.b32.xlu1 %v1255_v34, %s3771_s22  ;;  %v1345_v34 = vrot.slane %v1315_v9, %v3911_v44 }
 0x19b   :  { %1274 = vrot.lane.b32.xlu1 %v1257_v33, %s3771_s22  ;;  %3646 = vset.pattern.permute.xlu0 %v3773_v62  ;;  %v3774_v33 = vmov 16  }
 0x201   :  { %v4296_v35 = vpop.permute.xlu0 %1268 }
 0x205   :  { %v4302_v26 = vpop.permute.xlu0 %1272 }
 0x206   :  { %5659 = vst [vmem:[#allocation24_spill] sm:$0xff] %v4302_v26 }
 0x216   :  { %v1290_v43 = vpop.permute.xlu0 %1289 }
 0x217   :  { %v1348_v46 = vmul.f32 %v1333_v4, %v1290_v43  ;;  %v1346_v47 = vmul.f32 %v1325_v30, %v1290_v43  ;;  %v1350_v18 = vmul.f32 %v1341_v50, %v1290_v43  ;;  %v1347_v51 = vmul.f32 %v1329_v58, %v1290_v43 }
 0x218   :  { %v1349_v39 = vmul.f32 %v1337_v55, %v1290_v43  ;;  %v1351_v38 = vmul.f32 %v1345_v34, %v1290_v43  ;;  %v1427_v30 = vrot.slane %v1397_v59, %v3922_v53  ;;  %v1393_v43 = vrot.slane %v4109_v15, %v3998_v48  ;;  %v4358_v59 = vld [vmem:[#allocation2] sm:$0xff] }
 0x219   :  { %1362 = vrot.lane.b32.xlu0 %v1348_v46, %s3771_s22  ;;  %1358 = vrot.lane.b32.xlu1 %v1346_v47, %s3771_s22  ;;  %v1431_v15 = vrot.slane %v1401_v52, %v3922_v53  ;;  %v1409_v55 = vrot.slane %v4212_v24, %v3922_v53  ;;  %5661 = vst [vmem:[#allocation26_spill] sm:$0xff] %v4358_v59 }
 0x21a   :  { %v1423_v58 = vrot.slane %v1393_v43, %v3922_v53  ;;  %v1491_v1 = vrot.slane %v4358_v59, %v3884_v23 }
 0x21c   :  { %v1521_v43 = vrot.slane %v1491_v1, %v3884_v23 }
 0x21d   :  { %1366 = vrot.lane.b32.xlu0 %v1350_v18, %s3771_s22  ;;  %1360 = vrot.lane.b32.xlu1 %v1347_v51, %s3771_s22 }
 0x221   :  { %1383 = vperm.xlu0 %3646, %v3854_v3   ;;  %1364 = vrot.lane.b32.xlu1 %v1349_v39, %s3771_s22  ;;  %v1439_v39 = vrot.slane %v1409_v55, %v3922_v53 }
 0x225   :  { %1368 = vrot.lane.b32.xlu1 %v1351_v38, %s3771_s22  ;;  %3647 = vset.pattern.permute.xlu0 %v3774_v33  ;;  %v4356_v33 = vld [vmem:[#allocation2 + $0x8] sm:$0xf] }
 0x226   :  { %v1499_v24 = vrot.slane %v4356_v33, %v3884_v23 }
 0x228   :  { %v1529_v42 = vrot.slane %v1499_v24, %v3884_v23 }
 0x28b   :  { %v4325_v62 = vpop.permute.xlu0 %1362 }
 0x28f   :  { %v4331_v4 = vpop.permute.xlu0 %1366 }
 0x290   :  { %5660 = vst [vmem:[#allocation25_spill] sm:$0xff] %v4331_v4 }
 0x2a0   :  { %v1384_v46 = vpop.permute.xlu0 %1383 }
 0x2a1   :  { %v1442_v47 = vmul.f32 %v1427_v30, %v1384_v46  ;;  %v1440_v50 = vmul.f32 %v1419_v31, %v1384_v46  ;;  %v1444_v18 = vmul.f32 %v1435_v29, %v1384_v46  ;;  %v1441_v51 = vmul.f32 %v1423_v58, %v1384_v46  ;;  %v4366_v31 = vld [vmem:[#allocation2 + $0xc] sm:$0xff] }
 0x2a2   :  { %v1443_v9 = vmul.f32 %v1431_v15, %v1384_v46  ;;  %v1445_v34 = vmul.f32 %v1439_v39, %v1384_v46  ;;  %5663 = vst [vmem:[#allocation28_spill] sm:$0xff] %v4366_v31  ;;  %v1507_v46 = vrot.slane %v4366_v31, %v3937_v61  ;;  %v4382_v15 = vld [vmem:[#allocation2 + $0x14] sm:$0xf] }
 0x2a3   :  { %1456 = vrot.lane.b32.xlu0 %v1442_v47, %s3771_s22  ;;  %1452 = vrot.lane.b32.xlu1 %v1440_v50, %s3771_s22  ;;  %v1495_v47 = vrot.slane %v4358_v59, %v3937_v61 }
 0x2a4   :  { %v1537_v52 = vrot.slane %v1507_v46, %v3884_v23  ;;  %v1594_v46 = vrot.slane %v4356_v33, %v3865_v12 }
 0x2a7   :  { %1460 = vrot.lane.b32.xlu0 %v1444_v18, %s3771_s22  ;;  %1454 = vrot.lane.b32.xlu1 %v1441_v51, %s3771_s22  ;;  %v4378_v18 = vrot.slane %v1495_v47, %v3884_v23  ;;  %v1503_v51 = vrot.slane %v4366_v31, %v3884_v23  ;;  %v1586_v47 = vrot.slane %v4358_v59, %v3865_v12 }
 0x2a9   :  { %5664 = vst [vmem:[#allocation29_spill] sm:$0xff] %v4378_v18  ;;  %v4388_v39 = vrot.slane %v1503_v51, %v3884_v23  ;;  %v1602_v51 = vrot.slane %v4366_v31, %v3974_v22 }
 0x2ab   :  { %1481 = vperm.xlu0 %3647, %v3854_v3   ;;  %1458 = vrot.lane.b32.xlu1 %v1443_v9, %s3771_s22  ;;  %5665 = vst [vmem:[#allocation30_spill] sm:$0xff] %v4388_v39 }
 0x2af   :  { %1462 = vrot.lane.b32.xlu1 %v1445_v34, %s3771_s22  ;;  %3648 = vset.pattern.permute.xlu0 %v3775_v49  ;;  %v1511_v34 = vrot.slane %v4382_v15, %v3884_v23 }
 0x2b1   :  { %v1541_v24 = vrot.slane %v1511_v34, %v3884_v23 }
 0x315   :  { %v4354_v38 = vpop.permute.xlu0 %1456 }
 0x319   :  { %v4364_v30 = vpop.permute.xlu0 %1460 }
 0x31a   :  { %5662 = vst [vmem:[#allocation27_spill] sm:$0xff] %v4364_v30  ;;  %v1684_v30 = vrot.slane %v4358_v59, %v3985_v32 }
 0x32a   :  { %v1482_v50 = vpop.permute.xlu0 %1481 }
 0x32b   :  { %v1544_v29 = vmul.f32 %v1529_v42, %v1482_v50  ;;  %v1542_v58 = vmul.f32 %v1521_v43, %v1482_v50  ;;  %v1546_v55 = vmul.f32 %v1537_v52, %v1482_v50  ;;  %v1543_v9 = vmul.f32 %v4378_v18, %v1482_v50 }
 0x32c   :  { %v1545_v49 = vmul.f32 %v4388_v39, %v1482_v50  ;;  %v1547_v1 = vmul.f32 %v1541_v24, %v1482_v50  ;;  %v3777_v42 = vmov 18   ;;  %v1624_v52 = vrot.slane %v1594_v46, %v3865_v12 }
 0x32d   :  { %1558 = vrot.lane.b32.xlu0 %v1544_v29, %s3776_s23  ;;  %1554 = vrot.lane.b32.xlu1 %v1542_v58, %s3776_s23  ;;  %v4405_v58 = vpop.permute.xlu1 %376  ;;  %v4409_v50 = vrot.slane %v1586_v47, %v3865_v12  ;;  %v1598_v46 = vrot.slane %v4366_v31, %v3865_v12 }
 0x32e   :  { %5667 = vst [vmem:[#allocation32_spill] sm:$0xff] %v4405_v58 }
 0x32f   :  { %5668 = vst [vmem:[#allocation33_spill] sm:$0xff] %v4409_v50 }
 0x331   :  { %1562 = vrot.lane.b32.xlu0 %v1546_v55, %s3776_s23  ;;  %1556 = vrot.lane.b32.xlu1 %v1543_v9, %s3776_s23  ;;  %v1590_v55 = vrot.slane %v4358_v59, %v3974_v22  ;;  %v4416_v24 = vpop.permute.xlu1 %471 }
 0x332   :  { %5669 = vst [vmem:[#allocation34_spill] sm:$0xff] %v4416_v24 }
 0x335   :  { %1580 = vperm.xlu0 %3648, %v3854_v3   ;;  %1560 = vrot.lane.b32.xlu1 %v1545_v49, %s3776_s23 }
 0x339   :  { %1564 = vrot.lane.b32.xlu1 %v1547_v1, %s3776_s23  ;;  %3649 = vset.pattern.permute.xlu0 %v3777_v42  ;;  %v1632_v1 = vrot.slane %v1602_v51, %v3865_v12  ;;  %v4422_v42 = vrot.slane %v1590_v55, %v3865_v12  ;;  %v4434_v51 = vpop.permute.xlu1 %565 }
 0x33a   :  { %5672 = vst [vmem:[#allocation37_spill] sm:$0xff] %v4434_v51 }
 0x33b   :  { %5670 = vst [vmem:[#allocation35_spill] sm:$0xff] %v4422_v42 }
 0x39f   :  { %v4397_v43 = vpop.permute.xlu0 %1558 }
 0x3a3   :  { %v4403_v29 = vpop.permute.xlu0 %1562 }
 0x3a4   :  { %5666 = vst [vmem:[#allocation31_spill] sm:$0xff] %v4403_v29  ;;  %v1696_v29 = vrot.slane %v4366_v31, %v3985_v32 }
 0x3b4   :  { %v1581_v9 = vpop.permute.xlu0 %1580 }
 0x3b5   :  { %v1639_v34 = vmul.f32 %v1624_v52, %v1581_v9  ;;  %v1637_v49 = vmul.f32 %v4409_v50, %v1581_v9  ;;  %v1641_v47 = vmul.f32 %v1632_v1, %v1581_v9  ;;  %v1638_v0 = vmul.f32 %v4422_v42, %v1581_v9 }
 0x3b6   :  { %v4430_v52 = vrot.slane %v1598_v46, %v3865_v12 }
 0x3b7   :  { %1653 = vrot.lane.b32.xlu0 %v1639_v34, %s3776_s23  ;;  %1649 = vrot.lane.b32.xlu1 %v1637_v49, %s3776_s23  ;;  %v1606_v34 = vrot.slane %v4382_v15, %v3865_v12 }
 0x3b8   :  { %5671 = vst [vmem:[#allocation36_spill] sm:$0xff] %v4430_v52  ;;  %v1640_v55 = vmul.f32 %v4430_v52, %v1581_v9 }
 0x3b9   :  { %v1636_v49 = vrot.slane %v1606_v34, %v3865_v12 }
 0x3bb   :  { %1657 = vrot.lane.b32.xlu0 %v1641_v47, %s3776_s23  ;;  %1651 = vrot.lane.b32.xlu1 %v1638_v0, %s3776_s23  ;;  %v1642_v1 = vmul.f32 %v1636_v49, %v1581_v9  ;;  %v4440_v47 = vpop.permute.xlu1 %659  ;;  %v3778_v0 = vmov 19   ;;  %v1688_v49 = vrot.slane %v4356_v33, %v3911_v44 }
 0x3bc   :  { %5673 = vst [vmem:[#allocation38_spill] sm:$0xff] %v4440_v47 }
 0x3bd   :  { %v1718_v39 = vrot.slane %v1688_v49, %v3911_v44  ;;  %v4479_v49 = vrot.slane %v1696_v29, %v3911_v44  ;;  %v3668_v29 = vld [vmem:[#allocation6] sm:$0xff] }
 0x3bf   :  { %1674 = vperm.xlu0 %3649, %v3854_v3   ;;  %1655 = vrot.lane.b32.xlu1 %v1640_v55, %s3776_s23  ;;  %v4443_v46 = vpop.permute.xlu1 %368  ;;  %5681 = vst [vmem:[#allocation46_spill] sm:$0xff] %v4479_v49 }
 0x3c3   :  { %1659 = vrot.lane.b32.xlu1 %v1642_v1, %s3776_s23  ;;  %3650 = vset.pattern.permute.xlu0 %v3778_v0  ;;  %v4445_v50 = vpop.permute.xlu1 %372  ;;  %v1680_v1 = vrot.slane %v4358_v59, %v3911_v44 }
 0x3c4   :  { %5674 = vst [vmem:[#allocation39_spill] sm:$0xff] %v4445_v50 }
 0x3c5   :  { %v4467_v18 = vrot.slane %v1680_v1, %v3911_v44  ;;  %v4482_v1 = vrot.slane %v1684_v30, %v3911_v44 }
 0x3c7   :  { %v4447_v42 = vpop.permute.xlu1 %461  ;;  %5679 = vst [vmem:[#allocation44_spill] sm:$0xff] %v4467_v18  ;;  %5682 = vst [vmem:[#allocation47_spill] sm:$0xff] %v4482_v1 }
 0x3c8   :  { %5675 = vst [vmem:[#allocation40_spill] sm:$0xff] %v4447_v42 }
 0x3cb   :  { %v4449_v52 = vpop.permute.xlu1 %463 }
 0x3cf   :  { %v4451_v3 = vpop.permute.xlu1 %467 }
 0x3d0   :  { %5676 = vst [vmem:[#allocation41_spill] sm:$0xff] %v4451_v3 }
 0x3d3   :  { %v4453_v55 = vpop.permute.xlu1 %555 }
 0x3d4   :  { %5677 = vst [vmem:[#allocation42_spill] sm:$0xff] %v4453_v55 }
 0x3d7   :  { %v4457_v9 = vpop.permute.xlu1 %557 }
 0x3db   :  { %v4473_v4 = vpop.permute.xlu1 %561 }
 0x3dc   :  { %5680 = vst [vmem:[#allocation45_spill] sm:$0xff] %v4473_v4 }
 0x429   :  { %v4455_v34 = vpop.permute.xlu0 %1653 }
 0x42d   :  { %v4463_v0 = vpop.permute.xlu0 %1657 }
 0x42e   :  { %5678 = vst [vmem:[#allocation43_spill] sm:$0xff] %v4463_v0  ;;  %v1692_v0 = vrot.slane %v4366_v31, %v3911_v44 }
 0x43e   :  { %v1675_v26 = vpop.permute.xlu0 %1674 }
 0x43f   :  { %v1733_v63 = vmul.f32 %v1718_v39, %v1675_v26  ;;  %v1731_v25 = vmul.f32 %v4467_v18, %v1675_v26  ;;  %v1735_v21 = vmul.f32 %v4479_v49, %v1675_v26  ;;  %v1732_v19 = vmul.f32 %v4482_v1, %v1675_v26  ;;  %v4488_v39 = vpop.permute.xlu1 %649 }
 0x440   :  { %5683 = vst [vmem:[#allocation48_spill] sm:$0xff] %v4488_v39 }
 0x441   :  { %1747 = vrot.lane.b32.xlu0 %v1733_v63, %s3776_s23  ;;  %1743 = vrot.lane.b32.xlu1 %v1731_v25, %s3776_s23  ;;  %v4493_v25 = vrot.slane %v1692_v0, %v3911_v44  ;;  %v1700_v63 = vrot.slane %v4382_v15, %v3911_v44  ;;  %v3779_v0 = vmov 20  }
 0x442   :  { %3651 = vset.pattern.permute.xlu1 %v3779_v0 }
 0x443   :  { %5684 = vst [vmem:[#allocation49_spill] sm:$0xff] %v4493_v25  ;;  %v1734_v30 = vmul.f32 %v4493_v25, %v1675_v26  ;;  %v1730_v49 = vrot.slane %v1700_v63, %v3911_v44  ;;  %v4500_v18 = vpop.permute.xlu1 %651 }
 0x445   :  { %1751 = vrot.lane.b32.xlu0 %v1735_v21, %s3776_s23  ;;  %1745 = vrot.lane.b32.xlu1 %v1732_v19, %s3776_s23  ;;  %v1736_v1 = vmul.f32 %v1730_v49, %v1675_v26 }
 0x447   :  { %v4503_v19 = vpop.permute.xlu1 %655 }
 0x448   :  { %5685 = vst [vmem:[#allocation50_spill] sm:$0xff] %v4503_v19 }
 0x449   :  { %1768 = vperm.xlu0 %3650, %v3668_v29   ;;  %1749 = vrot.lane.b32.xlu1 %v1734_v30, %s3776_s23 }
 0x44b   :  { %v4505_v21 = vpop.permute.xlu1 %781 }
 0x44c   :  { %5686 = vst [vmem:[#allocation51_spill] sm:$0xff] %v4505_v21 }
 0x44d   :  { %1753 = vrot.lane.b32.xlu1 %v1736_v1, %s3776_s23 }
 0x44f   :  { %v4507_v17 = vpop.permute.xlu1 %876 }
 0x450   :  { %5687 = vst [vmem:[#allocation52_spill] sm:$0xff] %v4507_v17 }
 0x453   :  { %v4509_v25 = vpop.permute.xlu1 %970 }
 0x454   :  { %5688 = vst [vmem:[#allocation53_spill] sm:$0xff] %v4509_v25 }
 0x457   :  { %v4511_v29 = vpop.permute.xlu1 %1064 }
 0x458   :  { %5689 = vst [vmem:[#allocation54_spill] sm:$0xff] %v4511_v29 }
 0x45b   :  { %v4513_v30 = vpop.permute.xlu1 %773 }
 0x45f   :  { %v4515_v63 = vpop.permute.xlu1 %777 }
 0x460   :  { %5690 = vst [vmem:[#allocation55_spill] sm:$0xff] %v4515_v63 }
 0x463   :  { %v4517_v54 = vpop.permute.xlu1 %866 }
 0x464   :  { %5691 = vst [vmem:[#allocation56_spill] sm:$0xff] %v4517_v54 }
 0x467   :  { %v4519_v26 = vpop.permute.xlu1 %868 }
 0x46b   :  { %v4521_v49 = vpop.permute.xlu1 %872 }
 0x46c   :  { %5692 = vst [vmem:[#allocation57_spill] sm:$0xff] %v4521_v49 }
 0x46f   :  { %v4523_v1 = vpop.permute.xlu1 %960 }
 0x470   :  { %5693 = vst [vmem:[#allocation58_spill] sm:$0xff] %v4523_v1  ;;  %v1782_v1 = vrot.slane %v4356_v33, %v3922_v53 }
 0x473   :  { %v4525_v7 = vpop.permute.xlu1 %962 }
 0x477   :  { %v4527_v0 = vpop.permute.xlu1 %966 }
 0x478   :  { %5694 = vst [vmem:[#allocation59_spill] sm:$0xff] %v4527_v0 }
 0x47b   :  { %v4529_v17 = vpop.permute.xlu1 %1054 }
 0x47c   :  { %5695 = vst [vmem:[#allocation60_spill] sm:$0xff] %v4529_v17  ;;  %v1774_v17 = vrot.slane %v4358_v59, %v3922_v53 }
 0x47f   :  { %v4531_v25 = vpop.permute.xlu1 %1056 }
 0x483   :  { %v4533_v29 = vpop.permute.xlu1 %1060 }
 0x484   :  { %5696 = vst [vmem:[#allocation61_spill] sm:$0xff] %v4533_v29  ;;  %v1812_v29 = vrot.slane %v1782_v1, %v3922_v53  ;;  %v1786_v1 = vrot.slane %v4366_v31, %v3922_v53 }
 0x487   :  { %v4535_v21 = vpop.permute.xlu1 %1171 }
 0x48b   :  { %v4537_v63 = vpop.permute.xlu1 %1175 }
 0x48c   :  { %5697 = vst [vmem:[#allocation62_spill] sm:$0xff] %v4537_v63  ;;  %v4555_v63 = vrot.slane %v1774_v17, %v3922_v53 }
 0x48e   :  { %5701 = vst [vmem:[#allocation66_spill] sm:$0xff] %v4555_v63 }
 0x48f   :  { %v4539_v54 = vpop.permute.xlu1 %1179 }
 0x490   :  { %5698 = vst [vmem:[#allocation63_spill] sm:$0xff] %v4539_v54  ;;  %v1790_v54 = vrot.slane %v4366_v31, %v3998_v48 }
 0x493   :  { %v4543_v49 = vpop.permute.xlu1 %1264 }
 0x494   :  { %5699 = vst [vmem:[#allocation64_spill] sm:$0xff] %v4543_v49  ;;  %v1778_v49 = vrot.slane %v4358_v59, %v3998_v48 }
 0x496   :  { %v4568_v17 = vrot.slane %v1778_v49, %v3922_v53 }
 0x497   :  { %v4551_v39 = vpop.permute.xlu1 %1266 }
 0x498   :  { %5703 = vst [vmem:[#allocation68_spill] sm:$0xff] %v4568_v17 }
 0x49b   :  { %v4572_v47 = vpop.permute.xlu1 %1270 }
 0x49c   :  { %5704 = vst [vmem:[#allocation69_spill] sm:$0xff] %v4572_v47 }
 0x49f   :  { %v4584_v49 = vpop.permute.xlu1 %1274 }
 0x4a0   :  { %5706 = vst [vmem:[#allocation71_spill] sm:$0xff] %v4584_v49 }
 0x4b3   :  { %v4541_v19 = vpop.permute.xlu0 %1747 }
 0x4b7   :  { %v4549_v0 = vpop.permute.xlu0 %1751 }
 0x4b8   :  { %5700 = vst [vmem:[#allocation65_spill] sm:$0xff] %v4549_v0  ;;  %v4565_v0 = vrot.slane %v1790_v54, %v3922_v53  ;;  %v1794_v54 = vrot.slane %v4382_v15, %v3922_v53 }
 0x4ba   :  { %5702 = vst [vmem:[#allocation67_spill] sm:$0xff] %v4565_v0 }
 0x4c8   :  { %v1769_v4 = vpop.permute.xlu0 %1768 }
 0x4c9   :  { %v1827_v55 = vmul.f32 %v1812_v29, %v1769_v4  ;;  %v1825_v11 = vmul.f32 %v4555_v63, %v1769_v4  ;;  %v1829_v3 = vmul.f32 %v4565_v0, %v1769_v4  ;;  %v1826_v29 = vmul.f32 %v4568_v17, %v1769_v4  ;;  %v4589_v63 = vpop.permute.xlu1 %1358 }
 0x4ca   :  { %v1824_v0 = vrot.slane %v1794_v54, %v3922_v53  ;;  %5707 = vst [vmem:[#allocation72_spill] sm:$0xff] %v4589_v63  ;;  %v3781_v17 = vmov 21  }
 0x4cb   :  { %1841 = vrot.lane.b32.xlu0 %v1827_v55, %s3776_s23  ;;  %1837 = vrot.lane.b32.xlu1 %v1825_v11, %s3776_s23  ;;  %v4579_v11 = vrot.slane %v1786_v1, %v3922_v53  ;;  %v4592_v1 = vld [vmem:[#allocation6] sm:$0xff] }
 0x4cc   :  { %3652 = vset.pattern.permute.xlu0 %v3781_v17 }
 0x4cd   :  { %5705 = vst [vmem:[#allocation70_spill] sm:$0xff] %v4579_v11  ;;  %v1828_v55 = vmul.f32 %v4579_v11, %v1769_v4 }
 0x4cf   :  { %1845 = vrot.lane.b32.xlu0 %v1829_v3, %s3776_s23  ;;  %1839 = vrot.lane.b32.xlu1 %v1826_v29, %s3776_s23  ;;  %v1830_v3 = vmul.f32 %v1824_v0, %v1769_v4  ;;  %v4595_v29 = vpop.permute.xlu1 %1360 }
 0x4d3   :  { %1861 = vrot.lane.b32.xlu0 %v3878_v20, %s3780_s24  ;;  %1843 = vrot.lane.b32.xlu1 %v1828_v55, %s3776_s23  ;;  %v4597_v11 = vpop.permute.xlu1 %1364 }
 0x4d4   :  { %5708 = vst [vmem:[#allocation73_spill] sm:$0xff] %v4597_v11 }
 0x4d7   :  { %1847 = vrot.lane.b32.xlu1 %v1830_v3, %s3776_s23  ;;  %v4599_v49 = vpop.permute.xlu1 %1368 }
 0x4d8   :  { %5709 = vst [vmem:[#allocation74_spill] sm:$0xff] %v4599_v49 }
 0x4db   :  { %1875 = vperm.xlu1 %3651, %v4592_v1   ;;  %v4601_v55 = vpop.permute.xlu1 %1452 }
 0x4dc   :  { %5710 = vst [vmem:[#allocation75_spill] sm:$0xff] %v4601_v55 }
 0x4df   :  { %v4603_v54 = vpop.permute.xlu1 %1454 }
 0x4e3   :  { %v4605_v4 = vpop.permute.xlu1 %1458 }
 0x4e4   :  { %5711 = vst [vmem:[#allocation76_spill] sm:$0xff] %v4605_v4 }
 0x4e7   :  { %v4607_v0 = vpop.permute.xlu1 %1462 }
 0x4e8   :  { %5712 = vst [vmem:[#allocation77_spill] sm:$0xff] %v4607_v0 }
 0x4eb   :  { %v4609_v3 = vpop.permute.xlu1 %1554 }
 0x4ec   :  { %5713 = vst [vmem:[#allocation78_spill] sm:$0xff] %v4609_v3 }
 0x4ef   :  { %v4611_v63 = vpop.permute.xlu1 %1556 }
 0x4f3   :  { %v4613_v47 = vpop.permute.xlu1 %1560 }
 0x4f4   :  { %5714 = vst [vmem:[#allocation79_spill] sm:$0xff] %v4613_v47 }
 0x4f7   :  { %v4615_v10 = vpop.permute.xlu1 %1564 }
 0x4f8   :  { %5715 = vst [vmem:[#allocation80_spill] sm:$0xff] %v4615_v10 }
 0x4fb   :  { %v4617_v11 = vpop.permute.xlu1 %1649 }
 0x4fc   :  { %5716 = vst [vmem:[#allocation81_spill] sm:$0xff] %v4617_v11 }
 0x4ff   :  { %v4619_v17 = vpop.permute.xlu1 %1651 }
 0x503   :  { %v4621_v49 = vpop.permute.xlu1 %1655 }
 0x504   :  { %5717 = vst [vmem:[#allocation82_spill] sm:$0xff] %v4621_v49 }
 0x507   :  { %v4623_v55 = vpop.permute.xlu1 %1659 }
 0x508   :  { %5718 = vst [vmem:[#allocation83_spill] sm:$0xff] %v4623_v55 }
 0x50b   :  { %v4625_v51 = vpop.permute.xlu1 %1743 }
 0x50c   :  { %5719 = vst [vmem:[#allocation84_spill] sm:$0xff] %v4625_v51 }
 0x50f   :  { %v4627_v4 = vpop.permute.xlu1 %1745 }
 0x513   :  { %v4629_v0 = vpop.permute.xlu1 %1749 }
 0x514   :  { %5720 = vst [vmem:[#allocation85_spill] sm:$0xff] %v4629_v0 }
 0x517   :  { %v4633_v42 = vpop.permute.xlu1 %1753 }
 0x518   :  { %5721 = vst [vmem:[#allocation86_spill] sm:$0xff] %v4633_v42 }
 0x53d   :  { %v4631_v3 = vpop.permute.xlu0 %1841  ;;  %v4637_v10 = vpop.permute.xlu1 %1837 }
 0x53e   :  { %5723 = vst [vmem:[#allocation88_spill] sm:$0xff] %v4637_v10 }
 0x541   :  { %v4635_v47 = vpop.permute.xlu0 %1845  ;;  %v4639_v6 = vpop.permute.xlu1 %1839 }
 0x542   :  { %5722 = vst [vmem:[#allocation87_spill] sm:$0xff] %v4635_v47  ;;  %5724 = vst [vmem:[#allocation89_spill] sm:$0xff] %v4639_v6 }
 0x545   :  { %v1862_v11 = vpop.permute.xlu0 %1861  ;;  %v4641_v24 = vpop.permute.xlu1 %1843 }
 0x546   :  { %v1863_v49 = vrot.slane %v1862_v11, 4  ;;  %5725 = vst [vmem:[#allocation90_spill] sm:$0xff] %v4641_v24 }
 0x548   :  { %v1865_v55 = vsel %vm1864_vm8, %v1863_v49, %v1862_v11  ;;  %v4647_v0 = vmul.f32 %v1863_v49, %v4356_v33  ;;  %v4659_v11 = vmul.f32 %v1863_v49, %v4382_v15 }
 0x549   :  { %v4644_v51 = vmul.f32 %v1865_v55, %v4358_v59  ;;  %v4650_v42 = vmul.f32 %v1865_v55, %v4366_v31  ;;  %v4656_v50 = vpop.permute.xlu1 %1847 }
 0x54a   :  { %5726 = vst [vmem:[#allocation91_spill] sm:$0xff] %v4656_v50  ;;  %v1893_v55 = vrot.slane %v4647_v0, %v3884_v23  ;;  %v1905_v59 = vrot.slane %v4659_v11, %v3884_v23 }
 0x54b   :  { %v1889_v10 = vrot.slane %v4644_v51, %v3937_v61  ;;  %v1885_v47 = vrot.slane %v4644_v51, %v3884_v23  ;;  %v1897_v33 = vrot.slane %v4650_v42, %v3884_v23 }
 0x54c   :  { %v1923_v15 = vrot.slane %v1893_v55, %v3884_v23 }
 0x54d   :  { %v1919_v24 = vrot.slane %v1889_v10, %v3884_v23  ;;  %v1915_v2 = vrot.slane %v1885_v47, %v3884_v23  ;;  %v1927_v10 = vrot.slane %v1897_v33, %v3884_v23  ;;  %v1901_v47 = vrot.slane %v4650_v42, %v3937_v61 }
 0x55a   :  { %v1876_v31 = vpop.permute.xlu1 %1875 }
 0x55b   :  { %v1937_v5 = vmul.f32 %v1919_v24, %v1876_v31  ;;  %v1936_v58 = vmul.f32 %v1915_v2, %v1876_v31  ;;  %v1939_v49 = vmul.f32 %v1927_v10, %v1876_v31  ;;  %v1938_v50 = vmul.f32 %v1923_v15, %v1876_v31 }
 0x55c   :  { %v1935_v2 = vrot.slane %v1905_v59, %v3884_v23  ;;  %v1931_v24 = vrot.slane %v1901_v47, %v3884_v23  ;;  %v1980_v59 = vrot.slane %v4644_v51, %v3865_v12  ;;  %v1996_v15 = vrot.slane %v4650_v42, %v3974_v22 }
 0x55d   :  { %1950 = vrot.lane.b32.xlu1 %v1937_v5, %s3782_s25  ;;  %1948 = vrot.lane.b32.xlu0 %v1936_v58, %s3782_s25  ;;  %v3783_v58 = vmov 22   ;;  %v1984_v47 = vrot.slane %v4644_v51, %v3974_v22 }
 0x55e   :  { %v1941_v5 = vmul.f32 %v1935_v2, %v1876_v31  ;;  %v1940_v6 = vmul.f32 %v1931_v24, %v1876_v31 }
 0x561   :  { %1954 = vrot.lane.b32.xlu1 %v1939_v49, %s3782_s25  ;;  %1952 = vrot.lane.b32.xlu0 %v1938_v50, %s3782_s25  ;;  %v1988_v50 = vrot.slane %v4647_v0, %v3865_v12 }
 0x563   :  { %v2018_v31 = vrot.slane %v1988_v50, %v3865_v12  ;;  %v1992_v50 = vrot.slane %v4650_v42, %v3865_v12 }
 0x565   :  { %1958 = vrot.lane.b32.xlu1 %v1941_v5, %s3782_s25  ;;  %1956 = vrot.lane.b32.xlu0 %v1940_v6, %s3782_s25  ;;  %v2010_v6 = vrot.slane %v1980_v59, %v3865_v12  ;;  %v2026_v5 = vrot.slane %v1996_v15, %v3865_v12 }
 0x569   :  { %1974 = vperm.xlu0 %3652, %v4592_v1  }
 0x56d   :  { %3653 = vset.pattern.permute.xlu0 %v3783_v58  ;;  %v2014_v58 = vrot.slane %v1984_v47, %v3865_v12 }
 0x5cf   :  { %v4682_v33 = vpop.permute.xlu0 %1948 }
 0x5d0   :  { %5727 = vst [vmem:[#allocation92_spill] sm:$0xff] %v4682_v33 }
 0x5d3   :  { %v4684_v55 = vpop.permute.xlu0 %1952 }
 0x5d7   :  { %v4690_v10 = vpop.permute.xlu0 %1956 }
 0x5d8   :  { %5728 = vst [vmem:[#allocation93_spill] sm:$0xff] %v4690_v10 }
 0x5e8   :  { %v1975_v49 = vpop.permute.xlu0 %1974 }
 0x5e9   :  { %v2033_v2 = vmul.f32 %v2018_v31, %v1975_v49  ;;  %v2031_v24 = vmul.f32 %v2010_v6, %v1975_v49  ;;  %v2035_v59 = vmul.f32 %v2026_v5, %v1975_v49  ;;  %v2032_v33 = vmul.f32 %v2014_v58, %v1975_v49 }
 0x5ea   :  { %v2022_v31 = vrot.slane %v1992_v50, %v3865_v12  ;;  %v2000_v6 = vrot.slane %v4659_v11, %v3865_v12  ;;  %v3786_v5 = vmov 24   ;;  %v3787_v58 = vmov 28  }
 0x5eb   :  { %2047 = vrot.lane.b32.xlu0 %v2033_v2, %s3782_s25  ;;  %2043 = vrot.lane.b32.xlu1 %v2031_v24, %s3782_s25  ;;  %v3784_v24 = vmov 23   ;;  %v3788_v50 = vmov 31  }
 0x5ec   :  { %v2034_v2 = vmul.f32 %v2022_v31, %v1975_v49  ;;  %v2030_v15 = vrot.slane %v2000_v6, %v3865_v12  ;;  %3655 = vset.pattern.permute.xlu1 %v3786_v5  ;;  %v2082_v6 = vrot.slane %v4647_v0, %v3911_v44  ;;  %v2078_v5 = vrot.slane %v4644_v51, %v3985_v32 }
 0x5ee   :  { %v2036_v47 = vmul.f32 %v2030_v15, %v1975_v49  ;;  %v3789_v49 = vmov 33  }
 0x5ef   :  { %2051 = vrot.lane.b32.xlu0 %v2035_v59, %s3782_s25  ;;  %2045 = vrot.lane.b32.xlu1 %v2032_v33, %s3782_s25  ;;  %v3785_v33 = vmov 25   ;;  %v5729_v59 = vmov 0  }
 0x5f3   :  { %2068 = vperm.xlu0 %3653, %v4592_v1   ;;  %2049 = vrot.lane.b32.xlu1 %v2034_v2, %s3782_s25  ;;  %v2074_v2 = vrot.slane %v4644_v51, %v3911_v44 }
 0x5f7   :  { %3654 = vset.pattern.permute.xlu0 %v3784_v24  ;;  %2053 = vrot.lane.b32.xlu1 %v2036_v47, %s3782_s25  ;;  %v2112_v47 = vrot.slane %v2082_v6, %v3911_v44  ;;  %v2104_v24 = vrot.slane %v2074_v2, %v3911_v44  ;;  %v2168_v6 = vrot.slane %v4644_v51, %v3922_v53 }
 0x5f8   :  { %2162 = vperm.xlu0 %3654, %v4592_v1  }
 0x5fc   :  { %3656 = vset.pattern.permute.xlu0 %v3785_v33  ;;  %v2090_v33 = vrot.slane %v4650_v42, %v3985_v32 }
 0x5fd   :  { %2372 = vperm.xlu0 %3656, %v4592_v1  }
 0x601   :  { %3659 = vset.pattern.permute.xlu0 %v3787_v58 }
 0x602   :  { %2658 = vperm.xlu0 %3659, %v4592_v1  }
 0x606   :  { %3662 = vset.pattern.permute.xlu0 %v3788_v50 }
 0x607   :  { %2945 = vperm.xlu0 %3662, %v4592_v1  }
 0x60b   :  { %3664 = vset.pattern.permute.xlu0 %v3789_v49 }
 0x60c   :  { %3151 = vperm.xlu0 %3664, %v4592_v1  }
 0x610   :  { %3667 = vset.pattern.permute.xlu0 %v5729_v59  ;;  %v2120_v59 = vrot.slane %v2090_v33, %v3911_v44 }
 0x65d   :  { %v4719_v31 = vpop.permute.xlu0 %2047 }
 0x65e   :  { %5730 = vst [vmem:[#allocation94_spill] sm:$0xff] %v4719_v31 }
 0x661   :  { %v4725_v15 = vpop.permute.xlu0 %2051 }
 0x662   :  { %5731 = vst [vmem:[#allocation95_spill] sm:$0xff] %v4725_v15  ;;  %v2108_v15 = vrot.slane %v2078_v5, %v3911_v44  ;;  %v2184_v5 = vrot.slane %v4650_v42, %v3998_v48 }
 0x672   :  { %v2069_v58 = vpop.permute.xlu0 %2068 }
 0x673   :  { %v2127_v50 = vmul.f32 %v2112_v47, %v2069_v58  ;;  %v2125_v49 = vmul.f32 %v2104_v24, %v2069_v58  ;;  %v2129_v2 = vmul.f32 %v2120_v59, %v2069_v58  ;;  %v2126_v10 = vmul.f32 %v2108_v15, %v2069_v58 }
 0x674   :  { %v2198_v47 = vrot.slane %v2168_v6, %v3922_v53  ;;  %v2176_v24 = vrot.slane %v4647_v0, %v3922_v53  ;;  %v2214_v0 = vrot.slane %v2184_v5, %v3922_v53  ;;  %v3792_v59 = vmov 27  }
 0x675   :  { %2141 = vrot.lane.b32.xlu0 %v2127_v50, %s3782_s25  ;;  %2137 = vrot.lane.b32.xlu1 %v2125_v49, %s3782_s25  ;;  %v3791_v49 = vmov 26   ;;  %v3793_v6 = vmov 29  }
 0x676   :  { %v2206_v15 = vrot.slane %v2176_v24, %v3922_v53  ;;  %v3797_v24 = vmov 34  }
 0x677   :  { %v4739_v31 = vpop.permute.xlu0 %2162 }
 0x678   :  { %v2219_v33 = vmul.f32 %v2198_v47, %v4739_v31  ;;  %v2221_v50 = vmul.f32 %v2206_v15, %v4739_v31  ;;  %v3796_v47 = vmov 32   ;;  %v3798_v15 = vmov 35  }
 0x679   :  { %2145 = vrot.lane.b32.xlu0 %v2129_v2, %s3782_s25  ;;  %2139 = vrot.lane.b32.xlu1 %v2126_v10, %s3782_s25  ;;  %v2223_v10 = vmul.f32 %v2214_v0, %v4739_v31  ;;  %v3794_v2 = vmov 30  }
 0x67d   :  { %2231 = vrot.lane.b32.xlu0 %v2219_v33, %s3782_s25  ;;  %2259 = vrot.lane.b32.xlu1 %v3890_v28, %s3790_s26  ;;  %v2086_v33 = vrot.slane %v4650_v42, %v3911_v44 }
 0x67f   :  { %v2116_v5 = vrot.slane %v2086_v33, %v3911_v44  ;;  %v2188_v33 = vrot.slane %v4659_v11, %v3922_v53 }
 0x681   :  { %2235 = vrot.lane.b32.xlu0 %v2221_v50, %s3782_s25  ;;  %2273 = vperm.xlu1 %3655, %v4592_v1   ;;  %v2128_v50 = vmul.f32 %v2116_v5, %v2069_v58 }
 0x685   :  { %2239 = vrot.lane.b32.xlu0 %v2223_v10, %s3782_s25  ;;  %3657 = vset.pattern.permute.xlu1 %v3791_v49  ;;  %v2172_v10 = vrot.slane %v4644_v51, %v3998_v48 }
 0x686   :  { %2466 = vperm.xlu1 %3657, %v4592_v1  }
 0x68a   :  { %3658 = vset.pattern.permute.xlu1 %v3792_v59  ;;  %v3669_v59 = vld [vmem:[#allocation2] sm:$0xff] }
 0x68b   :  { %2560 = vperm.xlu1 %3658, %v4592_v1  }
 0x68f   :  { %3660 = vset.pattern.permute.xlu1 %v3793_v6  ;;  %v4776_v6 = vmul.f32 %v3669_v59, %v3890_v28 }
 0x690   :  { %2757 = vperm.xlu1 %3660, %v4592_v1  }
 0x691   :  { %v155_v51 = vrot.slane %v4776_v6, %v3974_v22  ;;  %v251_v59 = vrot.slane %v4776_v6, %v3998_v48 }
 0x694   :  { %3661 = vset.pattern.permute.xlu1 %v3794_v2  ;;  %v2180_v2 = vrot.slane %v4650_v42, %v3922_v53  ;;  %v175_v42 = vrot.slane %v155_v51, %v3865_v12 }
 0x695   :  { %2851 = vperm.xlu1 %3661, %v4592_v1  }
 0x699   :  { %3038 = vrot.lane.b32.xlu1 %v3878_v20, %s3795_s27  ;;  %v2094_v20 = vrot.slane %v4659_v11, %v3911_v44 }
 0x69a   :  { %3663 = vset.pattern.permute.xlu1 %v3796_v47 }
 0x69b   :  { %v2124_v0 = vrot.slane %v2094_v20, %v3911_v44  ;;  %v2218_v20 = vrot.slane %v2188_v33, %v3922_v53 }
 0x69d   :  { %3052 = vperm.xlu1 %3663, %v4592_v1   ;;  %v2130_v49 = vmul.f32 %v2124_v0, %v2069_v58  ;;  %v2210_v58 = vrot.slane %v2180_v2, %v3922_v53  ;;  %v2224_v0 = vmul.f32 %v2218_v20, %v4739_v31  ;;  %v568_v20 = vsel %vm378_vm9, %v4457_v9, %v4228_v57 }
 0x6a1   :  { %3665 = vset.pattern.permute.xlu1 %v3797_v24  ;;  %v107_v24 = vrot.slane %v4776_v6, %v3937_v61 }
 0x6a2   :  { %3245 = vperm.xlu1 %3665, %v4592_v1  }
 0x6a3   :  { %v127_v5 = vrot.slane %v107_v24, %v3884_v23  ;;  %v4807_v24 = vpop.permute.xlu1 %1950 }
 0x6a6   :  { %3666 = vset.pattern.permute.xlu1 %v3798_v15  ;;  %v2222_v15 = vmul.f32 %v2210_v58, %v4739_v31  ;;  %v380_v58 = vsel %vm378_vm9, %v4443_v46, %v4214_v16 }
 0x6a7   :  { %3339 = vperm.xlu1 %3666, %v4592_v1   ;;  %v2202_v1 = vrot.slane %v2172_v10, %v3922_v53  ;;  %v137_v10 = vmul.f32 %v127_v5, %v3894_v36  ;;  %v474_v5 = vsel %vm378_vm9, %v4449_v52, %v4221_v56  ;;  %v879_v56 = vsel %vm783_vm10, %v4519_v26, %v4249_v13 }
 0x6a8   :  { %v1183_v13 = vsel %vm1181_vm11, %v4535_v21, %v4267_v27  ;;  %v1465_v27 = vsel %vm1181_vm11, %v4603_v54, %v4354_v38 }
 0x6a9   :  { %v2220_v47 = vmul.f32 %v2202_v1, %v4739_v31 }
 0x6ab   :  { %2143 = vrot.lane.b32.xlu1 %v2128_v50, %s3782_s25  ;;  %v203_v50 = vrot.slane %v4776_v6, %v3985_v32 }
 0x6ad   :  { %v223_v11 = vrot.slane %v203_v50, %v3911_v44 }
 0x6af   :  { %2147 = vrot.lane.b32.xlu1 %v2130_v49, %s3782_s25  ;;  %v185_v49 = vmul.f32 %v175_v42, %v3896_v37  ;;  %v233_v2 = vmul.f32 %v223_v11, %v3902_v40 }
 0x6b1   :  { %v189_v1 = vadd.f32 %v185_v49, %v137_v10  ;;  %v785_v49 = vsel %vm783_vm10, %v4513_v30, %v4247_v45  ;;  %v4840_v45 = vpop.permute.xlu0 %2372 }
 0x6b3   :  { %2233 = vrot.lane.b32.xlu1 %v2220_v47, %s3782_s25  ;;  %v271_v47 = vrot.slane %v251_v59, %v3922_v53  ;;  %v237_v51 = vadd.f32 %v233_v2, %v189_v1  ;;  %v1067_v2 = vsel %vm783_vm10, %v4531_v25, %v4253_v14 }
 0x6b5   :  { %v281_v31 = vmul.f32 %v271_v47, %v3904_v41 }
 0x6b7   :  { %2237 = vrot.lane.b32.xlu1 %v2222_v15, %s3782_s25  ;;  %v285_v33 = vadd.f32 %v281_v31, %v237_v51  ;;  %v4813_v15 = vpop.permute.xlu1 %1954 }
 0x6b9   :  { %v388_v42 = vadd.f32 %v380_v58, %v285_v33  ;;  %v1371_v33 = vsel %vm1181_vm11, %v4595_v29, %v4325_v62  ;;  %v1662_v62 = vsel %vm1566_vm12, %v4619_v17, %v4455_v34 }
 0x6bb   :  { %2241 = vrot.lane.b32.xlu1 %v2224_v0, %s3782_s25  ;;  %v482_v50 = vadd.f32 %v474_v5, %v388_v42  ;;  %v662_v0 = vsel %vm378_vm9, %v4500_v18, %v4233_v60  ;;  %v4824_v16 = vpop.permute.xlu1 %1958  ;;  %v973_v60 = vsel %vm783_vm10, %v4525_v7, %v4251_v8  ;;  %v1277_v8 = vsel %vm1181_vm11, %v4551_v39, %v4296_v35  ;;  %v4853_v5 = vpop.permute.xlu0 %2658 }
 0x6bc   :  { %v1568_v35 = vsel %vm1566_vm12, %v4611_v63, %v4397_v43  ;;  %v5733_v43 = vld [vmem:[#allocation89_spill] sm:$0xff] }
 0x6bd   :  { %v576_v10 = vadd.f32 %v568_v20, %v482_v50 }
 0x6bf   :  { %v670_v11 = vadd.f32 %v662_v0, %v576_v10  ;;  %v4832_v57 = vpop.permute.xlu1 %2043  ;;  %v4866_v10 = vpop.permute.xlu0 %2945 }
 0x6c0   :  { %5732 = vst [vmem:[#allocation96_spill] sm:$0xff] %v4866_v10 }
 0x6c1   :  { %v793_v59 = vadd.f32 %v785_v49, %v670_v11  ;;  %v1756_v49 = vsel %vm1566_vm12, %v4627_v4, %v4541_v19 }
 0x6c3   :  { %v887_v1 = vadd.f32 %v879_v56, %v793_v59  ;;  %v4845_v51 = vpop.permute.xlu1 %2045  ;;  %v3670_v56 = vld [vmem:[#allocation2 + $0xc] sm:$0xff]  ;;  %v4877_v34 = vpop.permute.xlu0 %3151 }
 0x6c4   :  { %v91_v59 = vmul.f32 %v3670_v56, %v3890_v28  ;;  %5734 = vst [vmem:[#allocation89_spill] sm:$0xff] %v4877_v34  ;;  %v5735_v28 = vld [vmem:[#allocation94_spill] sm:$0xff] }
 0x6c5   :  { %v981_v47 = vadd.f32 %v973_v60, %v887_v1  ;;  %v1850_v60 = vsel %vm1566_vm12, %v5733_v43, %v4631_v3 }
 0x6c6   :  { %v111_v3 = vrot.slane %v91_v59, %v3884_v23 }
 0x6c7   :  { %v1075_v31 = vadd.f32 %v1067_v2, %v981_v47  ;;  %v4858_v20 = vpop.permute.xlu1 %2049  ;;  %v1962_v2 = vsel %vm1960_vm13, %v4807_v24, %v4684_v55  ;;  %v151_v55 = vrot.slane %v4776_v6, %v3865_v12 }
 0x6c9   :  { %v1191_v58 = vadd.f32 %v1183_v13, %v1075_v31  ;;  %v115_v13 = vrot.slane %v91_v59, %v3937_v61  ;;  %v163_v31 = vrot.slane %v91_v59, %v3974_v22 }
 0x6cb   :  { %v1285_v14 = vadd.f32 %v1277_v8, %v1191_v58  ;;  %v4871_v11 = vpop.permute.xlu1 %2053  ;;  %v2056_v8 = vsel %vm1960_vm13, %v4845_v51, %v5735_v28  ;;  %v159_v58 = vrot.slane %v91_v59, %v3865_v12 }
 0x6cd   :  { %v1379_v42 = vadd.f32 %v1371_v33, %v1285_v14  ;;  %v103_v14 = vrot.slane %v4776_v6, %v3884_v23  ;;  %v179_v56 = vrot.slane %v159_v58, %v3865_v12 }
 0x6cf   :  { %v1473_v50 = vadd.f32 %v1465_v27, %v1379_v42 }
 0x6d1   :  { %v1576_v0 = vadd.f32 %v1568_v35, %v1473_v50  ;;  %v135_v50 = vrot.slane %v115_v13, %v3884_v23  ;;  %v199_v13 = vrot.slane %v4776_v6, %v3911_v44 }
 0x6d3   :  { %v1670_v38 = vadd.f32 %v1662_v62, %v1576_v0  ;;  %v183_v62 = vrot.slane %v163_v31, %v3865_v12  ;;  %v211_v0 = vrot.slane %v91_v59, %v3985_v32  ;;  %v139_v28 = vmul.f32 %v135_v50, %v3894_v36 }
 0x6d4   :  { %v219_v50 = vrot.slane %v199_v13, %v3911_v44 }
 0x6d5   :  { %v1764_v1 = vadd.f32 %v1756_v49, %v1670_v38  ;;  %v131_v38 = vrot.slane %v111_v3, %v3884_v23  ;;  %v231_v3 = vrot.slane %v211_v0, %v3911_v44 }
 0x6d7   :  { %v1858_v47 = vadd.f32 %v1850_v60, %v1764_v1  ;;  %v207_v60 = vrot.slane %v91_v59, %v3911_v44  ;;  %v138_v58 = vmul.f32 %v131_v38, %v3894_v36  ;;  %v235_v0 = vmul.f32 %v231_v3, %v3902_v40 }
 0x6d8   :  { %v247_v38 = vrot.slane %v4776_v6, %v3922_v53 }
 0x6d9   :  { %v1970_v33 = vadd.f32 %v1962_v2, %v1858_v47  ;;  %v123_v2 = vrot.slane %v103_v14, %v3884_v23  ;;  %v171_v47 = vrot.slane %v151_v55, %v3865_v12 }
 0x6db   :  { %v2064_v27 = vadd.f32 %v2056_v8, %v1970_v33  ;;  %v187_v8 = vmul.f32 %v183_v62, %v3896_v37  ;;  %v136_v14 = vmul.f32 %v123_v2, %v3894_v36  ;;  %v184_v55 = vmul.f32 %v171_v47, %v3896_v37  ;;  %v5737_v47 = vld [vmem:[#allocation26_spill] sm:$0xff] }
 0x6dc   :  { %v255_v62 = vrot.slane %v91_v59, %v3922_v53  ;;  %v232_v36 = vmul.f32 %v219_v50, %v3902_v40 }
 0x6dd   :  { %v191_v34 = vadd.f32 %v187_v8, %v139_v28  ;;  %v188_v2 = vadd.f32 %v184_v55, %v136_v14  ;;  %v267_v28 = vrot.slane %v247_v38, %v3922_v53  ;;  %v5740_v55 = vld [vmem:[#allocation28_spill] sm:$0xff] }
 0x6df   :  { %v239_v13 = vadd.f32 %v235_v0, %v191_v34  ;;  %v280_v3 = vmul.f32 %v267_v28, %v3904_v41  ;;  %v5741_v0 = vld [vmem:[#allocation12_spill] sm:$0xff] }
 0x6e0   :  { %v379_v38 = vsel %vm378_vm9, %v5741_v0, %v4443_v46 }
 0x6e7   :  { %v4882_v19 = vpop.permute.xlu1 %2137  ;;  %v2142_v42 = vpop.permute.xlu0 %2141 }
 0x6eb   :  { %v4895_v35 = vpop.permute.xlu1 %2139 }
 0x6ec   :  { %v2150_v49 = vsel %vm1960_vm13, %v4895_v35, %v2142_v42  ;;  %v227_v42 = vrot.slane %v207_v60, %v3911_v44 }
 0x6ed   :  { %v4905_v1 = vadd.f32 %v2150_v49, %v2064_v27  ;;  %v186_v27 = vmul.f32 %v179_v56, %v3896_v37  ;;  %v259_v49 = vrot.slane %v91_v59, %v3998_v48  ;;  %v275_v59 = vrot.slane %v255_v62, %v3922_v53 }
 0x6ee   :  { %v234_v60 = vmul.f32 %v227_v42, %v3902_v40  ;;  %v2256_v42 = vld [vmem:[#allocation2 + $0x8] sm:$0xf] }
 0x6ef   :  { %5736 = vst [vmem:[#allocation94_spill] sm:$0xff] %v4905_v1  ;;  %v2260_v31 = vpop.permute.xlu1 %2259  ;;  %v190_v10 = vadd.f32 %v186_v27, %v138_v58  ;;  %v279_v37 = vrot.slane %v259_v49, %v3922_v53  ;;  %v5738_v58 = vld [vmem:[#allocation32_spill] sm:$0xff]  ;;  %v5739_v27 = vld [vmem:[#allocation13_spill] sm:$0xff]  ;;  %v282_v50 = vmul.f32 %v275_v59, %v3904_v41 }
 0x6f0   :  { %v2261_v33 = vrot.slane %v2260_v31, 4  ;;  %v382_v40 = vsel %vm378_vm9, %v5739_v27, %v5738_v58 }
 0x6f1   :  { %v238_v8 = vadd.f32 %v234_v60, %v190_v10  ;;  %v283_v6 = vmul.f32 %v279_v37, %v3904_v41  ;;  %v5742_v60 = vld [vmem:[#allocation39_spill] sm:$0xff]  ;;  %v5743_v37 = vld [vmem:[#allocation34_spill] sm:$0xff] }
 0x6f2   :  { %v2263_v56 = vsel %vm2262_vm14, %v2261_v33, %v2260_v31  ;;  %v236_v31 = vadd.f32 %v232_v36, %v188_v2  ;;  %v4938_v14 = vmul.f32 %v2261_v33, %v2256_v42  ;;  %v381_v36 = vsel %vm378_vm9, %v5742_v60, %v5739_v27  ;;  %v5745_v60 = vld [vmem:[#allocation40_spill] sm:$0xff] }
 0x6f3   :  { %v4929_v1 = vmul.f32 %v2263_v56, %v5737_v47  ;;  %v4941_v49 = vmul.f32 %v2263_v56, %v5740_v55  ;;  %v287_v62 = vadd.f32 %v283_v6, %v239_v13  ;;  %v5744_v56 = vld [vmem:[#allocation14_spill] sm:$0xff]  ;;  %v2258_v47 = vld [vmem:[#allocation2 + $0x14] sm:$0xf]  ;;  %v286_v58 = vadd.f32 %v282_v50, %v238_v8 }
 0x6f4   :  { %v476_v2 = vsel %vm378_vm9, %v5744_v56, %v5743_v37  ;;  %v284_v28 = vadd.f32 %v280_v3, %v236_v31  ;;  %v4957_v55 = vmul.f32 %v2261_v33, %v2258_v47  ;;  %v2291_v59 = vrot.slane %v4938_v14, %v3884_v23  ;;  %v5746_v33 = vld [vmem:[#allocation37_spill] sm:$0xff]  ;;  %v5747_v3 = vld [vmem:[#allocation15_spill] sm:$0xff]  ;;  %v5749_v37 = vld [vmem:[#allocation38_spill] sm:$0xff] }
 0x6f5   :  { %v2287_v34 = vrot.slane %v4929_v1, %v3937_v61  ;;  %v2283_v10 = vrot.slane %v4929_v1, %v3884_v23  ;;  %v390_v42 = vadd.f32 %v382_v40, %v287_v62  ;;  %v2295_v46 = vrot.slane %v4941_v49, %v3884_v23  ;;  %v5750_v47 = vld [vmem:[#allocation16_spill] sm:$0xff] }
 0x6f6   :  { %v387_v6 = vadd.f32 %v379_v38, %v284_v28  ;;  %v389_v27 = vadd.f32 %v381_v36, %v286_v58  ;;  %v473_v8 = vsel %vm378_vm9, %v5745_v60, %v4449_v52  ;;  %v570_v40 = vsel %vm378_vm9, %v5747_v3, %v5746_v33  ;;  %v5751_v36 = vld [vmem:[#allocation42_spill] sm:$0xff]  ;;  %v5752_v52 = vld [vmem:[#allocation45_spill] sm:$0xff] }
 0x6f7   :  { %v2317_v41 = vrot.slane %v2287_v34, %v3884_v23  ;;  %v2313_v13 = vrot.slane %v2283_v10, %v3884_v23  ;;  %v484_v0 = vadd.f32 %v476_v2, %v390_v42  ;;  %v5748_v34 = vld [vmem:[#allocation41_spill] sm:$0xff]  ;;  %v664_v38 = vsel %vm378_vm9, %v5750_v47, %v5749_v37 }
 0x6f8   :  { %v475_v10 = vsel %vm378_vm9, %v5748_v34, %v5744_v56  ;;  %v567_v2 = vsel %vm378_vm9, %v5751_v36, %v4457_v9  ;;  %v569_v28 = vsel %vm378_vm9, %v5752_v52, %v5747_v3  ;;  %v2303_v58 = vrot.slane %v4957_v55, %v3884_v23  ;;  %v5753_v3 = vld [vmem:[#allocation48_spill] sm:$0xff] }
 0x6f9   :  { %v2325_v56 = vrot.slane %v2295_v46, %v3884_v23  ;;  %v2321_v42 = vrot.slane %v2291_v59, %v3884_v23  ;;  %v481_v9 = vadd.f32 %v473_v8, %v387_v6  ;;  %v483_v60 = vadd.f32 %v475_v10, %v389_v27  ;;  %v5754_v6 = vld [vmem:[#allocation50_spill] sm:$0xff] }
 0x6fa   :  { %v2382_v33 = vrot.slane %v4929_v1, %v3974_v22  ;;  %v661_v34 = vsel %vm378_vm9, %v5753_v3, %v4500_v18  ;;  %v2378_v46 = vrot.slane %v4929_v1, %v3865_v12  ;;  %v663_v27 = vsel %vm378_vm9, %v5754_v6, %v5750_v47  ;;  %v5756_v8 = vld [vmem:[#allocation18_spill] sm:$0xff] }
 0x6fb   :  { %v575_v36 = vadd.f32 %v567_v2, %v481_v9  ;;  %v577_v52 = vadd.f32 %v569_v28, %v483_v60  ;;  %v2333_v18 = vrot.slane %v2303_v58, %v3884_v23  ;;  %v2386_v47 = vrot.slane %v4938_v14, %v3865_v12  ;;  %v5763_v6 = vld [vmem:[#allocation58_spill] sm:$0xff] }
 0x6fc   :  { %v2412_v28 = vrot.slane %v2382_v33, %v3865_v12  ;;  %v2390_v60 = vrot.slane %v4941_v49, %v3865_v12  ;;  %v5760_v33 = vld [vmem:[#allocation55_spill] sm:$0xff] }
 0x6fd   :  { %v671_v58 = vadd.f32 %v663_v27, %v577_v52  ;;  %v972_v27 = vsel %vm783_vm10, %v5763_v6, %v4525_v7 }
 0x700   :  { %v2274_v31 = vpop.permute.xlu1 %2273 }
 0x701   :  { %v2335_v50 = vmul.f32 %v2317_v41, %v2274_v31  ;;  %v2334_v62 = vmul.f32 %v2313_v13, %v2274_v31  ;;  %v2299_v41 = vrot.slane %v4941_v49, %v3937_v61  ;;  %v578_v13 = vadd.f32 %v570_v40, %v484_v0  ;;  %v5755_v0 = vld [vmem:[#allocation51_spill] sm:$0xff] }
 0x702   :  { %v2336_v37 = vmul.f32 %v2321_v42, %v2274_v31  ;;  %v787_v40 = vsel %vm783_vm10, %v5756_v8, %v5755_v0  ;;  %v2339_v42 = vmul.f32 %v2333_v18, %v2274_v31  ;;  %v2416_v0 = vrot.slane %v2386_v47, %v3865_v12  ;;  %v5766_v47 = vld [vmem:[#allocation54_spill] sm:$0xff] }
 0x703   :  { %2348 = vrot.lane.b32.xlu1 %v2335_v50, %s3799_s28  ;;  %2346 = vrot.lane.b32.xlu0 %v2334_v62, %s3799_s28  ;;  %v2337_v62 = vmul.f32 %v2325_v56, %v2274_v31  ;;  %v672_v59 = vadd.f32 %v664_v38, %v578_v13  ;;  %v2329_v10 = vrot.slane %v2299_v41, %v3884_v23  ;;  %v5757_v38 = vld [vmem:[#allocation17_spill] sm:$0xff]  ;;  %v5758_v41 = vld [vmem:[#allocation52_spill] sm:$0xff] }
 0x704   :  { %v669_v56 = vadd.f32 %v661_v34, %v575_v36  ;;  %v784_v2 = vsel %vm783_vm10, %v5757_v38, %v4513_v30  ;;  %v2408_v13 = vrot.slane %v2378_v46, %v3865_v12  ;;  %v5759_v34 = vld [vmem:[#allocation19_spill] sm:$0xff]  ;;  %v786_v36 = vsel %vm783_vm10, %v5760_v33, %v5756_v8  ;;  %v5764_v38 = vld [vmem:[#allocation53_spill] sm:$0xff] }
 0x705   :  { %v4996_v50 = vpop.permute.xlu1 %2466  ;;  %v2338_v9 = vmul.f32 %v2329_v10, %v2274_v31  ;;  %v795_v3 = vadd.f32 %v787_v40, %v672_v59  ;;  %v5761_v31 = vld [vmem:[#allocation56_spill] sm:$0xff]  ;;  %v5762_v59 = vld [vmem:[#allocation57_spill] sm:$0xff]  ;;  %v2398_v8 = vrot.slane %v4957_v55, %v3865_v12  ;;  %v2430_v40 = vmul.f32 %v2412_v28, %v4840_v45  ;;  %v5768_v28 = vld [vmem:[#allocation59_spill] sm:$0xff] }
 0x706   :  { %v792_v30 = vadd.f32 %v784_v2, %v669_v56  ;;  %v878_v46 = vsel %vm783_vm10, %v5761_v31, %v4519_v26  ;;  %v880_v52 = vsel %vm783_vm10, %v5762_v59, %v5759_v34  ;;  %v2429_v26 = vmul.f32 %v2408_v13, %v4840_v45  ;;  %v5765_v2 = vld [vmem:[#allocation20_spill] sm:$0xff]  ;;  %v5771_v31 = vld [vmem:[#allocation22_spill] sm:$0xff] }
 0x707   :  { %2352 = vrot.lane.b32.xlu1 %v2337_v62, %s3799_s28  ;;  %2350 = vrot.lane.b32.xlu0 %v2336_v37, %s3799_s28  ;;  %v881_v62 = vsel %vm783_vm10, %v5759_v34, %v5758_v41  ;;  %v2420_v18 = vrot.slane %v2390_v60, %v3865_v12  ;;  %v2394_v10 = vrot.slane %v4941_v49, %v3974_v22  ;;  %v5767_v41 = vld [vmem:[#allocation21_spill] sm:$0xff]  ;;  %v5769_v60 = vld [vmem:[#allocation60_spill] sm:$0xff] }
 0x708   :  { %v889_v56 = vadd.f32 %v881_v62, %v795_v3  ;;  %v794_v7 = vadd.f32 %v786_v36, %v671_v58  ;;  %v1069_v34 = vsel %vm783_vm10, %v5767_v41, %v5766_v47  ;;  %v974_v13 = vsel %vm783_vm10, %v5768_v28, %v5765_v2  ;;  %v5775_v47 = vld [vmem:[#allocation64_spill] sm:$0xff] }
 0x709   :  { %v1066_v33 = vsel %vm783_vm10, %v5769_v60, %v4531_v25  ;;  %v2432_v59 = vmul.f32 %v2420_v18, %v4840_v45  ;;  %v2431_v25 = vmul.f32 %v2416_v0, %v4840_v45  ;;  %v2428_v6 = vrot.slane %v2398_v8, %v3865_v12  ;;  %v5776_v28 = vld [vmem:[#allocation24_spill] sm:$0xff] }
 0x70a   :  { %v5022_v37 = vpop.permute.xlu1 %2560  ;;  %v888_v58 = vadd.f32 %v880_v52, %v794_v7  ;;  %v5773_v7 = vld [vmem:[#allocation62_spill] sm:$0xff] }
 0x70b   :  { %2356 = vrot.lane.b32.xlu1 %v2339_v42, %s3799_s28  ;;  %2354 = vrot.lane.b32.xlu0 %v2338_v9, %s3799_s28  ;;  %v975_v42 = vsel %vm783_vm10, %v5765_v2, %v5764_v38  ;;  %v886_v9 = vadd.f32 %v878_v46, %v792_v30  ;;  %v5770_v30 = vld [vmem:[#allocation61_spill] sm:$0xff]  ;;  %v1182_v46 = vsel %vm1181_vm11, %v5771_v31, %v4535_v21  ;;  %v5772_v2 = vld [vmem:[#allocation23_spill] sm:$0xff] }
 0x70c   :  { %v1068_v36 = vsel %vm783_vm10, %v5770_v30, %v5767_v41  ;;  %v982_v38 = vadd.f32 %v974_v13, %v888_v58  ;;  %v2472_v21 = vrot.slane %v4929_v1, %v3911_v44  ;;  %v1276_v41 = vsel %vm1181_vm11, %v5775_v47, %v4551_v39  ;;  %v5777_v13 = vld [vmem:[#allocation69_spill] sm:$0xff] }
 0x70d   :  { %v980_v62 = vadd.f32 %v972_v27, %v886_v9  ;;  %v2476_v27 = vrot.slane %v4929_v1, %v3985_v32  ;;  %v1184_v9 = vsel %vm1181_vm11, %v5773_v7, %v5772_v2  ;;  %v1278_v60 = vsel %vm1181_vm11, %v5777_v13, %v5776_v28  ;;  %v5783_v7 = vld [vmem:[#allocation75_spill] sm:$0xff] }
 0x70e   :  { %v1076_v8 = vadd.f32 %v1068_v36, %v982_v38  ;;  %v5779_v36 = vld [vmem:[#allocation72_spill] sm:$0xff]  ;;  %v2502_v39 = vrot.slane %v2472_v21, %v3911_v44  ;;  %v5781_v38 = vld [vmem:[#allocation73_spill] sm:$0xff]  ;;  %v2488_v13 = vrot.slane %v4941_v49, %v3985_v32 }
 0x70f   :  { %2443 = vrot.lane.b32.xlu1 %v2430_v40, %s3799_s28  ;;  %2441 = vrot.lane.b32.xlu0 %v2429_v26, %s3799_s28  ;;  %v5060_v3 = vpop.permute.xlu1 %2757  ;;  %v2424_v40 = vrot.slane %v2394_v10, %v3865_v12  ;;  %v983_v26 = vadd.f32 %v975_v42, %v889_v56  ;;  %v1074_v52 = vadd.f32 %v1066_v33, %v980_v62  ;;  %v5774_v10 = vld [vmem:[#allocation63_spill] sm:$0xff] }
 0x710   :  { %v1185_v56 = vsel %vm1181_vm11, %v5772_v2, %v5774_v10  ;;  %v2434_v33 = vmul.f32 %v2428_v6, %v4840_v45  ;;  %v1192_v58 = vadd.f32 %v1184_v9, %v1076_v8  ;;  %v5778_v62 = vld [vmem:[#allocation71_spill] sm:$0xff]  ;;  %v1370_v31 = vsel %vm1181_vm11, %v5779_v36, %v4595_v29  ;;  %v5787_v36 = vld [vmem:[#allocation78_spill] sm:$0xff] }
 0x711   :  { %v1077_v0 = vadd.f32 %v1069_v34, %v983_v26  ;;  %v1190_v18 = vadd.f32 %v1182_v46, %v1074_v52  ;;  %v2433_v34 = vmul.f32 %v2424_v40, %v4840_v45  ;;  %v1279_v30 = vsel %vm1181_vm11, %v5776_v28, %v5778_v62  ;;  %v5780_v26 = vld [vmem:[#allocation25_spill] sm:$0xff]  ;;  %v5784_v10 = vld [vmem:[#allocation27_spill] sm:$0xff] }
 0x712   :  { %v2506_v46 = vrot.slane %v2476_v27, %v3911_v44  ;;  %v2484_v45 = vrot.slane %v4941_v49, %v3911_v44  ;;  %v1286_v40 = vadd.f32 %v1278_v60, %v1192_v58  ;;  %v1372_v29 = vsel %vm1181_vm11, %v5781_v38, %v5780_v26  ;;  %v5782_v27 = vld [vmem:[#allocation74_spill] sm:$0xff]  ;;  %v5786_v58 = vld [vmem:[#allocation77_spill] sm:$0xff]  ;;  %v5791_v38 = vld [vmem:[#allocation43_spill] sm:$0xff] }
 0x713   :  { %2447 = vrot.lane.b32.xlu1 %v2432_v59, %s3799_s28  ;;  %2445 = vrot.lane.b32.xlu0 %v2431_v25, %s3799_s28  ;;  %v2480_v59 = vrot.slane %v4938_v14, %v3911_v44  ;;  %v1193_v25 = vadd.f32 %v1185_v56, %v1077_v0  ;;  %v1284_v6 = vadd.f32 %v1276_v41, %v1190_v18  ;;  %v5785_v56 = vld [vmem:[#allocation76_spill] sm:$0xff] }
 0x714   :  { %v5084_v42 = vpop.permute.xlu1 %2851  ;;  %v1373_v2 = vsel %vm1181_vm11, %v5780_v26, %v5782_v27  ;;  %v1464_v9 = vsel %vm1181_vm11, %v5783_v7, %v4603_v54  ;;  %v2524_v21 = vmul.f32 %v2506_v46, %v4996_v50  ;;  %v2523_v0 = vmul.f32 %v2502_v39, %v4996_v50  ;;  %v5788_v46 = vld [vmem:[#allocation31_spill] sm:$0xff] }
 0x715   :  { %v1287_v8 = vadd.f32 %v1279_v30, %v1193_v25  ;;  %v1378_v18 = vadd.f32 %v1370_v31, %v1284_v6  ;;  %v1466_v47 = vsel %vm1181_vm11, %v5785_v56, %v5784_v10  ;;  %v2492_v41 = vrot.slane %v4957_v55, %v3911_v44  ;;  %v5789_v39 = vld [vmem:[#allocation79_spill] sm:$0xff] }
 0x716   :  { %v2514_v28 = vrot.slane %v2484_v45, %v3911_v44  ;;  %v2510_v54 = vrot.slane %v2480_v59, %v3911_v44  ;;  %v1380_v60 = vadd.f32 %v1372_v29, %v1286_v40  ;;  %v1467_v62 = vsel %vm1181_vm11, %v5784_v10, %v5786_v58  ;;  %v5790_v40 = vld [vmem:[#allocation80_spill] sm:$0xff]  ;;  %v5792_v29 = vld [vmem:[#allocation82_spill] sm:$0xff]  ;;  %v5794_v56 = vld [vmem:[#allocation83_spill] sm:$0xff] }
 0x717   :  { %2451 = vrot.lane.b32.xlu1 %v2434_v33, %s3799_s28  ;;  %2449 = vrot.lane.b32.xlu0 %v2433_v34, %s3799_s28  ;;  %v1381_v33 = vadd.f32 %v1373_v2, %v1287_v8  ;;  %v1472_v34 = vadd.f32 %v1464_v9, %v1378_v18  ;;  %v1567_v31 = vsel %vm1566_vm12, %v5787_v36, %v4611_v63  ;;  %v5793_v18 = vld [vmem:[#allocation81_spill] sm:$0xff]  ;;  %v5797_v58 = vld [vmem:[#allocation87_spill] sm:$0xff] }
 0x718   :  { %v5111_v52 = vpop.permute.xlu1 %3038  ;;  %v1569_v45 = vsel %vm1566_vm12, %v5789_v39, %v5788_v46  ;;  %v2526_v59 = vmul.f32 %v2514_v28, %v4996_v50  ;;  %v2525_v25 = vmul.f32 %v2510_v54, %v4996_v50  ;;  %v1474_v6 = vadd.f32 %v1466_v47, %v1380_v60  ;;  %v5795_v28 = vld [vmem:[#allocation65_spill] sm:$0xff] }
 0x719   :  { %v1570_v26 = vsel %vm1566_vm12, %v5788_v46, %v5790_v40  ;;  %v1663_v27 = vsel %vm1566_vm12, %v5792_v29, %v5791_v38  ;;  %v2570_v63 = vrot.slane %v4929_v1, %v3998_v48  ;;  %v2522_v2 = vrot.slane %v2492_v41, %v3911_v44  ;;  %v5796_v54 = vld [vmem:[#allocation85_spill] sm:$0xff]  ;;  %v2146_v40 = vpop.permute.xlu0 %2145 }
 0x71a   :  { %v2518_v7 = vrot.slane %v2488_v13, %v3911_v44  ;;  %v2566_v9 = vrot.slane %v4929_v1, %v3922_v53  ;;  %v1577_v8 = vadd.f32 %v1569_v45, %v1474_v6  ;;  %v1661_v10 = vsel %vm1566_vm12, %v5793_v18, %v4619_v17  ;;  %v5801_v29 = vld [vmem:[#allocation93_spill] sm:$0xff] }
 0x71b   :  { %2537 = vrot.lane.b32.xlu1 %v2524_v21, %s3799_s28  ;;  %2535 = vrot.lane.b32.xlu0 %v2523_v0, %s3799_s28  ;;  %v1475_v21 = vadd.f32 %v1467_v62, %v1381_v33  ;;  %v1575_v0 = vadd.f32 %v1567_v31, %v1472_v34  ;;  %v1664_v47 = vsel %vm1566_vm12, %v5791_v38, %v5794_v56  ;;  %v5798_v62 = vld [vmem:[#allocation90_spill] sm:$0xff] }
 0x71c   :  { %v5135_v30 = vpop.permute.xlu1 %3052  ;;  %v1757_v41 = vsel %vm1566_vm12, %v5796_v54, %v5795_v28  ;;  %v2528_v13 = vmul.f32 %v2522_v2, %v4996_v50  ;;  %v2527_v1 = vmul.f32 %v2518_v7, %v4996_v50  ;;  %v1671_v34 = vadd.f32 %v1663_v27, %v1577_v8  ;;  %v5802_v7 = vld [vmem:[#allocation91_spill] sm:$0xff] }
 0x71d   :  { %v1578_v33 = vadd.f32 %v1570_v26, %v1475_v21  ;;  %v1851_v17 = vsel %vm1566_vm12, %v5798_v62, %v5797_v58  ;;  %v2578_v36 = vrot.slane %v4941_v49, %v3922_v53  ;;  %v2600_v31 = vrot.slane %v2570_v63, %v3922_v53  ;;  %v5800_v26 = vld [vmem:[#allocation86_spill] sm:$0xff] }
 0x71e   :  { %v2596_v46 = vrot.slane %v2566_v9, %v3922_v53  ;;  %v2574_v50 = vrot.slane %v4938_v14, %v3922_v53  ;;  %v1669_v39 = vadd.f32 %v1661_v10, %v1575_v0  ;;  %v1765_v6 = vadd.f32 %v1757_v41, %v1671_v34  ;;  %v5804_v41 = vld [vmem:[#allocation88_spill] sm:$0xff] }
 0x71f   :  { %2541 = vrot.lane.b32.xlu1 %v2526_v59, %s3799_s28  ;;  %2539 = vrot.lane.b32.xlu0 %v2525_v25, %s3799_s28  ;;  %v1672_v45 = vadd.f32 %v1664_v47, %v1578_v33  ;;  %v5799_v59 = vld [vmem:[#allocation84_spill] sm:$0xff]  ;;  %v1758_v38 = vsel %vm1566_vm12, %v5795_v28, %v5800_v26  ;;  %v1963_v27 = vsel %vm1960_vm13, %v4813_v15, %v5801_v29 }
 0x720   :  { %v1755_v25 = vsel %vm1566_vm12, %v5799_v59, %v4627_v4  ;;  %v2618_v63 = vmul.f32 %v2600_v31, %v5022_v37  ;;  %v2617_v14 = vmul.f32 %v2596_v46, %v5022_v37  ;;  %v1859_v2 = vadd.f32 %v1851_v17, %v1765_v6  ;;  %v5803_v4 = vld [vmem:[#allocation95_spill] sm:$0xff]  ;;  %v5805_v34 = vld [vmem:[#allocation92_spill] sm:$0xff] }
 0x721   :  { %v5168_v60 = vpop.permute.xlu1 %3245  ;;  %v1852_v9 = vsel %vm1566_vm12, %v5797_v58, %v5802_v7  ;;  %v2057_v21 = vsel %vm1960_vm13, %v4858_v20, %v5803_v4  ;;  %v2608_v8 = vrot.slane %v2578_v36, %v3922_v53  ;;  %v2604_v15 = vrot.slane %v2574_v50, %v3922_v53  ;;  %v5210_v20 = vld [vmem:[#allocation2] sm:$0xff]  ;;  %v2232_v36 = vpop.permute.xlu0 %2231  ;;  %v5228_v31 = vld [vmem:[#allocation2 + $0x8] sm:$0xf]  ;;  %v5806_v7 = vld [vmem:[#allocation29_spill] sm:$0xff] }
 0x722   :  { %v2586_v18 = vrot.slane %v4957_v55, %v3922_v53  ;;  %v2582_v10 = vrot.slane %v4941_v49, %v3998_v48  ;;  %v1763_v56 = vadd.f32 %v1755_v25, %v1669_v39  ;;  %v1766_v47 = vadd.f32 %v1758_v38, %v1672_v45 }
 0x723   :  { %2545 = vrot.lane.b32.xlu1 %v2528_v13, %s3799_s28  ;;  %2543 = vrot.lane.b32.xlu0 %v2527_v1, %s3799_s28  ;;  %v1971_v28 = vadd.f32 %v1963_v27, %v1859_v2  ;;  %v2668_v54 = vrot.slane %v5210_v20, %v3884_v23  ;;  %v1849_v13 = vsel %vm1566_vm12, %v5804_v41, %v5733_v43 }
 0x724   :  { %v1964_v1 = vsel %vm1960_vm13, %v5801_v29, %v4824_v16  ;;  %v2620_v55 = vmul.f32 %v2608_v8, %v5022_v37  ;;  %v2619_v49 = vmul.f32 %v2604_v15, %v5022_v37  ;;  %v1860_v33 = vadd.f32 %v1852_v9, %v1766_v47  ;;  %v5807_v47 = vld [vmem:[#allocation94_spill] sm:$0xff] }
 0x725   :  { %v1961_v58 = vsel %vm1960_vm13, %v5805_v34, %v4807_v24  ;;  %v2065_v62 = vadd.f32 %v2057_v21, %v1971_v28  ;;  %v2058_v17 = vsel %vm1960_vm13, %v5803_v4, %v4871_v11  ;;  %v2616_v46 = vrot.slane %v2586_v18, %v3922_v53 }
 0x726   :  { %v5200_v0 = vpop.permute.xlu1 %3339  ;;  %v2612_v50 = vrot.slane %v2582_v10, %v3922_v53  ;;  %v1857_v24 = vadd.f32 %v1849_v13, %v1763_v56  ;;  %v1972_v39 = vadd.f32 %v1964_v1, %v1860_v33  ;;  %v2055_v11 = vsel %vm1960_vm13, %v4832_v57, %v4845_v51 }
 0x727   :  { %2631 = vrot.lane.b32.xlu1 %v2618_v63, %s3799_s28  ;;  %2629 = vrot.lane.b32.xlu0 %v2617_v14, %s3799_s28  ;;  %v2622_v59 = vmul.f32 %v2616_v46, %v5022_v37  ;;  %v2676_v29 = vrot.slane %v5228_v31, %v3884_v23  ;;  %v2149_v27 = vsel %vm1960_vm13, %v4882_v19, %v4895_v35  ;;  %v5245_v63 = vld [vmem:[#allocation2 + $0x14] sm:$0xf] }
 0x728   :  { %v2621_v25 = vmul.f32 %v2612_v50, %v5022_v37  ;;  %v1969_v6 = vadd.f32 %v1961_v58, %v1857_v24  ;;  %v2066_v26 = vadd.f32 %v2058_v17, %v1972_v39  ;;  %v2698_v57 = vrot.slane %v2668_v54, %v3884_v23  ;;  %v2236_v37 = vpop.permute.xlu0 %2235  ;;  %v5808_v54 = vld [vmem:[#allocation30_spill] sm:$0xff]  ;;  %v5809_v50 = vld [vmem:[#allocation35_spill] sm:$0xff]  ;;  %v5810_v39 = vld [vmem:[#allocation33_spill] sm:$0xff] }
 0x729   :  { %v2720_v9 = vmul.f32 %v4853_v5, %v5806_v7  ;;  %v2688_v35 = vrot.slane %v5245_v63, %v3884_v23  ;;  %v2706_v10 = vrot.slane %v2676_v29, %v3884_v23  ;;  %v2722_v41 = vmul.f32 %v4853_v5, %v5808_v54 }
 0x72a   :  { %v2144_v43 = vpop.permute.xlu1 %2143  ;;  %v2063_v51 = vadd.f32 %v2055_v11, %v1969_v6  ;;  %v2719_v4 = vmul.f32 %v2698_v57, %v4853_v5  ;;  %v2815_v24 = vmul.f32 %v5060_v3, %v5809_v50  ;;  %v2783_v11 = vrot.slane %v5245_v63, %v3865_v12 }
 0x72b   :  { %v2151_v16 = vsel %vm1960_vm13, %v2144_v43, %v2146_v40  ;;  %2635 = vrot.lane.b32.xlu1 %v2620_v55, %s3799_s28  ;;  %2633 = vrot.lane.b32.xlu0 %v2619_v49, %s3799_s28  ;;  %v2721_v13 = vmul.f32 %v2706_v10, %v4853_v5  ;;  %v2718_v33 = vrot.slane %v2688_v35, %v3884_v23  ;;  %v3040_v35 = vrot.slane %v5111_v52, 4 }
 0x72c   :  { %v2159_v45 = vadd.f32 %v2151_v16, %v2065_v62  ;;  %v2157_v21 = vadd.f32 %v2149_v27, %v2063_v51  ;;  %v2240_v1 = vpop.permute.xlu0 %2239  ;;  %v2771_v16 = vrot.slane %v5228_v31, %v3865_v12  ;;  %v2865_v57 = vrot.slane %v5228_v31, %v3911_v44  ;;  %v5812_v51 = vld [vmem:[#allocation47_spill] sm:$0xff] }
 0x72d   :  { %v2724_v62 = vmul.f32 %v2718_v33, %v4853_v5  ;;  %v2959_v54 = vrot.slane %v5228_v31, %v3922_v53 }
 0x72e   :  { %v2148_v38 = vpop.permute.xlu1 %2147 }
 0x72f   :  { %v2152_v14 = vsel %vm1960_vm13, %v2146_v40, %v2148_v38  ;;  %2639 = vrot.lane.b32.xlu1 %v2622_v59, %s3799_s28  ;;  %2637 = vrot.lane.b32.xlu0 %v2621_v25, %s3799_s28  ;;  %v5256_v40 = vld [vmem:[#allocation2 + $0xc] sm:$0xff]  ;;  %v2813_v38 = vrot.slane %v2783_v11, %v3865_v12 }
 0x730   :  { %v2160_v2 = vadd.f32 %v2152_v14, %v2066_v26  ;;  %v2684_v8 = vrot.slane %v5256_v40, %v3937_v61  ;;  %v2779_v59 = vrot.slane %v5256_v40, %v3974_v22  ;;  %v5811_v25 = vld [vmem:[#allocation36_spill] sm:$0xff] }
 0x731   :  { %v2817_v6 = vmul.f32 %v5060_v3, %v5811_v25  ;;  %v2819_v27 = vmul.f32 %v2813_v38, %v5060_v3 }
 0x732   :  { %v2234_v19 = vpop.permute.xlu1 %2233  ;;  %v2714_v34 = vrot.slane %v2684_v8, %v3884_v23  ;;  %v2809_v29 = vrot.slane %v2779_v59, %v3865_v12 }
 0x733   :  { %v2243_v15 = vsel %vm1960_vm13, %v2232_v36, %v2234_v19  ;;  %v2244_v18 = vsel %vm1960_vm13, %v2234_v19, %v2236_v37  ;;  %2733 = vrot.lane.b32.xlu1 %v2720_v9, %s3800_s29  ;;  %2731 = vrot.lane.b32.xlu0 %v2719_v4, %s3800_s29  ;;  %v2909_v37 = vmul.f32 %v5084_v42, %v5812_v51  ;;  %v5814_v4 = vld [vmem:[#allocation49_spill] sm:$0xff] }
 0x734   :  { %v5265_v56 = vadd.f32 %v2243_v15, %v2157_v21  ;;  %v5268_v28 = vadd.f32 %v2244_v18, %v5807_v47  ;;  %v2723_v17 = vmul.f32 %v2714_v34, %v4853_v5  ;;  %v2801_v5 = vrot.slane %v2771_v16, %v3865_v12  ;;  %v5815_v18 = vld [vmem:[#allocation46_spill] sm:$0xff] }
 0x735   :  { %v2818_v14 = vmul.f32 %v2809_v29, %v5060_v3  ;;  %v2895_v9 = vrot.slane %v2865_v57, %v3911_v44  ;;  %v2911_v21 = vmul.f32 %v5084_v42, %v5814_v4  ;;  %v2912_v10 = vmul.f32 %v5084_v42, %v5815_v18  ;;  %v5819_v34 = vld [vmem:[#allocation70_spill] sm:$0xff] }
 0x736   :  { %v2238_v55 = vpop.permute.xlu1 %2237  ;;  %v2816_v26 = vmul.f32 %v2801_v5, %v5060_v3  ;;  %v3042_v47 = vsel %vm3041_vm15, %v3040_v35, %v5111_v52  ;;  %v2971_v52 = vrot.slane %v5245_v63, %v3922_v53 }
 0x737   :  { %v2245_v49 = vsel %vm1960_vm13, %v2238_v55, %v2240_v1  ;;  %2737 = vrot.lane.b32.xlu1 %v2722_v41, %s3800_s29  ;;  %2735 = vrot.lane.b32.xlu0 %v2721_v13, %s3800_s29  ;;  %v2910_v19 = vmul.f32 %v2895_v9, %v5084_v42  ;;  %v5338_v41 = vmul.f32 %v5210_v20, %v3042_v47  ;;  %v5816_v13 = vld [vmem:[#allocation68_spill] sm:$0xff] }
 0x738   :  { %v5278_v58 = vadd.f32 %v2245_v49, %v2159_v45  ;;  %v2814_v45 = vmul.f32 %v5060_v3, %v5810_v39  ;;  %v2877_v3 = vrot.slane %v5245_v63, %v3911_v44  ;;  %v5818_v49 = vld [vmem:[#allocation66_spill] sm:$0xff]  ;;  %v3001_v50 = vrot.slane %v2971_v52, %v3922_v53  ;;  %v5820_v39 = vld [vmem:[#allocation67_spill] sm:$0xff] }
 0x739   :  { %v3062_v16 = vrot.slane %v5338_v41, %v3884_v23 }
 0x73a   :  { %v2242_v36 = vpop.permute.xlu1 %2241  ;;  %v2907_v8 = vrot.slane %v2877_v3, %v3911_v44 }
 0x73b   :  { %v2246_v43 = vsel %vm1960_vm13, %v2240_v1, %v2242_v36  ;;  %2741 = vrot.lane.b32.xlu1 %v2724_v62, %s3800_s29  ;;  %2739 = vrot.lane.b32.xlu0 %v2723_v17, %s3800_s29  ;;  %v5817_v1 = vld [vmem:[#allocation96_spill] sm:$0xff]  ;;  %v5353_v17 = vmul.f32 %v3040_v35, %v5228_v31  ;;  %v5356_v36 = vmul.f32 %v5256_v40, %v3042_v47 }
 0x73c   :  { %v5287_v46 = vadd.f32 %v2246_v43, %v2160_v2  ;;  %v5813_v2 = vld [vmem:[#allocation44_spill] sm:$0xff]  ;;  %v2913_v15 = vmul.f32 %v2907_v8, %v5084_v42  ;;  %v3003_v55 = vmul.f32 %v5817_v1, %v5816_v13  ;;  %v3002_v33 = vmul.f32 %v5817_v1, %v5818_v49 }
 0x73d   :  { %v2908_v7 = vmul.f32 %v5084_v42, %v5813_v2  ;;  %v2989_v42 = vrot.slane %v2959_v54, %v3922_v53  ;;  %v3005_v62 = vmul.f32 %v5817_v1, %v5819_v34  ;;  %v3066_v43 = vrot.slane %v5338_v41, %v3937_v61 }
 0x73e   :  { %v3007_v31 = vmul.f32 %v3001_v50, %v5817_v1  ;;  %v3006_v40 = vmul.f32 %v5817_v1, %v5820_v39  ;;  %v3092_v5 = vrot.slane %v3062_v16, %v3884_v23  ;;  %v3074_v11 = vrot.slane %v5356_v36, %v3884_v23  ;;  %v3432_v16 = vld [vmem:[%s5607_s2] sm:$0xff] }
 0x73f   :  { %2828 = vrot.lane.b32.xlu1 %v2815_v24, %s3800_s29  ;;  %2826 = vrot.lane.b32.xlu0 %v2814_v45, %s3800_s29  ;;  %v3004_v20 = vmul.f32 %v2989_v42, %v5817_v1  ;;  %v5366_v24 = vmul.f32 %v3040_v35, %v5245_v63  ;;  %v3096_v45 = vrot.slane %v3066_v43, %v3884_v23 }
 0x740   :  { %v3070_v59 = vrot.slane %v5353_v17, %v3884_v23  ;;  %v3078_v25 = vrot.slane %v5356_v36, %v3937_v61  ;;  %v3104_v38 = vrot.slane %v3074_v11, %v3884_v23  ;;  %v3157_v2 = vrot.slane %v5338_v41, %v3865_v12 }
 0x741   :  { %v3082_v63 = vrot.slane %v5366_v24, %v3884_v23  ;;  %v3165_v9 = vrot.slane %v5353_v17, %v3865_v12  ;;  %v3177_v8 = vrot.slane %v5366_v24, %v3865_v12  ;;  %v3259_v49 = vrot.slane %v5353_v17, %v3911_v44 }
 0x742   :  { %v3100_v29 = vrot.slane %v3070_v59, %v3884_v23  ;;  %v3116_v57 = vmul.f32 %v3104_v38, %v5135_v30 }
 0x743   :  { %2832 = vrot.lane.b32.xlu1 %v2817_v6, %s3800_s29  ;;  %2830 = vrot.lane.b32.xlu0 %v2816_v26, %s3800_s29  ;;  %v3114_v6 = vmul.f32 %v3096_v45, %v5135_v30  ;;  %v3113_v26 = vmul.f32 %v3092_v5, %v5135_v30  ;;  %v3207_v47 = vrot.slane %v3177_v8, %v3865_v12 }
 0x744   :  { %v3115_v51 = vmul.f32 %v3100_v29, %v5135_v30  ;;  %v3289_v50 = vrot.slane %v3259_v49, %v3911_v44  ;;  %v3267_v5 = vrot.slane %v5356_v36, %v3985_v32  ;;  %v3271_v29 = vrot.slane %v5366_v24, %v3911_v44 }
 0x746   :  { %v3297_v38 = vrot.slane %v3267_v5, %v3911_v44 }
 0x747   :  { %2836 = vrot.lane.b32.xlu1 %v2819_v27, %s3800_s29  ;;  %2834 = vrot.lane.b32.xlu0 %v2818_v14, %s3800_s29  ;;  %v3112_v27 = vrot.slane %v3082_v63, %v3884_v23  ;;  %v3161_v14 = vrot.slane %v5338_v41, %v3974_v22  ;;  %v3304_v63 = vmul.f32 %v3289_v50, %v5168_v60 }
 0x749   :  { %v3118_v3 = vmul.f32 %v3112_v27, %v5135_v30 }
 0x74b   :  { %2922 = vrot.lane.b32.xlu1 %v2909_v37, %s3800_s29  ;;  %2920 = vrot.lane.b32.xlu0 %v2908_v7, %s3800_s29  ;;  %v3108_v37 = vrot.slane %v3078_v25, %v3884_v23  ;;  %v3191_v7 = vrot.slane %v3161_v14, %v3865_v12  ;;  %v3169_v23 = vrot.slane %v5356_v36, %v3865_v12 }
 0x74d   :  { %v3117_v4 = vmul.f32 %v3108_v37, %v5135_v30  ;;  %v3199_v18 = vrot.slane %v3169_v23, %v3865_v12  ;;  %v3195_v30 = vrot.slane %v3165_v9, %v3865_v12  ;;  %v3353_v23 = vrot.slane %v5353_v17, %v3922_v53 }
 0x74f   :  { %2926 = vrot.lane.b32.xlu1 %v2911_v21, %s3800_s29  ;;  %2924 = vrot.lane.b32.xlu0 %v2910_v19, %s3800_s29  ;;  %v3187_v21 = vrot.slane %v3157_v2, %v3865_v12  ;;  %v5821_v19 = vld [vmem:[#allocation89_spill] sm:$0xff]  ;;  %v3383_v17 = vrot.slane %v3353_v23, %v3922_v53 }
 0x750   :  { %v3209_v35 = vmul.f32 %v3191_v7, %v5821_v19  ;;  %v3211_v54 = vmul.f32 %v3199_v18, %v5821_v19  ;;  %v3210_v13 = vmul.f32 %v3195_v30, %v5821_v19  ;;  %v3213_v52 = vmul.f32 %v3207_v47, %v5821_v19 }
 0x751   :  { %v3306_v7 = vmul.f32 %v3297_v38, %v5168_v60  ;;  %v3357_v30 = vrot.slane %v5356_v36, %v3922_v53  ;;  %v3361_v47 = vrot.slane %v5356_v36, %v3998_v48 }
 0x753   :  { %2930 = vrot.lane.b32.xlu1 %v2913_v15, %s3800_s29  ;;  %2928 = vrot.lane.b32.xlu0 %v2912_v10, %s3800_s29  ;;  %v3208_v15 = vmul.f32 %v3187_v21, %v5821_v19  ;;  %v3173_v10 = vrot.slane %v5356_v36, %v3974_v22 }
 0x755   :  { %v3203_v1 = vrot.slane %v3173_v10, %v3865_v12  ;;  %v3255_v12 = vrot.slane %v5338_v41, %v3985_v32 }
 0x757   :  { %3016 = vrot.lane.b32.xlu1 %v3003_v55, %s3800_s29  ;;  %3014 = vrot.lane.b32.xlu0 %v3002_v33, %s3800_s29  ;;  %v3251_v55 = vrot.slane %v5338_v41, %v3911_v44  ;;  %v3212_v34 = vmul.f32 %v3203_v1, %v5821_v19  ;;  %v3285_v45 = vrot.slane %v3255_v12, %v3911_v44 }
 0x758   :  { %v3398_v1 = vmul.f32 %v3383_v17, %v5200_v0 }
 0x75b   :  { %3020 = vrot.lane.b32.xlu1 %v3005_v62, %s3800_s29  ;;  %3018 = vrot.lane.b32.xlu0 %v3004_v20, %s3800_s29  ;;  %v3281_v62 = vrot.slane %v3251_v55, %v3911_v44 }
 0x75f   :  { %3024 = vrot.lane.b32.xlu1 %v3007_v31, %s3800_s29  ;;  %3022 = vrot.lane.b32.xlu0 %v3006_v40, %s3800_s29  ;;  %v3302_v40 = vmul.f32 %v3281_v62, %v5168_v60 }
 0x763   :  { %3127 = vrot.lane.b32.xlu1 %v3114_v6, %s3801_s30  ;;  %3125 = vrot.lane.b32.xlu0 %v3113_v26, %s3801_s30  ;;  %v3303_v26 = vmul.f32 %v3285_v45, %v5168_v60 }
 0x767   :  { %3131 = vrot.lane.b32.xlu1 %v3116_v57, %s3801_s30  ;;  %3129 = vrot.lane.b32.xlu0 %v3115_v51, %s3801_s30  ;;  %v3345_v51 = vrot.slane %v5338_v41, %v3922_v53 }
 0x769   :  { %v3375_v21 = vrot.slane %v3345_v51, %v3922_v53 }
 0x76b   :  { %3135 = vrot.lane.b32.xlu1 %v3118_v3, %s3801_s30  ;;  %3133 = vrot.lane.b32.xlu0 %v3117_v4, %s3801_s30  ;;  %v3301_v3 = vrot.slane %v3271_v29, %v3911_v44 }
 0x76d   :  { %v3307_v8 = vmul.f32 %v3301_v3, %v5168_v60 }
 0x76f   :  { %3222 = vrot.lane.b32.xlu1 %v3209_v35, %s3801_s30  ;;  %3220 = vrot.lane.b32.xlu0 %v3208_v15, %s3801_s30  ;;  %v3396_v15 = vmul.f32 %v3375_v21, %v5200_v0 }
 0x773   :  { %3226 = vrot.lane.b32.xlu1 %v3211_v54, %s3801_s30  ;;  %3224 = vrot.lane.b32.xlu0 %v3210_v13, %s3801_s30 }
 0x775   :  { %v2347_v33 = vpop.permute.xlu0 %2346  ;;  %v2349_v42 = vpop.permute.xlu1 %2348 }
 0x776   :  { %v2359_v20 = vsel %vm2358_vm0, %v2347_v33, %v2349_v42  ;;  %v3387_v33 = vrot.slane %v3357_v30, %v3922_v53 }
 0x777   :  { %v2367_v43 = vadd.f32 %v2359_v20, %v5265_v56  ;;  %3230 = vrot.lane.b32.xlu1 %v3213_v52, %s3801_s30  ;;  %3228 = vrot.lane.b32.xlu0 %v3212_v34, %s3801_s30  ;;  %v3263_v56 = vrot.slane %v5356_v36, %v3911_v44 }
 0x778   :  { %v3399_v12 = vmul.f32 %v3387_v33, %v5200_v0 }
 0x779   :  { %v2351_v31 = vpop.permute.xlu0 %2350  ;;  %v2353_v39 = vpop.permute.xlu1 %2352  ;;  %v3293_v32 = vrot.slane %v3263_v56, %v3911_v44 }
 0x77a   :  { %v2360_v11 = vsel %vm2358_vm0, %v2349_v42, %v2351_v31  ;;  %v3365_v42 = vrot.slane %v5366_v24, %v3922_v53 }
 0x77b   :  { %v2368_v59 = vadd.f32 %v2360_v11, %v5268_v28  ;;  %3435 = vperm.xlu0 %3667, %v3432_v16   ;;  %3314 = vrot.lane.b32.xlu1 %v3302_v40, %s3801_s30  ;;  %v3305_v9 = vmul.f32 %v3293_v32, %v5168_v60 }
 0x77c   :  { %v3395_v24 = vrot.slane %v3365_v42, %v3922_v53 }
 0x77d   :  { %v2355_v25 = vpop.permute.xlu0 %2354  ;;  %v2357_v6 = vpop.permute.xlu1 %2356 }
 0x77e   :  { %v2361_v27 = vsel %vm2358_vm0, %v2353_v39, %v2355_v25  ;;  %v2362_v28 = vsel %vm2358_vm0, %v2355_v25, %v2357_v6  ;;  %v3401_v39 = vmul.f32 %v3395_v24, %v5200_v0 }
 0x77f   :  { %v2369_v14 = vadd.f32 %v2361_v27, %v5278_v58  ;;  %v2370_v57 = vadd.f32 %v2362_v28, %v5287_v46  ;;  %3318 = vrot.lane.b32.xlu0 %v3304_v63, %s3801_s30  ;;  %3316 = vrot.lane.b32.xlu1 %v3303_v26, %s3801_s30  ;;  %v3349_v58 = vrot.slane %v5338_v41, %v3998_v48 }
 0x780   :  { %v3391_v48 = vrot.slane %v3361_v47, %v3922_v53 }
 0x781   :  { %v2442_v37 = vpop.permute.xlu0 %2441  ;;  %v2444_v2 = vpop.permute.xlu1 %2443  ;;  %v3379_v41 = vrot.slane %v3349_v58, %v3922_v53 }
 0x782   :  { %v2453_v4 = vsel %vm2358_vm0, %v2442_v37, %v2444_v2  ;;  %v3400_v20 = vmul.f32 %v3391_v48, %v5200_v0 }
 0x783   :  { %v2461_v46 = vadd.f32 %v2453_v4, %v2367_v43  ;;  %3322 = vrot.lane.b32.xlu0 %v3306_v7, %s3801_s30  ;;  %3320 = vrot.lane.b32.xlu1 %v3305_v9, %s3801_s30  ;;  %v3397_v13 = vmul.f32 %v3379_v41, %v5200_v0 }
 0x785   :  { %v2446_v19 = vpop.permute.xlu0 %2445  ;;  %v2448_v35 = vpop.permute.xlu1 %2447 }
 0x786   :  { %v2454_v18 = vsel %vm2358_vm0, %v2444_v2, %v2446_v19 }
 0x787   :  { %v2462_v10 = vadd.f32 %v2454_v18, %v2368_v59  ;;  %3324 = vrot.lane.b32.xlu1 %v3307_v8, %s3801_s30  ;;  %3408 = vrot.lane.b32.xlu0 %v3396_v15, %s3801_s30 }
 0x789   :  { %v2450_v60 = vpop.permute.xlu0 %2449  ;;  %v2452_v54 = vpop.permute.xlu1 %2451 }
 0x78a   :  { %v2455_v55 = vsel %vm2358_vm0, %v2448_v35, %v2450_v60  ;;  %v2456_v49 = vsel %vm2358_vm0, %v2450_v60, %v2452_v54 }
 0x78b   :  { %v2463_v52 = vadd.f32 %v2455_v55, %v2369_v14  ;;  %v2464_v34 = vadd.f32 %v2456_v49, %v2370_v57  ;;  %3410 = vrot.lane.b32.xlu1 %v3397_v13, %s3801_s30  ;;  %3412 = vrot.lane.b32.xlu0 %v3398_v1, %s3801_s30 }
 0x78d   :  { %v2536_v36 = vpop.permute.xlu0 %2535  ;;  %v2538_v62 = vpop.permute.xlu1 %2537 }
 0x78e   :  { %v2547_v43 = vsel %vm2358_vm0, %v2536_v36, %v2538_v62 }
 0x78f   :  { %v2555_v16 = vadd.f32 %v2547_v43, %v2461_v46  ;;  %3414 = vrot.lane.b32.xlu1 %v3399_v12, %s3801_s30  ;;  %3416 = vrot.lane.b32.xlu0 %v3400_v20, %s3801_s30 }
 0x791   :  { %v2540_v50 = vpop.permute.xlu0 %2539  ;;  %v2542_v31 = vpop.permute.xlu1 %2541 }
 0x792   :  { %v2548_v40 = vsel %vm2358_vm0, %v2538_v62, %v2540_v50 }
 0x793   :  { %v2556_v45 = vadd.f32 %v2548_v40, %v2462_v10  ;;  %3418 = vrot.lane.b32.xlu1 %v3401_v39, %s3801_s30 }
 0x795   :  { %v2544_v5 = vpop.permute.xlu0 %2543  ;;  %v2546_v56 = vpop.permute.xlu1 %2545 }
 0x796   :  { %v2549_v11 = vsel %vm2358_vm0, %v2542_v31, %v2544_v5  ;;  %v2550_v59 = vsel %vm2358_vm0, %v2544_v5, %v2546_v56 }
 0x797   :  { %v2557_v63 = vadd.f32 %v2549_v11, %v2463_v52  ;;  %v2558_v25 = vadd.f32 %v2550_v59, %v2464_v34 }
 0x799   :  { %v2630_v6 = vpop.permute.xlu0 %2629  ;;  %v2632_v26 = vpop.permute.xlu1 %2631 }
 0x79a   :  { %v2641_v38 = vsel %vm2358_vm0, %v2630_v6, %v2632_v26 }
 0x79b   :  { %v2649_v32 = vadd.f32 %v2641_v38, %v2555_v16 }
 0x79d   :  { %v2634_v29 = vpop.permute.xlu0 %2633  ;;  %v2636_v0 = vpop.permute.xlu1 %2635 }
 0x79e   :  { %v2642_v27 = vsel %vm2358_vm0, %v2632_v26, %v2634_v29 }
 0x79f   :  { %v2650_v28 = vadd.f32 %v2642_v27, %v2556_v45 }
 0x7a1   :  { %v2638_v14 = vpop.permute.xlu0 %2637  ;;  %v2640_v57 = vpop.permute.xlu1 %2639 }
 0x7a2   :  { %v2643_v51 = vsel %vm2358_vm0, %v2636_v0, %v2638_v14  ;;  %v2644_v37 = vsel %vm2358_vm0, %v2638_v14, %v2640_v57 }
 0x7a3   :  { %v2651_v2 = vadd.f32 %v2643_v51, %v2557_v63  ;;  %v2652_v7 = vadd.f32 %v2644_v37, %v2558_v25 }
 0x7a5   :  { %v2732_v9 = vpop.permute.xlu0 %2731  ;;  %v2734_v3 = vpop.permute.xlu1 %2733 }
 0x7a6   :  { %v2744_v4 = vsel %vm2743_vm1, %v2732_v9, %v2734_v3 }
 0x7a7   :  { %v2752_v58 = vadd.f32 %v2744_v4, %v2649_v32 }
 0x7a9   :  { %v2736_v46 = vpop.permute.xlu0 %2735  ;;  %v2738_v21 = vpop.permute.xlu1 %2737 }
 0x7aa   :  { %v2745_v23 = vsel %vm2743_vm1, %v2734_v3, %v2736_v46 }
 0x7ab   :  { %v2753_v19 = vadd.f32 %v2745_v23, %v2650_v28 }
 0x7ad   :  { %v2740_v35 = vpop.permute.xlu0 %2739  ;;  %v2742_v8 = vpop.permute.xlu1 %2741 }
 0x7ae   :  { %v2746_v15 = vsel %vm2743_vm1, %v2738_v21, %v2740_v35  ;;  %v2747_v18 = vsel %vm2743_vm1, %v2740_v35, %v2742_v8 }
 0x7af   :  { %v2754_v41 = vadd.f32 %v2746_v15, %v2651_v2  ;;  %v2755_v30 = vadd.f32 %v2747_v18, %v2652_v7 }
 0x7b1   :  { %v2827_v10 = vpop.permute.xlu0 %2826  ;;  %v2829_v17 = vpop.permute.xlu1 %2828 }
 0x7b2   :  { %v2838_v47 = vsel %vm2743_vm1, %v2827_v10, %v2829_v17 }
 0x7b3   :  { %v2846_v60 = vadd.f32 %v2838_v47, %v2752_v58 }
 0x7b5   :  { %v2831_v54 = vpop.permute.xlu0 %2830  ;;  %v2833_v13 = vpop.permute.xlu1 %2832 }
 0x7b6   :  { %v2839_v1 = vsel %vm2743_vm1, %v2829_v17, %v2831_v54 }
 0x7b7   :  { %v2847_v55 = vadd.f32 %v2839_v1, %v2753_v19 }
 0x7b9   :  { %v2835_v49 = vpop.permute.xlu0 %2834  ;;  %v2837_v33 = vpop.permute.xlu1 %2836 }
 0x7ba   :  { %v2840_v42 = vsel %vm2743_vm1, %v2833_v13, %v2835_v49  ;;  %v2841_v52 = vsel %vm2743_vm1, %v2835_v49, %v2837_v33 }
 0x7bb   :  { %v2848_v34 = vadd.f32 %v2840_v42, %v2754_v41  ;;  %v2849_v48 = vadd.f32 %v2841_v52, %v2755_v30 }
 0x7bd   :  { %v2921_v36 = vpop.permute.xlu0 %2920  ;;  %v2923_v62 = vpop.permute.xlu1 %2922 }
 0x7be   :  { %v2932_v51 = vsel %vm2743_vm1, %v2921_v36, %v2923_v62 }
 0x7bf   :  { %v2940_v7 = vadd.f32 %v2932_v51, %v2846_v60 }
 0x7c1   :  { %v2925_v12 = vpop.permute.xlu0 %2924  ;;  %v2927_v20 = vpop.permute.xlu1 %2926 }
 0x7c2   :  { %v2933_v3 = vsel %vm2743_vm1, %v2923_v62, %v2925_v12 }
 0x7c3   :  { %v2941_v23 = vadd.f32 %v2933_v3, %v2847_v55 }
 0x7c5   :  { %v2929_v43 = vpop.permute.xlu0 %2928  ;;  %v2931_v16 = vpop.permute.xlu1 %2930 }
 0x7c6   :  { %v2934_v15 = vsel %vm2743_vm1, %v2927_v20, %v2929_v43  ;;  %v2935_v18 = vsel %vm2743_vm1, %v2929_v43, %v2931_v16 }
 0x7c7   :  { %v2942_v13 = vadd.f32 %v2934_v15, %v2848_v34  ;;  %v2943_v1 = vadd.f32 %v2935_v18, %v2849_v48 }
 0x7c9   :  { %v3015_v24 = vpop.permute.xlu0 %3014  ;;  %v3017_v50 = vpop.permute.xlu1 %3016 }
 0x7ca   :  { %v3026_v2 = vsel %vm2743_vm1, %v3015_v24, %v3017_v50 }
 0x7cb   :  { %v3034_v58 = vadd.f32 %v3026_v2, %v2940_v7 }
 0x7cd   :  { %v3019_v31 = vpop.permute.xlu0 %3018  ;;  %v3021_v39 = vpop.permute.xlu1 %3020 }
 0x7ce   :  { %v3027_v46 = vsel %vm2743_vm1, %v3017_v50, %v3019_v31 }
 0x7cf   :  { %v3035_v10 = vadd.f32 %v3027_v46, %v2941_v23 }
 0x7d1   :  { %v3025_v40 = vpop.permute.xlu1 %3024  ;;  %v3023_v45 = vpop.permute.xlu0 %3022 }
 0x7d2   :  { %v3028_v47 = vsel %vm2743_vm1, %v3021_v39, %v3023_v45  ;;  %v3029_v60 = vsel %vm2743_vm1, %v3023_v45, %v3025_v40 }
 0x7d3   :  { %v3036_v12 = vadd.f32 %v3028_v47, %v2942_v13  ;;  %v3037_v20 = vadd.f32 %v3029_v60, %v2943_v1 }
 0x7d5   :  { %v3128_v5 = vpop.permute.xlu1 %3127  ;;  %v3126_v56 = vpop.permute.xlu0 %3125 }
 0x7d6   :  { %v3138_v4 = vsel %vm3137_vm2, %v3126_v56, %v3128_v5 }
 0x7d7   :  { %v3146_v19 = vadd.f32 %v3138_v4, %v3034_v58 }
 0x7d9   :  { %v3132_v11 = vpop.permute.xlu1 %3131  ;;  %v3130_v63 = vpop.permute.xlu0 %3129 }
 0x7da   :  { %v3139_v41 = vsel %vm3137_vm2, %v3128_v5, %v3130_v63 }
 0x7db   :  { %v3147_v55 = vadd.f32 %v3139_v41, %v3035_v10 }
 0x7dd   :  { %v3136_v59 = vpop.permute.xlu1 %3135  ;;  %v3134_v6 = vpop.permute.xlu0 %3133 }
 0x7de   :  { %v3140_v42 = vsel %vm3137_vm2, %v3132_v11, %v3134_v6  ;;  %v3141_v52 = vsel %vm3137_vm2, %v3134_v6, %v3136_v59  ;;  %v3673_v6 = vld [vmem:[%s5608_s3] sm:$0x3f] }
 0x7df   :  { %v3148_v48 = vadd.f32 %v3140_v42, %v3036_v12  ;;  %v3149_v31 = vadd.f32 %v3141_v52, %v3037_v20 }
 0x7e1   :  { %v3223_v25 = vpop.permute.xlu1 %3222  ;;  %v3221_v32 = vpop.permute.xlu0 %3220 }
 0x7e2   :  { %v3232_v21 = vsel %vm3137_vm2, %v3221_v32, %v3223_v25 }
 0x7e3   :  { %v3240_v17 = vadd.f32 %v3232_v21, %v3146_v19 }
 0x7e5   :  { %v3227_v26 = vpop.permute.xlu1 %3226  ;;  %v3225_v0 = vpop.permute.xlu0 %3224 }
 0x7e6   :  { %v3233_v54 = vsel %vm3137_vm2, %v3223_v25, %v3225_v0 }
 0x7e7   :  { %v3241_v43 = vadd.f32 %v3233_v54, %v3147_v55  ;;  %v3503_v55 = vrot.slane %v3673_v6, %v3974_v22 }
 0x7e9   :  { %v3231_v38 = vpop.permute.xlu1 %3230  ;;  %v3229_v28 = vpop.permute.xlu0 %3228 }
 0x7ea   :  { %v3234_v50 = vsel %vm3137_vm2, %v3227_v26, %v3229_v28  ;;  %v3235_v34 = vsel %vm3137_vm2, %v3229_v28, %v3231_v38  ;;  %v3449_v26 = vrot.slane %v3673_v6, %v3911_v44  ;;  %v3674_v38 = vld [vmem:[%s5608_s3 + $0x8] sm:$0x3f]  ;;  %s3802_s3 = smov [#allocation8]  }
 0x7eb   :  { %v3242_v59 = vadd.f32 %v3234_v50, %v3148_v48  ;;  %v3243_v63 = vadd.f32 %v3235_v34, %v3149_v31  ;;  %v3453_v32 = vrot.slane %v3674_v38, %v3911_v44  ;;  %v3471_v4 = vrot.slane %v3674_v38, %v3922_v53  ;;  %s3561_s10 = sshll.u32 %s3802_s3, 4  ;;  %s3562_s10 = int_to_ptr.vmem [resolvable:$true] %s3561_s10 }
 0x7ec   :  { %v3467_v44 = vrot.slane %v3673_v6, %v3922_v53  ;;  %v3489_v19 = vrot.slane %v3674_v38, %v3937_v61  ;;  %s3719_s11 = scalar_lea.vmem %s3562_s10, 512  ;;  %p3724_p3 = scmp.lt.s32.totalorder %s3562_s10, %s3562_s10 }
 0x7ed   :  { %v3315_v29 = vpop.permute.xlu1 %3314  ;;  %p3720_p2 = scmp.ne.s32.totalorder %s3562_s10, %s3719_s11  ;;  %p3725_p4 = scmp.lt.s32.totalorder %s3719_s11, %s3719_s11 }
 0x7ef   :  { %p3726_p5 = por %p3725_p4, %p3724_p3 }
 0x7f1   :  { %v3317_v27 = vpop.permute.xlu1 %3316  ;;  %p3727_p6 = pnand %p3726_p5, %p3720_p2 }
 0x7f2   :  { %v3326_v30 = vsel %vm3137_vm2, %v3315_v29, %v3317_v27 }
 0x7f3   :  { %v3334_v49 = vadd.f32 %v3326_v30, %v3240_v17  ;;  %v3485_v30 = vrot.slane %v3673_v6, %v3937_v61  ;;  %v3507_v17 = vrot.slane %v3674_v38, %v3974_v22 }
 0x7f5   :  { %v3321_v14 = vpop.permute.xlu1 %3320 }
 0x7f9   :  { %v3325_v37 = vpop.permute.xlu1 %3324 }
 0x7fa   :  { %v5520_v57 = vpop.permute.xlu0 %3435 }
 0x7fd   :  { %v3411_v35 = vpop.permute.xlu1 %3410 }
 0x7fe   :  { %v3319_v9 = vpop.permute.xlu0 %3318 }
 0x7ff   :  { %v3327_v36 = vsel %vm3137_vm2, %v3317_v27, %v3319_v9 }
 0x800   :  { %v3335_v39 = vadd.f32 %v3327_v36, %v3241_v43 }
 0x801   :  { %v3415_v16 = vpop.permute.xlu1 %3414 }
 0x802   :  { %v3323_v8 = vpop.permute.xlu0 %3322 }
 0x803   :  { %v3328_v5 = vsel %vm3137_vm2, %v3321_v14, %v3323_v8  ;;  %v3329_v56 = vsel %vm3137_vm2, %v3323_v8, %v3325_v37 }
 0x804   :  { %v3336_v29 = vadd.f32 %v3328_v5, %v3242_v59  ;;  %v3337_v0 = vadd.f32 %v3329_v56, %v3243_v63 }
 0x805   :  { %v3419_v27 = vpop.permute.xlu1 %3418 }
 0x806   :  { %v3409_v33 = vpop.permute.xlu0 %3408 }
 0x807   :  { %v3420_v62 = vsel %vm3137_vm2, %v3409_v33, %v3411_v35 }
 0x808   :  { %v3428_v24 = vadd.f32 %v3420_v62, %v3334_v49 }
 0x80a   :  { %v3438_v40 = vadd.f32 %v5520_v57, %v3428_v24  ;;  %v3413_v45 = vpop.permute.xlu0 %3412 }
 0x80b   :  { %v3421_v11 = vsel %vm3137_vm2, %v3411_v35, %v3413_v45 }
 0x80c   :  { %v3429_v25 = vadd.f32 %v3421_v11, %v3335_v39  ;;  %v5553_v28 = vmax.f32 %v3438_v40, 0.0 }
 0x80e   :  { %v3439_v14 = vadd.f32 %v5520_v57, %v3429_v25  ;;  %v3417_v51 = vpop.permute.xlu0 %3416  ;;  %v3454_v21 = vmul.f32 %v3449_v26, %v5553_v28  ;;  %v3490_v1 = vmul.f32 %v3485_v30, %v5553_v28  ;;  %v3508_v36 = vmul.f32 %v3503_v55, %v5553_v28 }
 0x80f   :  { %v3422_v37 = vsel %vm3137_vm2, %v3415_v16, %v3417_v51  ;;  %v3423_v2 = vsel %vm3137_vm2, %v3417_v51, %v3419_v27 }
 0x810   :  { %v5558_v7 = vmax.f32 %v3439_v14, 0.0  ;;  %v3430_v9 = vadd.f32 %v3422_v37, %v3336_v29  ;;  %v3431_v3 = vadd.f32 %v3423_v2, %v3337_v0 }
 0x812   :  { %v3440_v58 = vadd.f32 %v5520_v57, %v3430_v9  ;;  %v3441_v46 = vadd.f32 %v5520_v57, %v3431_v3  ;;  %v3455_v23 = vmul.f32 %v3453_v32, %v5558_v7  ;;  %v3473_v18 = vmul.f32 %v3471_v4, %v5558_v7 }
 0x813   :  { %v3472_v57 = vmul.f32 %v3467_v44, %v5553_v28  ;;  %v3491_v10 = vmul.f32 %v3489_v19, %v5558_v7  ;;  %v3509_v49 = vmul.f32 %v3507_v17, %v5558_v7 }
 0x814   :  { %v5567_v35 = vmax.f32 %v3440_v58, 0.0  ;;  %v5569_v8 = vmax.f32 %v3441_v46, 0.0  ;;  %v3458_v15 = vadd.f32 %v3455_v23, %v3454_v21 }
 0x815   :  { %v3476_v60 = vadd.f32 %v3473_v18, %v3472_v57  ;;  %v3494_v33 = vadd.f32 %v3491_v10, %v3490_v1  ;;  %v3512_v62 = vadd.f32 %v3509_v49, %v3508_v36 }
 0x816   :  { %3459 = vadd.xlane.f32.xlu0 %v3458_v15  ;;  %v3456_v53 = vmul.f32 %v3449_v26, %v5567_v35  ;;  %v3457_v41 = vmul.f32 %v3453_v32, %v5569_v8  ;;  %v3474_v54 = vmul.f32 %v3467_v44, %v5567_v35  ;;  %v3475_v13 = vmul.f32 %v3471_v4, %v5569_v8 }
 0x817   :  { %v3492_v42 = vmul.f32 %v3485_v30, %v5567_v35  ;;  %v3493_v52 = vmul.f32 %v3489_v19, %v5569_v8  ;;  %v3510_v20 = vmul.f32 %v3503_v55, %v5567_v35  ;;  %v3511_v43 = vmul.f32 %v3507_v17, %v5569_v8 }
 0x818   :  { %v3461_v47 = vadd.f32 %v3457_v41, %v3456_v53  ;;  %v3479_v61 = vadd.f32 %v3475_v13, %v3474_v54 }
 0x819   :  { %v3497_v12 = vadd.f32 %v3493_v52, %v3492_v42  ;;  %v3515_v22 = vadd.f32 %v3511_v43, %v3510_v20 }
 0x81a   :  { %3462 = vadd.xlane.f32.xlu1 %v3461_v47  ;;  %3477 = vadd.xlane.f32.xlu0 %v3476_v60 }
 0x81e   :  { %3495 = vadd.xlane.f32.xlu1 %v3494_v33  ;;  %3480 = vadd.xlane.f32.xlu0 %v3479_v61 }
 0x822   :  { %3513 = vadd.xlane.f32.xlu1 %v3512_v62  ;;  %3498 = vadd.xlane.f32.xlu0 %v3497_v12 }
 0x826   :  { %3516 = vadd.xlane.f32.xlu0 %v3515_v22 }
 0x8a3   :  { %v3460_v16 = vpop.xlane.xlu0 %3459 }
 0x8a4   :  { %v3518_v39 = vmul.f32 0.015625, %v3460_v16 }
 0x8a7   :  { %v3463_v24 = vpop.xlane.xlu1 %3462  ;;  %v3478_v50 = vpop.xlane.xlu0 %3477 }
 0x8a8   :  { %v3526_v5 = vmul.f32 0.015625, %v3478_v50  ;;  %v3519_v63 = vmul.f32 0.015625, %v3463_v24 }
 0x8ab   :  { %v3496_v34 = vpop.xlane.xlu1 %3495  ;;  %v3481_v48 = vpop.xlane.xlu0 %3480 }
 0x8ac   :  { %v3520_v31 = vmul.f32 0.015625, %v3496_v34  ;;  %v3527_v6 = vmul.f32 0.015625, %v3481_v48 }
 0x8ae   :  { %v3522_v56 = vsub.f32 %v3518_v39, %v3520_v31 }
 0x8af   :  { %v3514_v40 = vpop.xlane.xlu1 %3513  ;;  %v3499_v45 = vpop.xlane.xlu0 %3498 }
 0x8b0   :  { %v3528_v11 = vmul.f32 0.015625, %v3514_v40  ;;  %v3521_v59 = vmul.f32 0.015625, %v3499_v45  ;;  %v3524_v38 = vand.u32 2147483647, %v3522_v56 }
 0x8b2   :  { %v3530_v25 = vsub.f32 %v3526_v5, %v3528_v11  ;;  %v3523_v29 = vsub.f32 %v3519_v63, %v3521_v59 }
 0x8b3   :  { %v3517_v26 = vpop.xlane.xlu0 %3516 }
 0x8b4   :  { %v3532_v32 = vand.u32 2147483647, %v3530_v25  ;;  %v3529_v0 = vmul.f32 0.015625, %v3517_v26  ;;  %v3525_v37 = vand.u32 2147483647, %v3523_v29 }
 0x8b6   :  { %v3534_v27 = vadd.f32 %v3532_v32, %v3524_v38  ;;  %v3531_v14 = vsub.f32 %v3527_v6, %v3529_v0 }
 0x8b8   :  { %v3536_v51 = vrot.slane %v3534_v27, 4  ;;  %v3533_v2 = vand.u32 2147483647, %v3531_v14 }
 0x8ba   :  { %v3537_v9 = vadd.f32 %v3536_v51, %v3534_v27  ;;  %v3535_v3 = vadd.f32 %v3533_v2, %v3525_v37 }
 0x8bc   :  { %v3538_v4 = vrot.slane %v3537_v9, 2  ;;  %v3542_v44 = vrot.slane %v3535_v3, 4 }
 0x8be   :  { %v3539_v58 = vadd.f32 %v3538_v4, %v3537_v9  ;;  %v3543_v46 = vadd.f32 %v3542_v44, %v3535_v3 }
 0x8c0   :  { %v3540_v21 = vrot.slane %v3539_v58, 1  ;;  %v3544_v23 = vrot.slane %v3543_v46, 2 }
 0x8c2   :  { %v3541_v19 = vadd.f32 %v3540_v21, %v3539_v58  ;;  %v3545_v15 = vadd.f32 %v3544_v23, %v3543_v46 }
 0x8c4   :  { %v3548_v18 = vmul.f32 %v3541_v19, %v5553_v28  ;;  %v3549_v53 = vmul.f32 %v3541_v19, %v5558_v7  ;;  %v3546_v41 = vrot.slane %v3545_v15, 1 }
 0x8c6   :  { %3552 = vst [vmem:[#allocation8] sm:$0xff] %v3548_v18  ;;  %3553 = vst [vmem:[#allocation8 + $0x8] sm:$0xff] %v3549_v53  ;;  %v3547_v57 = vadd.f32 %v3546_v41, %v3545_v15 }
 0x8c8   :  { %v3550_v30 = vmul.f32 %v3547_v57, %v5567_v35  ;;  %v3551_v10 = vmul.f32 %v3547_v57, %v5569_v8 }
 0x8ca   :  { %3554 = vst [vmem:[#allocation8 + $0x10] sm:$0xff] %v3550_v30  ;;  %3555 = vst [vmem:[#allocation8 + $0x18] sm:$0xff] %v3551_v10 }
 0x8cb   :  { %3730 = shalt.err (!%p3727_p6)
}
 0x8cc   :  { %s3731_s13 = scalar_lea.hbm %s5609_s4, 512 }
 0x8cd   :  { %p3732_p7 = scmp.ne.s32.totalorder %s5609_s4, %s3731_s13  ;;  %p3735_p8 = scmp.lt.u32.totalorder %s3731_s13, %s5609_s4 }
 0x8cf   :  { %p3737_p9 = pnand %p3735_p8, %p3732_p7 }
 0x8d1   :  { %3740 = shalt.err (!%p3737_p9)
}
 0x8d2   :  { %s3803_s17 = smov 256  }
 0x8d3   :  { %3567 = dma.vmem_to_hbm [thread:$0]  %s3562_s10, 512, %s5609_s4, [#allocation5], %s3803_s17, %s3803_s17, %s3767_s19  }
 0x8d4   :  { %3745 = dma.done.wait [#allocation5], 512  }
 0x8d5   :  { %3746 = vsyncadd [#allocation5], 4294966784 }
 0x8d6   :  { %3571 = vsyncpa [#allocation4], 1 }
 0x8d7   :  { %3572 = vsyncpa [#allocation7], 1 }
 0x8d8   :  { %3573 = vsyncpa [#allocation5], 1 }

</bundles_post_ra>
